<compile_context>
chip_gen: v7x
topology: tpu7x:2x2x1
jax: 0.10.0
libtpu: 0.0.40
codegen_flags: <defaults>
</compile_context>

<pallas_src>
import jax
import jax.numpy as jnp
from jax.experimental import pallas as pl
from jax.experimental.pallas import tpu as pltpu

# Shape-consistent config: stride=1 and downsample=None require
# in_channels == out_channels * expansion for the residual add.
N, H, W = 2, 8, 8
C_MID = 32                      # out_channels
EXPANSION = 4
C_IN = C_MID * EXPANSION        # 128 (identity path matches, no downsample)
C_EXP = C_MID * EXPANSION       # 128
M = N * H * W                   # 128 rows
EPS = 1e-5
SKIP_SCALE = 1.0                # module default: self.skip_scale = 1

assert (W & (W - 1)) == 0 and (H & (H - 1)) == 0, "h/w decode uses bit ops"
W_SHIFT = W.bit_length() - 1

# TODO(synk): stride > 1 and a non-None `downsample` module (they change the
# identity path) are not implemented here; kernel assumes stride=1 / no
# downsample (the module's defaults).
# TODO(synk): for realistic ResNet shapes, add a grid over M marked "parallel"
# (2x on v7x's two TensorCores) with a separate BN-stats pass, size per-step
# working sets for v7x's 64 MiB VMEM/TC, and set vmem_limit_bytes explicitly;
# the monolithic all-in-VMEM design below is only safe at toy sizes.
# TODO(synk): when chaining blocks in a real ResNet, keep activations in
# flattened NHWC between blocks and hoist the NCHW<->NHWC transposes out of
# the per-block wrapper (they touch 2x the activation bytes around the call).
# TODO(synk): optionally pad C_MID 32->128 for lane-dense intermediates; only
# after profiling, since it grows the conv2 K from 288 to 1152.


def _bn_train(x, gamma, beta):
    """Training-mode BatchNorm on (M, C): single-pass batch statistics."""
    inv_m = 1.0 / x.shape[0]
    s = jnp.sum(x, axis=0, keepdims=True)
    ss = jnp.sum(x * x, axis=0, keepdims=True)
    mean = s * inv_m
    # Biased variance (PyTorch fwd); clamp against f32 cancellation going
    # slightly negative (would NaN the rsqrt).
    var = jnp.maximum(ss * inv_m - mean * mean, 0.0)
    return (x - mean) * jax.lax.rsqrt(var + EPS) * gamma + beta


def bottleneck_kernel(x_ref, w1_ref, w2_ref, w3_ref, bn_ref, out_ref):
    # Packed BN params: rows 0..3 use lanes [0:C_MID], rows 4..7 use all lanes.
    bnp = bn_ref[...]
    g1, b1 = bnp[0:1, :C_MID], bnp[1:2, :C_MID]
    g2, b2 = bnp[2:3, :C_MID], bnp[3:4, :C_MID]
    g3, b3 = bnp[4:5, :], bnp[5:6, :]
    g4, b4 = bnp[6:7, :], bnp[7:8, :]

    # conv1 (1x1) + bn1 + relu  (bf16 MXU inputs, f32 accumulation)
    t1 = jnp.dot(x_ref[...].astype(jnp.bfloat16), w1_ref[...],
                 preferred_element_type=jnp.float32)
    t1 = jnp.maximum(_bn_train(t1, g1, b1), 0.0)

    # conv2 (3x3, stride=1, padding=1): 9 shift-based taps (XLU sublane rolls
    # + hoisted border masks), consumed in groups of {4,4,1} by accumulating
    # MXU dots against row-slices of the (288, C_MID) weight.
    row = jax.lax.broadcasted_iota(jnp.int32, (M, 1), 0)
    ww = jnp.bitwise_and(row, W - 1)                               # row % W
    hh = jnp.bitwise_and(jnp.right_shift(row, W_SHIFT), H - 1)     # (row//W)%H
    # Base masks, broadcast exactly once; index 1 (dy/dx == 0) trivially true.
    row_ok = (jnp.broadcast_to(hh >= 1, (M, C_MID)), None,
              jnp.broadcast_to(hh < H - 1, (M, C_MID)))
    col_ok = (jnp.broadcast_to(ww >= 1, (M, C_MID)), None,
              jnp.broadcast_to(ww < W - 1, (M, C_MID)))

    def make_tap(ky, kx):
        dy, dx = ky - 1, kx - 1
        off = dy * W + dx                      # flat-row offset of this tap
        t = t1 if off == 0 else pltpu.roll(t1, (-off) % M, axis=0)
        rm, cm = row_ok[ky], col_ok[kx]
        if rm is not None and cm is not None:
            mask = jnp.logical_and(rm, cm)     # corner taps: AND two masks
        else:
            mask = rm if rm is not None else cm
        if mask is not None:                   # centre tap: no mask at all
            t = jnp.where(mask, t, 0.0)        # mask in f32 (v5e-safe VALU)
        return t.astype(jnp.bfloat16)

    tap_idx = [(ky, kx) for ky in range(3) for kx in range(3)]
    t2 = jnp.zeros((M, C_MID), jnp.float32)
    for lo, hi in ((0, 4), (4, 8), (8, 9)):    # K = 128, 128, 32
        grp = [make_tap(*tap_idx[i]) for i in range(lo, hi)]
        grp = grp[0] if len(grp) == 1 else jnp.concatenate(grp, axis=1)
        t2 = t2 + jnp.dot(grp, w2_ref[lo * C_MID:hi * C_MID, :],
                          preferred_element_type=jnp.float32)
    t2 = jnp.maximum(_bn_train(t2, g2, b2), 0.0)

    # conv3 (1x1) + bn3
    t3 = jnp.dot(t2.astype(jnp.bfloat16), w3_ref[...],
                 preferred_element_type=jnp.float32)
    t3 = _bn_train(t3, g3, b3)

    # residual add (re-read x from VMEM instead of keeping it live), bn4, relu
    t3 = t3 + SKIP_SCALE * x_ref[...]
    t3 = _bn_train(t3, g4, b4)
    out_ref[...] = jnp.maximum(t3, 0.0)


def bottleneck_bn(x_nchw, params):
    """x_nchw: (N, C_IN, H, W) float32 -> (N, C_EXP, H, W) float32."""
    w1, w2, w3, g1, b1, g2, b2, g3, b3, g4, b4 = params
    x2d = jnp.transpose(x_nchw, (0, 2, 3, 1)).reshape(M, C_IN)
    w1b = w1.astype(jnp.bfloat16)                                  # (C_IN, C_MID)
    w2b = w2.reshape(9 * C_MID, C_MID).astype(jnp.bfloat16)        # (288, C_MID)
    w3b = w3.astype(jnp.bfloat16)                                  # (C_MID, C_EXP)

    # Pack all 8 BN gamma/beta vectors into a single (8, 128) f32 operand.
    bn_pack = jnp.zeros((8, C_EXP), jnp.float32)
    bn_pack = bn_pack.at[0, :C_MID].set(g1.reshape(-1))
    bn_pack = bn_pack.at[1, :C_MID].set(b1.reshape(-1))
    bn_pack = bn_pack.at[2, :C_MID].set(g2.reshape(-1))
    bn_pack = bn_pack.at[3, :C_MID].set(b2.reshape(-1))
    bn_pack = bn_pack.at[4, :].set(g3.reshape(-1))
    bn_pack = bn_pack.at[5, :].set(b3.reshape(-1))
    bn_pack = bn_pack.at[6, :].set(g4.reshape(-1))
    bn_pack = bn_pack.at[7, :].set(b4.reshape(-1))

    flops = 2 * M * (C_IN * C_MID + 9 * C_MID * C_MID + C_MID * C_EXP)
    bytes_accessed = (x2d.size * 4 + w1b.size * 2 + w2b.size * 2
                      + w3b.size * 2 + bn_pack.size * 4 + M * C_EXP * 4)
    vmem = pl.BlockSpec(memory_space=pltpu.MemorySpace.VMEM)
    out2d = pl.pallas_call(
        bottleneck_kernel,
        out_shape=jax.ShapeDtypeStruct((M, C_EXP), jnp.float32),
        in_specs=[vmem] * 5,
        out_specs=vmem,
        cost_estimate=pl.CostEstimate(flops=flops,
                                      transcendentals=2 * (C_MID + C_EXP),
                                      bytes_accessed=bytes_accessed),
    )(x2d, w1b, w2b, w3b, bn_pack)
    return jnp.transpose(out2d.reshape(N, H, W, C_EXP), (0, 3, 1, 2))


def _ref_forward(x_nchw, params):
    """Pure-JAX f32 reference of the PyTorch forward (training-mode BN)."""
    w1, w2, w3, g1, b1, g2, b2, g3, b3, g4, b4 = params

    def conv1x1(x, w):  # w: (Cin, Cout)
        w_oihw = w.T[:, :, None, None]
        return jax.lax.conv_general_dilated(
            x, w_oihw, window_strides=(1, 1), padding="VALID",
            dimension_numbers=("NCHW", "OIHW", "NCHW"),
            precision=jax.lax.Precision.HIGHEST)

    def conv3x3(x, w):  # w: (3, 3, Cin, Cout)
        w_oihw = jnp.transpose(w, (3, 2, 0, 1))
        return jax.lax.conv_general_dilated(
            x, w_oihw, window_strides=(1, 1), padding=((1, 1), (1, 1)),
            dimension_numbers=("NCHW", "OIHW", "NCHW"),
            precision=jax.lax.Precision.HIGHEST)

    def bn(x, g, b):
        mean = jnp.mean(x, axis=(0, 2, 3), keepdims=True)
        var = jnp.mean(jnp.square(x - mean), axis=(0, 2, 3), keepdims=True)
        g = g.reshape(1, -1, 1, 1)
        b = b.reshape(1, -1, 1, 1)
        return (x - mean) * jax.lax.rsqrt(var + EPS) * g + b

    out = jax.nn.relu(bn(conv1x1(x_nchw, w1), g1, b1))
    out = jax.nn.relu(bn(conv3x3(out, w2), g2, b2))
    out = bn(conv1x1(out, w3), g3, b3)
    out = out + SKIP_SCALE * x_nchw
    return jax.nn.relu(bn(out, g4, b4))


if __name__ == "__main__":
    key = jax.random.PRNGKey(0)
    kx, k1, k2, k3 = jax.random.split(key, 4)

    x = jax.random.normal(kx, (N, C_IN, H, W), jnp.float32)

    # Deterministic synthetic weights (conv weights stored as (Cin, Cout) /
    # (kh, kw, Cin, Cout); BN affine at PyTorch default init: gamma=1, beta=0).
    w1 = jax.random.normal(k1, (C_IN, C_MID), jnp.float32) * 0.1
    w2 = jax.random.normal(k2, (3, 3, C_MID, C_MID), jnp.float32) * 0.1
    w3 = jax.random.normal(k3, (C_MID, C_EXP), jnp.float32) * 0.1
    g1, b1 = jnp.ones((C_MID,), jnp.float32), jnp.zeros((C_MID,), jnp.float32)
    g2, b2 = jnp.ones((C_MID,), jnp.float32), jnp.zeros((C_MID,), jnp.float32)
    g3, b3 = jnp.ones((C_EXP,), jnp.float32), jnp.zeros((C_EXP,), jnp.float32)
    g4, b4 = jnp.ones((C_EXP,), jnp.float32), jnp.zeros((C_EXP,), jnp.float32)
    params = (w1, w2, w3, g1, b1, g2, b2, g3, b3, g4, b4)

    out = jax.block_until_ready(bottleneck_bn(x, params))
    assert out.shape == (N, C_EXP, H, W), out.shape

    ref = jax.block_until_ready(_ref_forward(x, params))
    max_err = float(jnp.max(jnp.abs(out - ref)))
    # bf16 MXU operands (f32 accumulation) through 3 convs and 4 BNs vs an
    # f32 (HIGHEST-precision) reference; tightened from the previous 5e-2.
    assert max_err < 2e-2, f"mismatch vs reference: {max_err}"

    print("KERNEL_OK")
</pallas_src>

<mosaic_0001>
module attributes {stable_mosaic.version = 11 : i64} {
  func.func @bottleneck_kernel(%arg0: memref<128x128xf32, #tpu.memory_space<vmem>>, %arg1: memref<128x32xbf16, #tpu.memory_space<vmem>>, %arg2: memref<288x32xbf16, #tpu.memory_space<vmem>>, %arg3: memref<32x128xbf16, #tpu.memory_space<vmem>>, %arg4: memref<8x128xf32, #tpu.memory_space<vmem>>, %arg5: memref<128x128xf32, #tpu.memory_space<vmem>>) attributes {dimension_semantics = [], scalar_prefetch = 0 : i64, scratch_operands = 0 : i64, tpu.core_type = #tpu.core_type<tc>} {
    %c0 = arith.constant 0 : index
    %c0_0 = arith.constant 0 : index
    %0 = vector.load %arg4[%c0, %c0_0] : memref<8x128xf32, #tpu.memory_space<vmem>>, vector<8x128xf32>
    %1 = vector.extract_strided_slice %0 {offsets = [0, 0], sizes = [1, 32], strides = [1, 1]} : vector<8x128xf32> to vector<1x32xf32>
    %2 = vector.extract_strided_slice %0 {offsets = [1, 0], sizes = [1, 32], strides = [1, 1]} : vector<8x128xf32> to vector<1x32xf32>
    %3 = vector.extract_strided_slice %0 {offsets = [2, 0], sizes = [1, 32], strides = [1, 1]} : vector<8x128xf32> to vector<1x32xf32>
    %4 = vector.extract_strided_slice %0 {offsets = [3, 0], sizes = [1, 32], strides = [1, 1]} : vector<8x128xf32> to vector<1x32xf32>
    %5 = vector.extract_strided_slice %0 {offsets = [4, 0], sizes = [1, 128], strides = [1, 1]} : vector<8x128xf32> to vector<1x128xf32>
    %6 = vector.extract_strided_slice %0 {offsets = [5, 0], sizes = [1, 128], strides = [1, 1]} : vector<8x128xf32> to vector<1x128xf32>
    %7 = vector.extract_strided_slice %0 {offsets = [6, 0], sizes = [1, 128], strides = [1, 1]} : vector<8x128xf32> to vector<1x128xf32>
    %8 = vector.extract_strided_slice %0 {offsets = [7, 0], sizes = [1, 128], strides = [1, 1]} : vector<8x128xf32> to vector<1x128xf32>
    %c0_1 = arith.constant 0 : index
    %c0_2 = arith.constant 0 : index
    %9 = vector.load %arg0[%c0_1, %c0_2] : memref<128x128xf32, #tpu.memory_space<vmem>>, vector<128x128xf32>
    %10 = arith.truncf %9 : vector<128x128xf32> to vector<128x128xbf16>
    %c0_3 = arith.constant 0 : index
    %c0_4 = arith.constant 0 : index
    %11 = vector.load %arg1[%c0_3, %c0_4] : memref<128x32xbf16, #tpu.memory_space<vmem>>, vector<128x32xbf16>
    %cst = arith.constant dense<0.000000e+00> : vector<128x32xf32>
    %12 = tpu.matmul %10, %11, %cst {dimension_numbers = #tpu.dot_dimension_numbers<[1], [0], [0], [1], [0, 0, 1, 1], [], []>} : vector<128x128xbf16>, vector<128x32xbf16>, vector<128x32xf32> -> vector<128x32xf32>
    %cst_5 = arith.constant dense<0.000000e+00> : vector<32xf32>
    %13 = vector.multi_reduction <add>, %12, %cst_5 [0] : vector<128x32xf32> to vector<32xf32>
    %14 = vector.shape_cast %13 : vector<32xf32> to vector<1x32xf32>
    %15 = arith.mulf %12, %12 : vector<128x32xf32>
    %cst_6 = arith.constant dense<0.000000e+00> : vector<32xf32>
    %16 = vector.multi_reduction <add>, %15, %cst_6 [0] : vector<128x32xf32> to vector<32xf32>
    %17 = vector.shape_cast %16 : vector<32xf32> to vector<1x32xf32>
    %cst_7 = arith.constant 7.812500e-03 : f32
    %18 = vector.broadcast %cst_7 : f32 to vector<1x32xf32>
    %19 = arith.mulf %14, %18 : vector<1x32xf32>
    %cst_8 = arith.constant 7.812500e-03 : f32
    %20 = vector.broadcast %cst_8 : f32 to vector<1x32xf32>
    %21 = arith.mulf %17, %20 : vector<1x32xf32>
    %22 = arith.mulf %19, %19 : vector<1x32xf32>
    %23 = arith.subf %21, %22 : vector<1x32xf32>
    %cst_9 = arith.constant 0.000000e+00 : f32
    %24 = vector.broadcast %cst_9 : f32 to vector<1x32xf32>
    %25 = arith.maximumf %23, %24 : vector<1x32xf32>
    %26 = vector.broadcast %19 : vector<1x32xf32> to vector<128x32xf32>
    %27 = arith.subf %12, %26 : vector<128x32xf32>
    %cst_10 = arith.constant 9.99999974E-6 : f32
    %28 = vector.broadcast %cst_10 : f32 to vector<1x32xf32>
    %29 = arith.addf %25, %28 : vector<1x32xf32>
    %30 = math.rsqrt %29 : vector<1x32xf32>
    %31 = vector.broadcast %30 : vector<1x32xf32> to vector<128x32xf32>
    %32 = arith.mulf %27, %31 : vector<128x32xf32>
    %33 = vector.broadcast %1 : vector<1x32xf32> to vector<128x32xf32>
    %34 = arith.mulf %32, %33 : vector<128x32xf32>
    %35 = vector.broadcast %2 : vector<1x32xf32> to vector<128x32xf32>
    %36 = arith.addf %34, %35 : vector<128x32xf32>
    %cst_11 = arith.constant 0.000000e+00 : f32
    %37 = vector.broadcast %cst_11 : f32 to vector<128x32xf32>
    %38 = arith.maximumf %36, %37 : vector<128x32xf32>
    %39 = tpu.iota {dimensions = array<i32: 0>} : vector<128x1xi32>
    %c7_i32 = arith.constant 7 : i32
    %40 = vector.broadcast %c7_i32 : i32 to vector<128x1xi32>
    %41 = arith.andi %39, %40 : vector<128x1xi32>
    %c3_i32 = arith.constant 3 : i32
    %42 = vector.broadcast %c3_i32 : i32 to vector<128x1xi32>
    %43 = arith.shrsi %39, %42 : vector<128x1xi32>
    %c7_i32_12 = arith.constant 7 : i32
    %44 = vector.broadcast %c7_i32_12 : i32 to vector<128x1xi32>
    %45 = arith.andi %43, %44 : vector<128x1xi32>
    %c1_i32 = arith.constant 1 : i32
    %46 = vector.broadcast %c1_i32 : i32 to vector<128x1xi32>
    %47 = arith.cmpi sge, %45, %46 : vector<128x1xi32>
    %48 = vector.shape_cast %47 : vector<128x1xi1> to vector<128x1xi1>
    %49 = vector.broadcast %48 : vector<128x1xi1> to vector<128x32xi1>
    %c7_i32_13 = arith.constant 7 : i32
    %50 = vector.broadcast %c7_i32_13 : i32 to vector<128x1xi32>
    %51 = arith.cmpi slt, %45, %50 : vector<128x1xi32>
    %52 = vector.shape_cast %51 : vector<128x1xi1> to vector<128x1xi1>
    %53 = vector.broadcast %52 : vector<128x1xi1> to vector<128x32xi1>
    %c1_i32_14 = arith.constant 1 : i32
    %54 = vector.broadcast %c1_i32_14 : i32 to vector<128x1xi32>
    %55 = arith.cmpi sge, %41, %54 : vector<128x1xi32>
    %56 = vector.shape_cast %55 : vector<128x1xi1> to vector<128x1xi1>
    %57 = vector.broadcast %56 : vector<128x1xi1> to vector<128x32xi1>
    %c7_i32_15 = arith.constant 7 : i32
    %58 = vector.broadcast %c7_i32_15 : i32 to vector<128x1xi32>
    %59 = arith.cmpi slt, %41, %58 : vector<128x1xi32>
    %60 = vector.shape_cast %59 : vector<128x1xi1> to vector<128x1xi1>
    %61 = vector.broadcast %60 : vector<128x1xi1> to vector<128x32xi1>
    %cst_16 = arith.constant 0.000000e+00 : f32
    %62 = vector.broadcast %cst_16 : f32 to vector<128x32xf32>
    %c9_i32 = arith.constant 9 : i32
    %63 = tpu.dynamic_rotate %38 by %c9_i32 dim 0 : vector<128x32xf32>, i32 -> vector<128x32xf32>
    %64 = arith.andi %49, %57 : vector<128x32xi1>
    %cst_17 = arith.constant 0.000000e+00 : f32
    %65 = vector.broadcast %cst_17 : f32 to vector<128x32xf32>
    %66 = arith.select %64, %63, %65 : vector<128x32xi1>, vector<128x32xf32>
    %67 = arith.truncf %66 : vector<128x32xf32> to vector<128x32xbf16>
    %c8_i32 = arith.constant 8 : i32
    %68 = tpu.dynamic_rotate %38 by %c8_i32 dim 0 : vector<128x32xf32>, i32 -> vector<128x32xf32>
    %cst_18 = arith.constant 0.000000e+00 : f32
    %69 = vector.broadcast %cst_18 : f32 to vector<128x32xf32>
    %70 = arith.select %49, %68, %69 : vector<128x32xi1>, vector<128x32xf32>
    %71 = arith.truncf %70 : vector<128x32xf32> to vector<128x32xbf16>
    %c7_i32_19 = arith.constant 7 : i32
    %72 = tpu.dynamic_rotate %38 by %c7_i32_19 dim 0 : vector<128x32xf32>, i32 -> vector<128x32xf32>
    %73 = arith.andi %49, %61 : vector<128x32xi1>
    %cst_20 = arith.constant 0.000000e+00 : f32
    %74 = vector.broadcast %cst_20 : f32 to vector<128x32xf32>
    %75 = arith.select %73, %72, %74 : vector<128x32xi1>, vector<128x32xf32>
    %76 = arith.truncf %75 : vector<128x32xf32> to vector<128x32xbf16>
    %c1_i32_21 = arith.constant 1 : i32
    %77 = tpu.dynamic_rotate %38 by %c1_i32_21 dim 0 : vector<128x32xf32>, i32 -> vector<128x32xf32>
    %cst_22 = arith.constant 0.000000e+00 : f32
    %78 = vector.broadcast %cst_22 : f32 to vector<128x32xf32>
    %79 = arith.select %57, %77, %78 : vector<128x32xi1>, vector<128x32xf32>
    %80 = arith.truncf %79 : vector<128x32xf32> to vector<128x32xbf16>
    %81 = tpu.concatenate %67, %71, %76, %80 in 1 : vector<128x32xbf16>, vector<128x32xbf16>, vector<128x32xbf16>, vector<128x32xbf16> -> vector<128x128xbf16>
    %c0_23 = arith.constant 0 : index
    %c0_24 = arith.constant 0 : index
    %82 = vector.load %arg2[%c0_23, %c0_24] : memref<288x32xbf16, #tpu.memory_space<vmem>>, vector<128x32xbf16>
    %cst_25 = arith.constant dense<0.000000e+00> : vector<128x32xf32>
    %83 = tpu.matmul %81, %82, %cst_25 {dimension_numbers = #tpu.dot_dimension_numbers<[1], [0], [0], [1], [0, 0, 1, 1], [], []>} : vector<128x128xbf16>, vector<128x32xbf16>, vector<128x32xf32> -> vector<128x32xf32>
    %84 = arith.addf %62, %83 : vector<128x32xf32>
    %85 = arith.truncf %38 : vector<128x32xf32> to vector<128x32xbf16>
    %c127_i32 = arith.constant 127 : i32
    %86 = tpu.dynamic_rotate %38 by %c127_i32 dim 0 : vector<128x32xf32>, i32 -> vector<128x32xf32>
    %cst_26 = arith.constant 0.000000e+00 : f32
    %87 = vector.broadcast %cst_26 : f32 to vector<128x32xf32>
    %88 = arith.select %61, %86, %87 : vector<128x32xi1>, vector<128x32xf32>
    %89 = arith.truncf %88 : vector<128x32xf32> to vector<128x32xbf16>
    %c121_i32 = arith.constant 121 : i32
    %90 = tpu.dynamic_rotate %38 by %c121_i32 dim 0 : vector<128x32xf32>, i32 -> vector<128x32xf32>
    %91 = arith.andi %53, %57 : vector<128x32xi1>
    %cst_27 = arith.constant 0.000000e+00 : f32
    %92 = vector.broadcast %cst_27 : f32 to vector<128x32xf32>
    %93 = arith.select %91, %90, %92 : vector<128x32xi1>, vector<128x32xf32>
    %94 = arith.truncf %93 : vector<128x32xf32> to vector<128x32xbf16>
    %c120_i32 = arith.constant 120 : i32
    %95 = tpu.dynamic_rotate %38 by %c120_i32 dim 0 : vector<128x32xf32>, i32 -> vector<128x32xf32>
    %cst_28 = arith.constant 0.000000e+00 : f32
    %96 = vector.broadcast %cst_28 : f32 to vector<128x32xf32>
    %97 = arith.select %53, %95, %96 : vector<128x32xi1>, vector<128x32xf32>
    %98 = arith.truncf %97 : vector<128x32xf32> to vector<128x32xbf16>
    %99 = tpu.concatenate %85, %89, %94, %98 in 1 : vector<128x32xbf16>, vector<128x32xbf16>, vector<128x32xbf16>, vector<128x32xbf16> -> vector<128x128xbf16>
    %c128 = arith.constant 128 : index
    %c0_29 = arith.constant 0 : index
    %100 = vector.load %arg2[%c128, %c0_29] : memref<288x32xbf16, #tpu.memory_space<vmem>>, vector<128x32xbf16>
    %cst_30 = arith.constant dense<0.000000e+00> : vector<128x32xf32>
    %101 = tpu.matmul %99, %100, %cst_30 {dimension_numbers = #tpu.dot_dimension_numbers<[1], [0], [0], [1], [0, 0, 1, 1], [], []>} : vector<128x128xbf16>, vector<128x32xbf16>, vector<128x32xf32> -> vector<128x32xf32>
    %102 = arith.addf %84, %101 : vector<128x32xf32>
    %c119_i32 = arith.constant 119 : i32
    %103 = tpu.dynamic_rotate %38 by %c119_i32 dim 0 : vector<128x32xf32>, i32 -> vector<128x32xf32>
    %104 = arith.andi %53, %61 : vector<128x32xi1>
    %cst_31 = arith.constant 0.000000e+00 : f32
    %105 = vector.broadcast %cst_31 : f32 to vector<128x32xf32>
    %106 = arith.select %104, %103, %105 : vector<128x32xi1>, vector<128x32xf32>
    %107 = arith.truncf %106 : vector<128x32xf32> to vector<128x32xbf16>
    %c256 = arith.constant 256 : index
    %c0_32 = arith.constant 0 : index
    %108 = vector.load %arg2[%c256, %c0_32] : memref<288x32xbf16, #tpu.memory_space<vmem>>, vector<32x32xbf16>
    %cst_33 = arith.constant dense<0.000000e+00> : vector<128x32xf32>
    %109 = tpu.matmul %107, %108, %cst_33 {dimension_numbers = #tpu.dot_dimension_numbers<[1], [0], [0], [1], [0, 0, 1, 1], [], []>} : vector<128x32xbf16>, vector<32x32xbf16>, vector<128x32xf32> -> vector<128x32xf32>
    %110 = arith.addf %102, %109 : vector<128x32xf32>
    %cst_34 = arith.constant dense<0.000000e+00> : vector<32xf32>
    %111 = vector.multi_reduction <add>, %110, %cst_34 [0] : vector<128x32xf32> to vector<32xf32>
    %112 = vector.shape_cast %111 : vector<32xf32> to vector<1x32xf32>
    %113 = arith.mulf %110, %110 : vector<128x32xf32>
    %cst_35 = arith.constant dense<0.000000e+00> : vector<32xf32>
    %114 = vector.multi_reduction <add>, %113, %cst_35 [0] : vector<128x32xf32> to vector<32xf32>
    %115 = vector.shape_cast %114 : vector<32xf32> to vector<1x32xf32>
    %cst_36 = arith.constant 7.812500e-03 : f32
    %116 = vector.broadcast %cst_36 : f32 to vector<1x32xf32>
    %117 = arith.mulf %112, %116 : vector<1x32xf32>
    %cst_37 = arith.constant 7.812500e-03 : f32
    %118 = vector.broadcast %cst_37 : f32 to vector<1x32xf32>
    %119 = arith.mulf %115, %118 : vector<1x32xf32>
    %120 = arith.mulf %117, %117 : vector<1x32xf32>
    %121 = arith.subf %119, %120 : vector<1x32xf32>
    %cst_38 = arith.constant 0.000000e+00 : f32
    %122 = vector.broadcast %cst_38 : f32 to vector<1x32xf32>
    %123 = arith.maximumf %121, %122 : vector<1x32xf32>
    %124 = vector.broadcast %117 : vector<1x32xf32> to vector<128x32xf32>
    %125 = arith.subf %110, %124 : vector<128x32xf32>
    %cst_39 = arith.constant 9.99999974E-6 : f32
    %126 = vector.broadcast %cst_39 : f32 to vector<1x32xf32>
    %127 = arith.addf %123, %126 : vector<1x32xf32>
    %128 = math.rsqrt %127 : vector<1x32xf32>
    %129 = vector.broadcast %128 : vector<1x32xf32> to vector<128x32xf32>
    %130 = arith.mulf %125, %129 : vector<128x32xf32>
    %131 = vector.broadcast %3 : vector<1x32xf32> to vector<128x32xf32>
    %132 = arith.mulf %130, %131 : vector<128x32xf32>
    %133 = vector.broadcast %4 : vector<1x32xf32> to vector<128x32xf32>
    %134 = arith.addf %132, %133 : vector<128x32xf32>
    %cst_40 = arith.constant 0.000000e+00 : f32
    %135 = vector.broadcast %cst_40 : f32 to vector<128x32xf32>
    %136 = arith.maximumf %134, %135 : vector<128x32xf32>
    %137 = arith.truncf %136 : vector<128x32xf32> to vector<128x32xbf16>
    %c0_41 = arith.constant 0 : index
    %c0_42 = arith.constant 0 : index
    %138 = vector.load %arg3[%c0_41, %c0_42] : memref<32x128xbf16, #tpu.memory_space<vmem>>, vector<32x128xbf16>
    %cst_43 = arith.constant dense<0.000000e+00> : vector<128x128xf32>
    %139 = tpu.matmul %137, %138, %cst_43 {dimension_numbers = #tpu.dot_dimension_numbers<[1], [0], [0], [1], [0, 0, 1, 1], [], []>} : vector<128x32xbf16>, vector<32x128xbf16>, vector<128x128xf32> -> vector<128x128xf32>
    %cst_44 = arith.constant dense<0.000000e+00> : vector<128xf32>
    %140 = vector.multi_reduction <add>, %139, %cst_44 [0] : vector<128x128xf32> to vector<128xf32>
    %141 = vector.shape_cast %140 : vector<128xf32> to vector<1x128xf32>
    %142 = arith.mulf %139, %139 : vector<128x128xf32>
    %cst_45 = arith.constant dense<0.000000e+00> : vector<128xf32>
    %143 = vector.multi_reduction <add>, %142, %cst_45 [0] : vector<128x128xf32> to vector<128xf32>
    %144 = vector.shape_cast %143 : vector<128xf32> to vector<1x128xf32>
    %cst_46 = arith.constant 7.812500e-03 : f32
    %145 = vector.broadcast %cst_46 : f32 to vector<1x128xf32>
    %146 = arith.mulf %141, %145 : vector<1x128xf32>
    %cst_47 = arith.constant 7.812500e-03 : f32
    %147 = vector.broadcast %cst_47 : f32 to vector<1x128xf32>
    %148 = arith.mulf %144, %147 : vector<1x128xf32>
    %149 = arith.mulf %146, %146 : vector<1x128xf32>
    %150 = arith.subf %148, %149 : vector<1x128xf32>
    %cst_48 = arith.constant 0.000000e+00 : f32
    %151 = vector.broadcast %cst_48 : f32 to vector<1x128xf32>
    %152 = arith.maximumf %150, %151 : vector<1x128xf32>
    %153 = vector.broadcast %146 : vector<1x128xf32> to vector<128x128xf32>
    %154 = arith.subf %139, %153 : vector<128x128xf32>
    %cst_49 = arith.constant 9.99999974E-6 : f32
    %155 = vector.broadcast %cst_49 : f32 to vector<1x128xf32>
    %156 = arith.addf %152, %155 : vector<1x128xf32>
    %157 = math.rsqrt %156 : vector<1x128xf32>
    %158 = vector.broadcast %157 : vector<1x128xf32> to vector<128x128xf32>
    %159 = arith.mulf %154, %158 : vector<128x128xf32>
    %160 = vector.broadcast %5 : vector<1x128xf32> to vector<128x128xf32>
    %161 = arith.mulf %159, %160 : vector<128x128xf32>
    %162 = vector.broadcast %6 : vector<1x128xf32> to vector<128x128xf32>
    %163 = arith.addf %161, %162 : vector<128x128xf32>
    %c0_50 = arith.constant 0 : index
    %c0_51 = arith.constant 0 : index
    %164 = vector.load %arg0[%c0_50, %c0_51] : memref<128x128xf32, #tpu.memory_space<vmem>>, vector<128x128xf32>
    %cst_52 = arith.constant 1.000000e+00 : f32
    %165 = vector.broadcast %cst_52 : f32 to vector<128x128xf32>
    %166 = arith.mulf %165, %164 : vector<128x128xf32>
    %167 = arith.addf %163, %166 : vector<128x128xf32>
    %cst_53 = arith.constant dense<0.000000e+00> : vector<128xf32>
    %168 = vector.multi_reduction <add>, %167, %cst_53 [0] : vector<128x128xf32> to vector<128xf32>
    %169 = vector.shape_cast %168 : vector<128xf32> to vector<1x128xf32>
    %170 = arith.mulf %167, %167 : vector<128x128xf32>
    %cst_54 = arith.constant dense<0.000000e+00> : vector<128xf32>
    %171 = vector.multi_reduction <add>, %170, %cst_54 [0] : vector<128x128xf32> to vector<128xf32>
    %172 = vector.shape_cast %171 : vector<128xf32> to vector<1x128xf32>
    %cst_55 = arith.constant 7.812500e-03 : f32
    %173 = vector.broadcast %cst_55 : f32 to vector<1x128xf32>
    %174 = arith.mulf %169, %173 : vector<1x128xf32>
    %cst_56 = arith.constant 7.812500e-03 : f32
    %175 = vector.broadcast %cst_56 : f32 to vector<1x128xf32>
    %176 = arith.mulf %172, %175 : vector<1x128xf32>
    %177 = arith.mulf %174, %174 : vector<1x128xf32>
    %178 = arith.subf %176, %177 : vector<1x128xf32>
    %cst_57 = arith.constant 0.000000e+00 : f32
    %179 = vector.broadcast %cst_57 : f32 to vector<1x128xf32>
    %180 = arith.maximumf %178, %179 : vector<1x128xf32>
    %181 = vector.broadcast %174 : vector<1x128xf32> to vector<128x128xf32>
    %182 = arith.subf %167, %181 : vector<128x128xf32>
    %cst_58 = arith.constant 9.99999974E-6 : f32
    %183 = vector.broadcast %cst_58 : f32 to vector<1x128xf32>
    %184 = arith.addf %180, %183 : vector<1x128xf32>
    %185 = math.rsqrt %184 : vector<1x128xf32>
    %186 = vector.broadcast %185 : vector<1x128xf32> to vector<128x128xf32>
    %187 = arith.mulf %182, %186 : vector<128x128xf32>
    %188 = vector.broadcast %7 : vector<1x128xf32> to vector<128x128xf32>
    %189 = arith.mulf %187, %188 : vector<128x128xf32>
    %190 = vector.broadcast %8 : vector<1x128xf32> to vector<128x128xf32>
    %191 = arith.addf %189, %190 : vector<128x128xf32>
    %cst_59 = arith.constant 0.000000e+00 : f32
    %192 = vector.broadcast %cst_59 : f32 to vector<128x128xf32>
    %193 = arith.maximumf %191, %192 : vector<128x128xf32>
    %c0_60 = arith.constant 0 : index
    %c0_61 = arith.constant 0 : index
    %194 = vector.load %arg5[%c0_60, %c0_61] : memref<128x128xf32, #tpu.memory_space<vmem>>, vector<128x128xf32>
    tpu.vector_store %arg5[%c0_60, %c0_61], %193 {strides = array<i32>} : memref<128x128xf32, #tpu.memory_space<vmem>>, vector<128x128xf32>,
    return
  }
}

</mosaic_0001>

<bundles_post_ra>
// kernel: tpu_custom_call.1
= control target key start
LH: loop header
LB: loop body
LE: loop exit
PB: predicated region body
PF: predicated region fallthrough
CT: control target
= control target key end

     0   :  { %s5520_s0 = inlined_call_operand.vmem [shape: f32[128,128], index: 0, kind: input, shape index: {}]   ;;  %s5521_s1 = inlined_call_operand.vmem [shape: bf16[128,32], index: 1, kind: input, shape index: {}]   ;;  %s5522_s2 = inlined_call_operand.vmem [shape: bf16[288,32], index: 2, kind: input, shape index: {}]   ;;  %s5523_s3 = inlined_call_operand.vmem [shape: bf16[32,128], index: 3, kind: input, shape index: {}]   ;;  %s5524_s4 = inlined_call_operand.vmem [shape: f32[8,128], index: 4, kind: input, shape index: {}]   ;;  %s5525_s5 = inlined_call_operand.hbm [shape: f32[128,128], index: 5, kind: output, shape index: {}]  }
   0x1   :  { %v2700_v0 = vld [vmem:[%s5521_s1] sm:$0xff]   ;;  %v2701_v1 = vld [vmem:[%s5521_s1 + $0x8] sm:$0xff]   ;;  %v2702_v2 = vld [vmem:[%s5521_s1 + $0x10] sm:$0xff]  }
   0x2   :  { %2510 = vmatprep.subr.bf16.mxu0 %v2700_v0  ;;  %v2703_v3 = vld [vmem:[%s5521_s1 + $0x18] sm:$0xff]   ;;  %v23_v4 = vld [vmem:[%s5520_s0] sm:$0xff]  ;;  %v24_v5 = vld [vmem:[%s5520_s0 + $0x8] sm:$0xff] }
   0x3   :  { %2511 = vmatpush3.bf16.msra.mxu0 %v2700_v0  ;;  %v39_v6 = vpack.c.bf16 %v24_v5, %v23_v4  ;;  %v2704_v7 = vld [vmem:[%s5521_s1 + $0x20] sm:$0xff]   ;;  %v2705_v8 = vld [vmem:[%s5521_s1 + $0x28] sm:$0xff]   ;;  %v2706_v9 = vld [vmem:[%s5521_s1 + $0x30] sm:$0xff]  }
   0x4   :  { %2512 = vmatprep.subr.bf16.mxu0 %v2701_v1  ;;  %v2707_v10 = vld [vmem:[%s5521_s1 + $0x38] sm:$0xff]  }
   0x5   :  { %2526 = vmatprep.mubr.bf16.mxu0 %v39_v6 }
   0x7   :  { %2513 = vmatpush3.bf16.msra.mxu0 %v2701_v1 }
   0x8   :  { %2514 = vmatprep.subr.bf16.mxu0 %v2702_v2 }
   0xb   :  { %2515 = vmatpush3.bf16.msra.mxu0 %v2702_v2 }
   0xc   :  { %2516 = vmatprep.subr.bf16.mxu0 %v2703_v3 }
   0xf   :  { %2517 = vmatpush3.bf16.msra.mxu0 %v2703_v3 }
  0x10   :  { %2518 = vmatprep.subr.bf16.mxu0 %v2704_v7 }
  0x13   :  { %2519 = vmatpush3.bf16.msra.mxu0 %v2704_v7 }
  0x14   :  { %2520 = vmatprep.subr.bf16.mxu0 %v2705_v8 }
  0x17   :  { %2521 = vmatpush3.bf16.msra.mxu0 %v2705_v8 }
  0x18   :  { %2522 = vmatprep.subr.bf16.mxu0 %v2706_v9 }
  0x19   :  { %10 = vsyncpa [#allocation3], 0  ;;  %v25_v11 = vld [vmem:[%s5520_s0 + $0x10] sm:$0xff]  ;;  %v26_v12 = vld [vmem:[%s5520_s0 + $0x18] sm:$0xff]  ;;  %vm5526_vm0 = vcmask 261120   ;;  %s2777_s1 = smov 96  }
  0x1a   :  { %v27_v13 = vld [vmem:[%s5520_s0 + $0x20] sm:$0xff]  ;;  %v28_v14 = vld [vmem:[%s5520_s0 + $0x28] sm:$0xff]  ;;  %v40_v15 = vpack.c.bf16 %v26_v12, %v25_v11  ;;  %v29_v17 = vld [vmem:[%s5520_s0 + $0x30] sm:$0xff]  ;;  %s2778_s29 = smov 32   ;;  %s2779_s11 = smov 64  }
  0x1b   :  { %2523 = vmatpush3.bf16.msra.mxu0 %v2706_v9  ;;  %v41_v16 = vpack.c.bf16 %v28_v14, %v27_v13  ;;  %v30_v18 = vld [vmem:[%s5520_s0 + $0x38] sm:$0xff]  ;;  %v31_v19 = vld [vmem:[%s5520_s0 + $0x40] sm:$0xff]  ;;  %v32_v20 = vld [vmem:[%s5520_s0 + $0x48] sm:$0xff] }
  0x1c   :  { %2524 = vmatprep.subr.bf16.mxu0 %v2707_v10  ;;  %v42_v21 = vpack.c.bf16 %v30_v18, %v29_v17  ;;  %v43_v22 = vpack.c.bf16 %v32_v20, %v31_v19  ;;  %v33_v23 = vld [vmem:[%s5520_s0 + $0x50] sm:$0xff]  ;;  %v34_v24 = vld [vmem:[%s5520_s0 + $0x58] sm:$0xff]  ;;  %v35_v25 = vld [vmem:[%s5520_s0 + $0x60] sm:$0xff] }
  0x1d   :  { %v36_v26 = vld [vmem:[%s5520_s0 + $0x68] sm:$0xff]  ;;  %v44_v27 = vpack.c.bf16 %v34_v24, %v33_v23  ;;  %v37_v29 = vld [vmem:[%s5520_s0 + $0x70] sm:$0xff]  ;;  %v38_v30 = vld [vmem:[%s5520_s0 + $0x78] sm:$0xff] }
  0x1e   :  { %v45_v28 = vpack.c.bf16 %v36_v26, %v35_v25  ;;  %v46_v31 = vpack.c.bf16 %v38_v30, %v37_v29 }
  0x1f   :  { %2525 = vmatpush3.bf16.msra.mxu0 %v2707_v10 }
  0x22   :  { %2527 = vmatmul.mubr.bf16.vlgmr.msra.gmra.mrb[0].mxu0 %v40_v15 }
  0x23   :  { %2530 = vmatprep.mubr.bf16.mxu0 %v41_v16 }
  0x2a   :  { %2531 = vmatmul.mubr.bf16.gmra.mrb[4].mxu0 %v42_v21 }
  0x2b   :  { %2534 = vmatprep.mubr.bf16.mxu0 %v43_v22 }
  0x32   :  { %2535 = vmatmul.mubr.bf16.gmra.mrb[8].mxu0 %v44_v27 }
  0x33   :  { %2538 = vmatprep.mubr.bf16.mxu0 %v45_v28 }
  0x3a   :  { %2539 = vmatmul.mubr.bf16.gmra.mrb[12].mxu0 %v46_v31 }
  0xf5   :  { %v2885_v32 = vpop.f32.mrb[0].mxu0 }
  0xf6   :  { %v2887_v33 = vpop.f32.mrb[1].mxu0  ;;  %v248_v37 = vmul.f32 %v2885_v32, %v2885_v32  ;;  %v212_v42 = vsel %vm5526_vm0, %v2885_v32, 0.0 }
  0xf7   :  { %v246_v34 = vmul.f32 %v2887_v33, %v2887_v33  ;;  %v2891_v35 = vpop.f32.mrb[2].mxu0  ;;  %v209_v38 = vsel %vm5526_vm0, %v2887_v33, 0.0 }
  0xf8   :  { %v2893_v36 = vpop.f32.mrb[3].mxu0  ;;  %v249_v44 = vmul.f32 %v2891_v35, %v2891_v35  ;;  %v265_v48 = vsel %vm5526_vm0, %v248_v37, 0.0  ;;  %v214_v49 = vsel %vm5526_vm0, %v2891_v35, 0.0 }
  0xf9   :  { %v210_v39 = vsel %vm5526_vm0, %v2893_v36, 0.0  ;;  %v247_v40 = vmul.f32 %v2893_v36, %v2893_v36  ;;  %v262_v43 = vsel %vm5526_vm0, %v246_v34, 0.0 }
  0xfa   :  { %v211_v41 = vadd.f32 %v210_v39, %v209_v38  ;;  %v267_v54 = vsel %vm5526_vm0, %v249_v44, 0.0 }
  0xfb   :  { %v263_v45 = vsel %vm5526_vm0, %v247_v40, 0.0 }
  0xfc   :  { %v213_v46 = vadd.f32 %v212_v42, %v211_v41  ;;  %v264_v47 = vadd.f32 %v263_v45, %v262_v43 }
  0xfd   :  { %v2912_v50 = vpop.f32.mrb[4].mxu0 }
  0xfe   :  { %v266_v51 = vadd.f32 %v265_v48, %v264_v47  ;;  %v2914_v52 = vpop.f32.mrb[5].mxu0  ;;  %v215_v53 = vadd.f32 %v214_v49, %v213_v46  ;;  %v252_v61 = vmul.f32 %v2912_v50, %v2912_v50  ;;  %v220_v3 = vsel %vm5526_vm0, %v2912_v50, 0.0 }
  0xff   :  { %v216_v55 = vsel %vm5526_vm0, %v2914_v52, 0.0  ;;  %v250_v56 = vmul.f32 %v2914_v52, %v2914_v52  ;;  %v2921_v57 = vpop.f32.mrb[6].mxu0 }
 0x100   :  { %v217_v58 = vadd.f32 %v216_v55, %v215_v53  ;;  %v268_v59 = vadd.f32 %v267_v54, %v266_v51  ;;  %v2923_v60 = vpop.f32.mrb[7].mxu0  ;;  %v253_v4 = vmul.f32 %v2921_v57, %v2921_v57  ;;  %v273_v8 = vsel %vm5526_vm0, %v252_v61, 0.0 }
 0x101   :  { %v269_v62 = vsel %vm5526_vm0, %v250_v56, 0.0  ;;  %v218_v63 = vsel %vm5526_vm0, %v2923_v60, 0.0  ;;  %v251_v0 = vmul.f32 %v2923_v60, %v2923_v60  ;;  %v222_v9 = vsel %vm5526_vm0, %v2921_v57, 0.0 }
 0x102   :  { %v270_v1 = vadd.f32 %v269_v62, %v268_v59  ;;  %v219_v2 = vadd.f32 %v218_v63, %v217_v58  ;;  %v275_v14 = vsel %vm5526_vm0, %v253_v4, 0.0 }
 0x103   :  { %v271_v5 = vsel %vm5526_vm0, %v251_v0, 0.0 }
 0x104   :  { %v221_v6 = vadd.f32 %v220_v3, %v219_v2  ;;  %v272_v7 = vadd.f32 %v271_v5, %v270_v1  ;;  %v338_v5 = vlaneseq }
 0x105   :  { %v2940_v10 = vpop.f32.mrb[8].mxu0 }
 0x106   :  { %v274_v11 = vadd.f32 %v273_v8, %v272_v7  ;;  %v2942_v12 = vpop.f32.mrb[9].mxu0  ;;  %v223_v13 = vadd.f32 %v222_v9, %v221_v6  ;;  %v256_v21 = vmul.f32 %v2940_v10, %v2940_v10  ;;  %v228_v27 = vsel %vm5526_vm0, %v2940_v10, 0.0 }
 0x107   :  { %v224_v15 = vsel %vm5526_vm0, %v2942_v12, 0.0  ;;  %v254_v16 = vmul.f32 %v2942_v12, %v2942_v12  ;;  %v2949_v17 = vpop.f32.mrb[10].mxu0 }
 0x108   :  { %v225_v18 = vadd.f32 %v224_v15, %v223_v13  ;;  %v276_v19 = vadd.f32 %v275_v14, %v274_v11  ;;  %v2951_v20 = vpop.f32.mrb[11].mxu0  ;;  %v257_v28 = vmul.f32 %v2949_v17, %v2949_v17  ;;  %v281_v34 = vsel %vm5526_vm0, %v256_v21, 0.0 }
 0x109   :  { %v277_v22 = vsel %vm5526_vm0, %v254_v16, 0.0  ;;  %v226_v23 = vsel %vm5526_vm0, %v2951_v20, 0.0  ;;  %v255_v24 = vmul.f32 %v2951_v20, %v2951_v20  ;;  %v230_v37 = vsel %vm5526_vm0, %v2949_v17, 0.0 }
 0x10a   :  { %v278_v25 = vadd.f32 %v277_v22, %v276_v19  ;;  %v227_v26 = vadd.f32 %v226_v23, %v225_v18  ;;  %v283_v42 = vsel %vm5526_vm0, %v257_v28, 0.0  ;;  %v2997_v11 = vshrl.u32 %v338_v5, 7  ;;  %v22_v19 = vld [vmem:[%s5524_s4] sm:$0xff] }
 0x10b   :  { %v279_v29 = vsel %vm5526_vm0, %v255_v24, 0.0 }
 0x10c   :  { %v229_v30 = vadd.f32 %v228_v27, %v227_v26  ;;  %v280_v31 = vadd.f32 %v279_v29, %v278_v25  ;;  %5755 = vst [vmem:[#allocation5_spill] sm:$0xff] %v2997_v11  ;;  %v340_v18 = vsub.s32 0, %v2997_v11  ;;  %v360_v23 = vsub.s32 1, %v2997_v11 }
 0x10d   :  { %v2968_v38 = vpop.f32.mrb[12].mxu0  ;;  %v3005_v24 = vadd.s32 16, %v2997_v11  ;;  %v3008_v25 = vadd.s32 24, %v2997_v11  ;;  %v3013_v29 = vadd.s32 8, %v2997_v11 }
 0x10e   :  { %v282_v39 = vadd.f32 %v281_v34, %v280_v31  ;;  %v2970_v40 = vpop.f32.mrb[13].mxu0  ;;  %v231_v41 = vadd.f32 %v230_v37, %v229_v30  ;;  %v260_v49 = vmul.f32 %v2968_v38, %v2968_v38  ;;  %v236_v58 = vsel %vm5526_vm0, %v2968_v38, 0.0 }
 0x10f   :  { %v232_v43 = vsel %vm5526_vm0, %v2970_v40, 0.0  ;;  %v258_v44 = vmul.f32 %v2970_v40, %v2970_v40  ;;  %v2977_v45 = vpop.f32.mrb[14].mxu0  ;;  %v3010_v28 = vrot.slane %v22_v19, %v340_v18  ;;  %v3017_v34 = vrot.slane %v22_v19, %v360_v23 }
 0x110   :  { %v233_v46 = vadd.f32 %v232_v43, %v231_v41  ;;  %v284_v47 = vadd.f32 %v283_v42, %v282_v39  ;;  %v2979_v48 = vpop.f32.mrb[15].mxu0  ;;  %v261_v59 = vmul.f32 %v2977_v45, %v2977_v45  ;;  %v289_v0 = vsel %vm5526_vm0, %v260_v49, 0.0 }
 0x111   :  { %v285_v51 = vsel %vm5526_vm0, %v258_v44, 0.0  ;;  %v234_v53 = vsel %vm5526_vm0, %v2979_v48, 0.0  ;;  %v259_v54 = vmul.f32 %v2979_v48, %v2979_v48  ;;  %v238_v1 = vsel %vm5526_vm0, %v2977_v45, 0.0 }
 0x112   :  { %v286_v55 = vadd.f32 %v285_v51, %v284_v47  ;;  %v235_v56 = vadd.f32 %v234_v53, %v233_v46  ;;  %v291_v4 = vsel %vm5526_vm0, %v261_v59, 0.0  ;;  %v3020_v37 = vadd.s32 48, %v2997_v11 }
 0x113   :  { %v287_v61 = vsel %vm5526_vm0, %v259_v54, 0.0  ;;  %v429_v39 = vshra.s32 %v3005_v24, 3  ;;  %v430_v41 = vshra.s32 %v3008_v25, 3  ;;  %v427_v42 = vshra.s32 %v2997_v11, 3 }
 0x114   :  { %v237_v62 = vadd.f32 %v236_v58, %v235_v56  ;;  %v288_v63 = vadd.f32 %v287_v61, %v286_v55  ;;  %v3026_v43 = vadd.s32 56, %v2997_v11  ;;  %v3080_v18 = vadd.s32 72, %v2997_v11 }
 0x115   :  { %v3083_v19 = vadd.s32 96, %v2997_v11 }
 0x116   :  { %v239_v2 = vadd.f32 %v238_v1, %v237_v62  ;;  %v290_v3 = vadd.f32 %v289_v0, %v288_v63 }
 0x118   :  { %v240_v6 = vrot.slane %v239_v2, 4  ;;  %v292_v7 = vadd.f32 %v291_v4, %v290_v3  ;;  %v436_v4 = vshra.s32 %v3080_v18, 3  ;;  %v439_v3 = vshra.s32 %v3083_v19, 3 }
 0x11a   :  { %v241_v8 = vadd.f32 %v240_v6, %v239_v2  ;;  %v293_v9 = vrot.slane %v292_v7, 4  ;;  %v428_v6 = vshra.s32 %v3013_v29, 3  ;;  %v3133_v53 = vand.u32 7, %v439_v3 }
 0x11c   :  { %v242_v13 = vrot.slane %v241_v8, 2  ;;  %v294_v14 = vadd.f32 %v293_v9, %v292_v7  ;;  %v433_v7 = vshra.s32 %v3020_v37, 3  ;;  %v3068_v9 = vadd.s32 40, %v2997_v11  ;;  %5767 = vst [vmem:[#allocation17_spill] sm:$0xff] %v3133_v53 }
 0x11d   :  { %v3112_v1 = vand.u32 7, %v428_v6  ;;  %vm5537_vm9 = vcmp.lt.s32.totalorder %v3133_v53, 7 }
 0x11e   :  { %v243_v15 = vadd.f32 %v242_v13, %v241_v8  ;;  %v295_v16 = vrot.slane %v294_v14, 2  ;;  %v3065_v8 = vadd.s32 32, %v2997_v11  ;;  %v3114_v0 = vand.u32 7, %v433_v7 }
 0x11f   :  { %5760 = vst [vmem:[#allocation10_spill] sm:$0xff] %v3112_v1  ;;  %v3131_v7 = vand.u32 7, %v436_v4  ;;  %vm5533_vm4 = vcmp.lt.s32.totalorder %v3112_v1, 7 }
 0x120   :  { %v244_v21 = vrot.slane %v243_v15, 1  ;;  %v296_v22 = vadd.f32 %v295_v16, %v294_v14  ;;  %v3071_v14 = vadd.s32 80, %v2997_v11  ;;  %v3077_v16 = vadd.s32 64, %v2997_v11 }
 0x121   :  { %5766 = vst [vmem:[#allocation16_spill] sm:$0xff] %v3131_v7  ;;  %vm5530_vm5 = vcmp.lt.s32.totalorder %v3114_v0, 7  ;;  %vm5541_vm14 = vcmp.lt.s32.totalorder %v3131_v7, 7  ;;  %vm5547_vm0 = vcmp.ge.s32.totalorder %v3131_v7, 1  ;;  %v5889_v7 = vand.u32 7, %v3080_v18 }
 0x122   :  { %v245_v26 = vadd.f32 %v244_v21, %v243_v15  ;;  %v297_v27 = vrot.slane %v296_v22, 1  ;;  %v3074_v15 = vadd.s32 88, %v2997_v11  ;;  %v3086_v21 = vadd.s32 104, %v2997_v11 }
 0x123   :  { %v437_v5 = vshra.s32 %v3071_v14, 3  ;;  %v435_v23 = vshra.s32 %v3077_v16, 3 }
 0x124   :  { %v298_v30 = vadd.f32 %v297_v27, %v296_v22  ;;  %v3015_v31 = vmul.f32 0.0078125, %v245_v26  ;;  %v3089_v22 = vadd.s32 112, %v2997_v11  ;;  %v434_v26 = vshra.s32 %v3026_v43, 3 }
 0x125   :  { %v3094_v27 = vadd.s32 120, %v2997_v11  ;;  %v3125_v54 = vand.u32 7, %v437_v5  ;;  %v3129_v6 = vand.u32 7, %v435_v23 }
 0x126   :  { %v300_v44 = vmul.f32 0.0078125, %v298_v30  ;;  %v301_v46 = vmul.f32 %v3015_v31, %v3015_v31  ;;  %v317_v47 = vsub.f32 %v2979_v48, %v3015_v31  ;;  %v307_v49 = vsub.f32 %v2891_v35, %v3015_v31 }
 0x127   :  { %5756 = vst [vmem:[#allocation6_spill] sm:$0xff] %v3094_v27  ;;  %v440_v30 = vshra.s32 %v3086_v21, 3  ;;  %v442_v63 = vshra.s32 %v3094_v27, 3  ;;  %v3119_v59 = vand.u32 7, %v434_v26  ;;  %5763 = vst [vmem:[#allocation13_spill] sm:$0xff] %v3125_v54  ;;  %v5772_v4 = vsub.f32 %v2893_v36, %v3015_v31 }
 0x128   :  { %v302_v56 = vsub.f32 %v300_v44, %v301_v46  ;;  %v3097_v44 = vand.u32 7, %v429_v39  ;;  %v3099_v46 = vand.u32 7, %v430_v41  ;;  %v441_v39 = vshra.s32 %v3089_v22, 3  ;;  %5765 = vst [vmem:[#allocation15_spill] sm:$0xff] %v3129_v6 }
 0x129   :  { %v3110_v41 = vand.u32 7, %v427_v42  ;;  %v3135_v51 = vand.u32 7, %v440_v30  ;;  %v3142_v5 = vand.u32 7, %v442_v63  ;;  %vm5529_vm6 = vcmp.lt.s32.totalorder %v3119_v59, 7 }
 0x12a   :  { %v303_v2 = vmax.f32 %v302_v56, 0.0  ;;  %5757 = vst [vmem:[#allocation7_spill] sm:$0xff] %v3097_v44  ;;  %5758 = vst [vmem:[#allocation8_spill] sm:$0xff] %v3099_v46  ;;  %v431_v56 = vshra.s32 %v3065_v8, 3  ;;  %v3137_v62 = vand.u32 7, %v441_v39  ;;  %vm5532_vm1 = vcmp.lt.s32.totalorder %v3097_v44, 7 }
 0x12b   :  { %5759 = vst [vmem:[#allocation9_spill] sm:$0xff] %v3110_v41  ;;  %5768 = vst [vmem:[#allocation18_spill] sm:$0xff] %v3135_v51  ;;  %vm5531_vm2 = vcmp.lt.s32.totalorder %v3099_v46, 7  ;;  %vm5534_vm3 = vcmp.lt.s32.totalorder %v3110_v41, 7  ;;  %v5773_v48 = vsub.f32 %v2885_v32, %v3015_v31  ;;  %v5774_v35 = vsub.f32 %v2921_v57, %v3015_v31 }
 0x12c   :  { %v320_v13 = vadd.f32 1e-05, %v303_v2  ;;  %v432_v2 = vshra.s32 %v3068_v9, 3  ;;  %v3121_v58 = vand.u32 7, %v431_v56  ;;  %5769 = vst [vmem:[#allocation19_spill] sm:$0xff] %v3137_v62  ;;  %5770 = vst [vmem:[#allocation20_spill] sm:$0xff] %v3142_v5  ;;  %v5771_v56 = vsub.f32 %v2914_v52, %v3015_v31 }
 0x12d   :  { %v5775_v52 = vsub.f32 %v2942_v12, %v3015_v31  ;;  %v5776_v36 = vsub.f32 %v2923_v60, %v3015_v31  ;;  %v5777_v60 = vsub.f32 %v2912_v50, %v3015_v31  ;;  %vm5539_vm10 = vcmp.lt.s32.totalorder %v3125_v54, 7 }
 0x12e   :  { %2728 = vrsqrt.f32 %v320_v13  ;;  %v438_v13 = vshra.s32 %v3074_v15, 3  ;;  %5761 = vst [vmem:[#allocation11_spill] sm:$0xff] %v3121_v58  ;;  %v3123_v55 = vand.u32 7, %v432_v2  ;;  %vm5535_vm7 = vcmp.lt.s32.totalorder %v3121_v58, 7 }
 0x12f   :  { %vm5548_vm12 = vcmp.lt.s32.totalorder %v3129_v6, 7  ;;  %vm5540_vm13 = vcmp.ge.s32.totalorder %v3129_v6, 1  ;;  %vm5544_vm15 = vcmp.lt.s32.totalorder %v3135_v51, 7  ;;  %v5787_v27 = vsub.f32 %v2970_v40, %v3015_v31 }
 0x130   :  { %5762 = vst [vmem:[#allocation12_spill] sm:$0xff] %v3123_v55  ;;  %v3127_v42 = vand.u32 7, %v438_v13  ;;  %vm5536_vm8 = vcmp.lt.s32.totalorder %v3123_v55, 7  ;;  %v5822_v6 = vmov 0 }
 0x132   :  { %5764 = vst [vmem:[#allocation14_spill] sm:$0xff] %v3127_v42  ;;  %vm5538_vm11 = vcmp.lt.s32.totalorder %v3127_v42, 7 }
 0x138   :  { %v3154_v2 = vpop.eup %2728 }
 0x139   :  { %v335_v3 = vmul.f32 %v3154_v2, %v317_v47  ;;  %v325_v63 = vmul.f32 %v3154_v2, %v307_v49  ;;  %v326_v13 = vmul.f32 %v3154_v2, %v5771_v56  ;;  %v323_v23 = vmul.f32 %v3154_v2, %v5772_v4 }
 0x13a   :  { %v324_v47 = vmul.f32 %v3154_v2, %v5773_v48  ;;  %v329_v49 = vmul.f32 %v3154_v2, %v5774_v35  ;;  %v330_v56 = vmul.f32 %v3154_v2, %v5775_v52  ;;  %v327_v4 = vmul.f32 %v3154_v2, %v5776_v36 }
 0x13b   :  { %v355_v32 = vmul.f32 %v3010_v28, %v335_v3  ;;  %v345_v48 = vmul.f32 %v3010_v28, %v325_v63  ;;  %v346_v57 = vmul.f32 %v3010_v28, %v326_v13  ;;  %v343_v35 = vmul.f32 %v3010_v28, %v323_v23  ;;  %v2708_v3 = vld [vmem:[%s5522_s2 + $0x40] sm:$0xff]  }
 0x13c   :  { %v344_v39 = vmul.f32 %v3010_v28, %v324_v47  ;;  %v349_v12 = vmul.f32 %v3010_v28, %v329_v49  ;;  %v350_v52 = vmul.f32 %v3010_v28, %v330_v56  ;;  %v328_v36 = vmul.f32 %v3154_v2, %v5777_v60  ;;  %2542 = vmatprep.subr.bf16.mxu1 %v2708_v3 }
 0x13d   :  { %v365_v63 = vadd.f32 %v3017_v34, %v345_v48  ;;  %v366_v23 = vadd.f32 %v3017_v34, %v346_v57  ;;  %v363_v13 = vadd.f32 %v3017_v34, %v343_v35  ;;  %v347_v60 = vmul.f32 %v3010_v28, %v327_v4  ;;  %2543 = vmatpush3.bf16.msra.mxu1 %v2708_v3 }
 0x13e   :  { %v364_v49 = vadd.f32 %v3017_v34, %v344_v39  ;;  %v369_v50 = vadd.f32 %v3017_v34, %v349_v12  ;;  %v370_v56 = vadd.f32 %v3017_v34, %v350_v52  ;;  %v375_v30 = vadd.f32 %v3017_v34, %v355_v32 }
 0x13f   :  { %v3217_v26 = vmax.f32 %v365_v63, 0.0  ;;  %v3219_v48 = vmax.f32 %v366_v23, 0.0  ;;  %v3221_v57 = vmax.f32 %v363_v13, 0.0  ;;  %v348_v4 = vmul.f32 %v3010_v28, %v328_v36 }
 0x140   :  { %v3224_v35 = vmax.f32 %v364_v49, 0.0  ;;  %v3226_v39 = vmax.f32 %v369_v50, 0.0  ;;  %v3228_v12 = vmax.f32 %v370_v56, 0.0  ;;  %v367_v63 = vadd.f32 %v3017_v34, %v347_v60  ;;  %v2709_v50 = vld [vmem:[%s5522_s2 + $0x48] sm:$0xff]  }
 0x141   :  { %5778 = vst [vmem:[#allocation21_spill] sm:$0xff] %v3217_v26  ;;  %5779 = vst [vmem:[#allocation22_spill] sm:$0xff] %v3219_v48  ;;  %v1073_v32 = vsel %vm5532_vm1, %v3217_v26, 0.0  ;;  %v1074_v52 = vsel %vm5531_vm2, %v3219_v48, 0.0  ;;  %v1071_v3 = vsel %vm5534_vm3, %v3221_v57, 0.0  ;;  %v3259_v56 = vmax.f32 %v375_v30, 0.0  ;;  %2544 = vmatprep.subr.bf16.mxu1 %v2709_v50 }
 0x142   :  { %5780 = vst [vmem:[#allocation23_spill] sm:$0xff] %v3221_v57  ;;  %5781 = vst [vmem:[#allocation24_spill] sm:$0xff] %v3224_v35  ;;  %v1088_v36 = vpack.c.bf16 %v1074_v52, %v1073_v32  ;;  %v1072_v23 = vsel %vm5533_vm4, %v3224_v35, 0.0  ;;  %v1077_v13 = vsel %vm5530_vm5, %v3226_v39, 0.0  ;;  %v1078_v49 = vsel %vm5529_vm6, %v3228_v12, 0.0  ;;  %2545 = vmatpush3.bf16.msra.mxu1 %v2709_v50 }
 0x143   :  { %5782 = vst [vmem:[#allocation25_spill] sm:$0xff] %v3226_v39  ;;  %5783 = vst [vmem:[#allocation26_spill] sm:$0xff] %v3228_v12  ;;  %v1087_v60 = vpack.c.bf16 %v1072_v23, %v1071_v3  ;;  %v368_v32 = vadd.f32 %v3017_v34, %v348_v4  ;;  %v3262_v52 = vmax.f32 %v367_v63, 0.0  ;;  %v5786_v47 = vsub.f32 %v2949_v17, %v3015_v31 }
 0x144   :  { %5784 = vst [vmem:[#allocation27_spill] sm:$0xff] %v3259_v56  ;;  %1153 = vrot.lane.b32.xlu1 %v1088_v36, %s2777_s1  ;;  %v334_v30 = vmul.f32 %v3154_v2, %v5787_v27  ;;  %v5788_v4 = vsub.f32 %v2951_v20, %v3015_v31  ;;  %v5789_v63 = vsub.f32 %v2940_v10, %v3015_v31  ;;  %vm5552_vm6 = vcmp.lt.s32.totalorder %v3142_v5, 7 }
 0x145   :  { %5785 = vst [vmem:[#allocation28_spill] sm:$0xff] %v3262_v52  ;;  %v333_v61 = vmul.f32 %v3154_v2, %v5786_v47  ;;  %vm5551_vm5 = vcmp.ge.s32.totalorder %v3125_v54, 1  ;;  %1151 = vrot.lane.b32.xlu0 %v1087_v60, %s2777_s1  ;;  %v1090_v17 = vpack.c.bf16 %v1078_v49, %v1077_v13  ;;  %v3287_v40 = vmax.f32 %v368_v32, 0.0 }
 0x146   :  { %v331_v3 = vmul.f32 %v3154_v2, %v5788_v4  ;;  %v332_v36 = vmul.f32 %v3154_v2, %v5789_v63  ;;  %v1075_v20 = vsel %vm5535_vm7, %v3262_v52, 0.0  ;;  %v5791_v10 = vsub.f32 %v2968_v38, %v3015_v31  ;;  %v2710_v38 = vld [vmem:[%s5522_s2 + $0x50] sm:$0xff]  }
 0x147   :  { %5790 = vst [vmem:[#allocation29_spill] sm:$0xff] %v3287_v40  ;;  %vm5569_vm4 = vcmp.lt.s32.totalorder %v3137_v62, 7  ;;  %v353_v47 = vmul.f32 %v3010_v28, %v333_v61  ;;  %v354_v23 = vmul.f32 %v3010_v28, %v334_v30  ;;  %v1076_v60 = vsel %vm5536_vm8, %v3287_v40, 0.0  ;;  %2546 = vmatprep.subr.bf16.mxu1 %v2710_v38 }
 0x148   :  { %v336_v27 = vmul.f32 %v3154_v2, %v5791_v10  ;;  %v351_v13 = vmul.f32 %v3010_v28, %v331_v3  ;;  %v352_v49 = vmul.f32 %v3010_v28, %v332_v36  ;;  %v5792_v32 = vsub.f32 %v2887_v33, %v3015_v31  ;;  %1157 = vrot.lane.b32.xlu1 %v1090_v17, %s2777_s1 }
 0x149   :  { %v5793_v4 = vsub.f32 %v2977_v45, %v3015_v31  ;;  %vm5561_vm2 = vcmp.ge.s32.totalorder %v3099_v46, 1  ;;  %vm5568_vm7 = vcmp.ge.s32.totalorder %v3110_v41, 1  ;;  %v1089_v3 = vpack.c.bf16 %v1076_v60, %v1075_v20  ;;  %2547 = vmatpush3.bf16.msra.mxu1 %v2710_v38 }
 0x14a   :  { %v356_v61 = vmul.f32 %v3010_v28, %v336_v27  ;;  %v322_v30 = vmul.f32 %v3154_v2, %v5792_v32  ;;  %v373_v63 = vadd.f32 %v3017_v34, %v353_v47  ;;  %v374_v33 = vadd.f32 %v3017_v34, %v354_v23 }
 0x14b   :  { %v337_v50 = vmul.f32 %v3154_v2, %v5793_v4  ;;  %v371_v36 = vadd.f32 %v3017_v34, %v351_v13  ;;  %v372_v45 = vadd.f32 %v3017_v34, %v352_v49  ;;  %1155 = vrot.lane.b32.xlu0 %v1089_v3, %s2777_s1  ;;  %v1083_v47 = vsel %vm5537_vm9, %v3259_v56, 0.0  ;;  %v2711_v4 = vld [vmem:[%s5522_s2 + $0x58] sm:$0xff]  }
 0x14c   :  { %v376_v31 = vadd.f32 %v3017_v34, %v356_v61  ;;  %v342_v2 = vmul.f32 %v3010_v28, %v322_v30  ;;  %v3335_v17 = vmax.f32 %v373_v63, 0.0  ;;  %v3337_v20 = vmax.f32 %v374_v33, 0.0  ;;  %2548 = vmatprep.subr.bf16.mxu1 %v2711_v4 }
 0x14d   :  { %v357_v10 = vmul.f32 %v3010_v28, %v337_v50  ;;  %v3339_v27 = vmax.f32 %v371_v36, 0.0  ;;  %v5797_v23 = vand.u32 7, %v2997_v11  ;;  %v5798_v28 = vmov 0  ;;  %2549 = vmatpush3.bf16.msra.mxu1 %v2711_v4 }
 0x14e   :  { %5794 = vst [vmem:[#allocation30_spill] sm:$0xff] %v3335_v17  ;;  %5795 = vst [vmem:[#allocation31_spill] sm:$0xff] %v3337_v20  ;;  %v3351_v13 = vmax.f32 %v372_v45, 0.0  ;;  %v3353_v49 = vmax.f32 %v376_v31, 0.0  ;;  %v362_v60 = vadd.f32 %v3017_v34, %v342_v2  ;;  %v5803_v32 = vand.u32 7, %v3013_v29 }
 0x14f   :  { %5796 = vst [vmem:[#allocation32_spill] sm:$0xff] %v3339_v27  ;;  %vm3347_vm8 = vcmp.ge.s32.totalorder %v5797_v23, 1  ;;  %v377_v61 = vadd.f32 %v3017_v34, %v357_v10  ;;  %v5804_v30 = vmov 0  ;;  %v1081_v38 = vsel %vm5539_vm10, %v3335_v17, 0.0 }
 0x150   :  { %v5799_v28 = vsel %vm3347_vm8, 4294967295, %v5798_v28  ;;  %5801 = vst [vmem:[#allocation34_spill] sm:$0xff] %v3351_v13  ;;  %5802 = vst [vmem:[#allocation35_spill] sm:$0xff] %v3353_v49  ;;  %vm3359_vm9 = vcmp.ge.s32.totalorder %v5803_v32, 1  ;;  %v1082_v50 = vsel %vm5538_vm11, %v3337_v20, 0.0  ;;  %v1079_v34 = vsel %vm5548_vm12, %v3339_v27, 0.0 }
 0x151   :  { %5800 = vst [vmem:[#allocation33_spill] sm:$0xff] %v5799_v28  ;;  %v5805_v30 = vsel %vm3359_vm9, 4294967295, %v5804_v30  ;;  %v3378_v3 = vsel %vm5540_vm13, %v3226_v39, 0.0  ;;  %v5807_v63 = vand.u32 7, %v3005_v24  ;;  %v5808_v33 = vmov 0 }
 0x152   :  { %5806 = vst [vmem:[#allocation36_spill] sm:$0xff] %v5805_v30  ;;  %v5811_v36 = vmov %v5797_v23  ;;  %v5812_v45 = vmov 0  ;;  %v5815_v31 = vmov %v5803_v32  ;;  %v5816_v2 = vmov 0 }
 0x153   :  { %vm3383_vm1 = vcmp.lt.s32.totalorder %v5807_v63, 7  ;;  %vm3389_vm11 = vcmp.lt.s32.totalorder %v5811_v36, 7  ;;  %vm3395_vm10 = vcmp.lt.s32.totalorder %v5815_v31, 7  ;;  %v1092_v10 = vpack.c.bf16 %v1082_v50, %v1081_v38 }
 0x154   :  { %v5809_v33 = vsel %vm3383_vm1, 4294967295, %v5808_v33  ;;  %v5813_v45 = vsel %vm3389_vm11, 4294967295, %v5812_v45  ;;  %v5817_v2 = vsel %vm3395_vm10, 4294967295, %v5816_v2  ;;  %v1080_v23 = vsel %vm5541_vm14, %v3351_v13, 0.0 }
 0x155   :  { %5810 = vst [vmem:[#allocation37_spill] sm:$0xff] %v5809_v33  ;;  %5814 = vst [vmem:[#allocation38_spill] sm:$0xff] %v5813_v45  ;;  %v1084_v32 = vsel %vm5544_vm15, %v3353_v49, 0.0  ;;  %v3405_v63 = vmax.f32 %v362_v60, 0.0  ;;  %v1091_v36 = vpack.c.bf16 %v1080_v23, %v1079_v34  ;;  %v3408_v31 = vmax.f32 %v377_v61, 0.0  ;;  %1161 = vrot.lane.b32.xlu1 %v1092_v10, %s2777_s1  ;;  %v2712_v23 = vld [vmem:[%s5522_s2 + $0x60] sm:$0xff]  }
 0x156   :  { %5818 = vst [vmem:[#allocation39_spill] sm:$0xff] %v5817_v2  ;;  %v1093_v29 = vpack.c.bf16 %v1084_v32, %v1083_v47  ;;  %v3413_v38 = vsel %vm5547_vm0, %v3228_v12, 0.0  ;;  %v5821_v50 = vand.u32 7, %v3005_v24  ;;  %v5825_v60 = vand.u32 7, %v3008_v25  ;;  %2550 = vmatprep.subr.bf16.mxu1 %v2712_v23 }
 0x157   :  { %5819 = vst [vmem:[#allocation40_spill] sm:$0xff] %v3405_v63  ;;  %5820 = vst [vmem:[#allocation41_spill] sm:$0xff] %v3408_v31  ;;  %v5826_v39 = vmov 0  ;;  %v1086_v47 = vsel %vm5552_vm6, %v3405_v63, 0.0  ;;  %v734_v24 = vsel %vm5551_vm5, %v3339_v27, 0.0  ;;  %vm5829_vm0 = vcmp.ge.s32.totalorder %v3127_v42, 1  ;;  %1159 = vrot.lane.b32.xlu0 %v1091_v36, %s2777_s1  ;;  %2551 = vmatpush3.bf16.msra.mxu1 %v2712_v23 }
 0x158   :  { %vm3417_vm14 = vcmp.ge.s32.totalorder %v5821_v50, 1  ;;  %vm3423_vm15 = vcmp.lt.s32.totalorder %v5825_v60, 7  ;;  %v735_v61 = vsel %vm5829_vm0, %v3351_v13, 0.0  ;;  %vm5830_vm12 = vcmp.ge.s32.totalorder %v3133_v53, 1 }
 0x159   :  { %v5823_v6 = vsel %vm3417_vm14, 4294967295, %v5822_v6  ;;  %v5827_v39 = vsel %vm3423_vm15, 4294967295, %v5826_v39  ;;  %v3440_v4 = vsel %vm5830_vm12, %v3335_v17, 0.0  ;;  %v5831_v34 = vmov %v5825_v60 }
 0x15a   :  { %5824 = vst [vmem:[#allocation42_spill] sm:$0xff] %v5823_v6  ;;  %5828 = vst [vmem:[#allocation43_spill] sm:$0xff] %v5827_v39  ;;  %vm3444_vm13 = vcmp.ge.s32.totalorder %v5831_v34, 1  ;;  %v5832_v10 = vmov 0  ;;  %v1085_v32 = vsel %vm5569_vm4, %v3408_v31, 0.0  ;;  %v745_v50 = vpack.c.bf16 %v735_v61, %v734_v24  ;;  %v6054_v6 = vld [vmem:[#allocation20_spill] sm:$0xff] }
 0x15b   :  { %v5833_v10 = vsel %vm3444_vm13, 4294967295, %v5832_v10  ;;  %vm5835_vm0 = vcmp.ge.s32.totalorder %v3135_v51, 1  ;;  %vm5836_vm12 = vcmp.ge.s32.totalorder %v3137_v62, 1  ;;  %v1094_v34 = vpack.c.bf16 %v1086_v47, %v1085_v32  ;;  %1163 = vrot.lane.b32.xlu0 %v1093_v29, %s2777_s1 }
 0x15c   :  { %5834 = vst [vmem:[#allocation44_spill] sm:$0xff] %v5833_v10  ;;  %v3458_v60 = vsel %vm5835_vm0, %v3337_v20, 0.0  ;;  %v3463_v25 = vsel %vm5836_vm12, %v3259_v56, 0.0  ;;  %vm5837_vm5 = vcmp.ge.s32.totalorder %v3142_v5, 1  ;;  %vm5838_vm6 = vcmp.ge.s32.totalorder %v3097_v44, 1 }
 0x15d   :  { %v3470_v36 = vsel %vm5837_vm5, %v3353_v49, 0.0  ;;  %v3475_v24 = vsel %vm5838_vm6, %v3221_v57, 0.0  ;;  %v3482_v47 = vsel %vm5561_vm2, %v3224_v35, 0.0  ;;  %v3487_v32 = vsel %vm5568_vm7, %v3408_v31, 0.0  ;;  %1165 = vrot.lane.b32.xlu1 %v1094_v34, %s2777_s1  ;;  %v2713_v31 = vld [vmem:[%s5522_s2 + $0x68] sm:$0xff]  }
 0x15e   :  { %vm5839_vm5 = vcmp.ge.s32.totalorder %v3112_v1, 1  ;;  %v5840_v49 = vand.u32 7, %v3065_v8  ;;  %v5841_v56 = vmov 0  ;;  %v744_v61 = vpack.c.bf16 %v3413_v38, %v3378_v3  ;;  %2552 = vmatprep.subr.bf16.mxu1 %v2713_v31 }
 0x15f   :  { %v3492_v53 = vsel %vm5839_vm5, %v3405_v63, 0.0  ;;  %vm5844_vm0 = vcmp.ge.s32.totalorder %v3114_v0, 1  ;;  %vm5846_vm12 = vcmp.ge.s32.totalorder %v3119_v59, 1  ;;  %v5848_v23 = vand.u32 7, %v3065_v8  ;;  %2553 = vmatpush3.bf16.msra.mxu1 %v2713_v31 }
 0x160   :  { %vm3496_vm6 = vcmp.ge.s32.totalorder %v5840_v49, 1  ;;  %v3508_v5 = vsel %vm5844_vm0, %v3262_v52, 0.0  ;;  %v3513_v49 = vsel %vm5846_vm12, %v3287_v40, 0.0  ;;  %v5849_v34 = vmov 0  ;;  %861 = vrot.lane.b32.xlu0 %v744_v61, %s2778_s29 }
 0x161   :  { %v5842_v56 = vsel %vm3496_vm6, 4294967295, %v5841_v56  ;;  %5845 = vst [vmem:[#allocation46_spill] sm:$0xff] %v3508_v5  ;;  %5847 = vst [vmem:[#allocation47_spill] sm:$0xff] %v3513_v49  ;;  %vm3517_vm5 = vcmp.lt.s32.totalorder %v5848_v23, 7  ;;  %v5852_v3 = vand.u32 7, %v3068_v9  ;;  %v5853_v38 = vmov 0  ;;  %863 = vrot.lane.b32.xlu1 %v745_v50, %s2778_s29 }
 0x162   :  { %5843 = vst [vmem:[#allocation45_spill] sm:$0xff] %v5842_v56  ;;  %v5850_v34 = vsel %vm3517_vm5, 4294967295, %v5849_v34  ;;  %vm5856_vm0 = vcmp.ge.s32.totalorder %v3121_v58, 1  ;;  %v5858_v20 = vmov 0  ;;  %v5861_v29 = vand.u32 7, %v3020_v37  ;;  %v2714_v50 = vld [vmem:[%s5522_s2 + $0x70] sm:$0xff]  }
 0x163   :  { %5851 = vst [vmem:[#allocation48_spill] sm:$0xff] %v5850_v34  ;;  %vm3523_vm2 = vcmp.ge.s32.totalorder %v5852_v3, 1  ;;  %v3538_v23 = vsel %vm5856_vm0, %v3217_v26, 0.0  ;;  %v5857_v51 = vmov %v5852_v3  ;;  %v5862_v62 = vmov 0  ;;  %2554 = vmatprep.subr.bf16.mxu1 %v2714_v50 }
 0x164   :  { %v5854_v38 = vsel %vm3523_vm2, 4294967295, %v5853_v38  ;;  %vm3543_vm12 = vcmp.lt.s32.totalorder %v5857_v51, 7  ;;  %vm3549_vm7 = vcmp.ge.s32.totalorder %v5861_v29, 1  ;;  %vm5865_vm4 = vcmp.ge.s32.totalorder %v3123_v55, 1  ;;  %2555 = vmatpush3.bf16.msra.mxu1 %v2714_v50 }
 0x165   :  { %5855 = vst [vmem:[#allocation49_spill] sm:$0xff] %v5854_v38  ;;  %v5859_v20 = vsel %vm3543_vm12, 4294967295, %v5858_v20  ;;  %v5863_v62 = vsel %vm3549_vm7, 4294967295, %v5862_v62  ;;  %v3556_v8 = vsel %vm5865_vm4, %v3219_v48, 0.0  ;;  %v749_v42 = vrot.slane %v3221_v57, 1 }
 0x166   :  { %5860 = vst [vmem:[#allocation50_spill] sm:$0xff] %v5859_v20  ;;  %5864 = vst [vmem:[#allocation51_spill] sm:$0xff] %v5863_v62  ;;  %v750_v3 = vrot.slane %v3224_v35, 1  ;;  %vm5866_vm0 = vcmp.lt.s32.totalorder %v3110_v41, 7  ;;  %vm3571_vm7 = vcmp.lt.s32.totalorder %v5861_v29, 7  ;;  %v5869_v54 = vmov 0 }
 0x167   :  { %vm3565_vm3 = vmand %vm5866_vm0, %vm3347_vm8  ;;  %v5870_v54 = vsel %vm3571_vm7, 4294967295, %v5869_v54  ;;  %v5871_v17 = vand.u32 7, %v3026_v43  ;;  %v5872_v5 = vmov 0  ;;  %v652_v51 = vrot.slane %v3221_v57, 7 }
 0x168   :  { %v653_v28 = vrot.slane %v3224_v35, 7  ;;  %vm5875_vm0 = vcmp.lt.s32.totalorder %v3112_v1, 7  ;;  %v751_v29 = vrot.slane %v3217_v26, 1  ;;  %v5878_v41 = vand.u32 7, %v3026_v43 }
 0x169   :  { %vm3577_vm4 = vcmp.ge.s32.totalorder %v5871_v17, 1  ;;  %vm3587_vm8 = vmand %vm5875_vm0, %vm3359_vm9  ;;  %v752_v17 = vrot.slane %v3219_v48, 1  ;;  %v5879_v49 = vmov 0  ;;  %v5881_v35 = vand.u32 7, %v3077_v16 }
 0x16a   :  { %v5873_v5 = vsel %vm3577_vm4, 4294967295, %v5872_v5  ;;  %vm3595_vm4 = vcmp.lt.s32.totalorder %v5878_v41, 7  ;;  %v5882_v57 = vmov 0  ;;  %vm5884_vm0 = vcmp.lt.s32.totalorder %v2997_v11, 7 }
 0x16b   :  { %5874 = vst [vmem:[#allocation52_spill] sm:$0xff] %v5873_v5  ;;  %v5880_v49 = vsel %vm3595_vm4, 4294967295, %v5879_v49  ;;  %vm3601_vm7 = vcmp.ge.s32.totalorder %v5881_v35, 1  ;;  %v3608_v30 = vsel %vm5884_vm0, %v749_v42, %v750_v3  ;;  %v5886_v43 = vrot.slane %v3405_v63, 1  ;;  %vm5887_vm9 = vmmov %vm5884_vm0 }
 0x16c   :  { %v5883_v57 = vsel %vm3601_vm7, 4294967295, %v5882_v57  ;;  %5885 = vst [vmem:[#allocation53_spill] sm:$0xff] %v3608_v30  ;;  %v654_v1 = vrot.slane %v3217_v26, 7  ;;  %vm3620_vm7 = vcmp.ge.s32.totalorder %v5889_v7, 1  ;;  %v5890_v31 = vmov 0 }
 0x16d   :  { %v3614_v41 = vsel %vm5887_vm9, %v5886_v43, %v749_v42  ;;  %v5891_v31 = vsel %vm3620_vm7, 4294967295, %v5890_v31  ;;  %vm5893_vm0 = vcmp.lt.s32.totalorder %v3097_v44, 7  ;;  %v1008_v43 = vsel %vm3395_vm10, %v3608_v30, 0.0  ;;  %v2715_v42 = vld [vmem:[%s5522_s2 + $0x78] sm:$0xff]  }
 0x16e   :  { %5888 = vst [vmem:[#allocation54_spill] sm:$0xff] %v3614_v41  ;;  %5892 = vst [vmem:[#allocation55_spill] sm:$0xff] %v5891_v31  ;;  %v1007_v7 = vsel %vm3389_vm11, %v3614_v41, 0.0  ;;  %vm5896_vm7 = vcmp.lt.s32.totalorder %v2997_v11, 1  ;;  %v5898_v26 = vrot.slane %v3405_v63, 7  ;;  %v5901_v61 = vand.u32 7, %v3071_v14  ;;  %2556 = vmatprep.subr.bf16.mxu1 %v2715_v42 }
 0x16f   :  { %vm3631_vm9 = vmand %vm5893_vm0, %vm3383_vm1  ;;  %v3644_v35 = vsel %vm5896_vm7, %v652_v51, %v653_v28  ;;  %v5902_v13 = vmov 0  ;;  %v5910_v9 = vmov 0  ;;  %v3684_v37 = vpack.c.bf16 %v1008_v43, %v1007_v7  ;;  %2557 = vmatpush3.bf16.msra.mxu1 %v2715_v42 }
 0x170   :  { %5897 = vst [vmem:[#allocation56_spill] sm:$0xff] %v3644_v35  ;;  %vm5899_vm0 = vmmov %vm5896_vm7  ;;  %vm3654_vm4 = vcmp.ge.s32.totalorder %v5901_v61, 1  ;;  %v1048_v2 = vsel %vm3587_vm8, %v3644_v35, 0.0  ;;  %vm5904_vm7 = vcmp.lt.s32.totalorder %v2997_v11, 7  ;;  %v5909_v61 = vand.u32 7, %v3074_v15 }
 0x171   :  { %v3650_v31 = vsel %vm5899_vm0, %v5898_v26, %v652_v51  ;;  %v5903_v13 = vsel %vm3654_vm4, 4294967295, %v5902_v13  ;;  %v3668_v26 = vsel %vm5904_vm7, %v751_v29, %v752_v17  ;;  %vm5906_vm0 = vcmp.lt.s32.totalorder %v3097_v44, 7 }
 0x172   :  { %5900 = vst [vmem:[#allocation57_spill] sm:$0xff] %v3650_v31  ;;  %v1047_v30 = vsel %vm3565_vm3, %v3650_v31, 0.0  ;;  %5905 = vst [vmem:[#allocation58_spill] sm:$0xff] %v3668_v26  ;;  %vm3680_vm11 = vcmp.ge.s32.totalorder %v5909_v61, 1  ;;  %v1010_v31 = vsel %vm3423_vm15, %v3668_v26, 0.0  ;;  %vm5914_vm8 = vcmp.lt.s32.totalorder %v3099_v46, 7 }
 0x173   :  { %vm3674_vm10 = vmand %vm5906_vm0, %vm3417_vm14  ;;  %v5911_v9 = vsel %vm3680_vm11, 4294967295, %v5910_v9  ;;  %v3686_v41 = vpack.c.bf16 %v1048_v2, %v1047_v30  ;;  %v5917_v7 = vand.u32 7, %v3080_v18  ;;  %v5918_v30 = vmov 0 }
 0x174   :  { %vm5912_vm3 = vmmov %vm5904_vm7  ;;  %v5920_v2 = vand.u32 7, %v3083_v19  ;;  %v5924_v43 = vmov 0  ;;  %v753_v46 = vrot.slane %v3262_v52, 1  ;;  %v5934_v10 = vand.u32 7, %v3077_v16 }
 0x175   :  { %v3690_v35 = vsel %vm5912_vm3, %v750_v3, %v751_v29  ;;  %vm3699_vm7 = vmand %vm5914_vm8, %vm3444_vm13  ;;  %vm3705_vm0 = vcmp.lt.s32.totalorder %v5917_v7, 7  ;;  %v5921_v3 = vmov 0  ;;  %v5923_v29 = vand.u32 7, %v3086_v21  ;;  %v6005_v34 = vld [vmem:[#allocation55_spill] sm:$0xff] }
 0x176   :  { %5913 = vst [vmem:[#allocation59_spill] sm:$0xff] %v3690_v35  ;;  %v5919_v30 = vsel %vm3705_vm0, 4294967295, %v5918_v30  ;;  %vm3711_vm3 = vcmp.ge.s32.totalorder %v5920_v2, 1  ;;  %vm3725_vm13 = vmand %vm5914_vm8, %vm3423_vm15  ;;  %v5928_v7 = vpack.c.bf16 %v3470_v36, %v3463_v25  ;;  %v1009_v2 = vsel %vm3383_vm1, %v3690_v35, 0.0 }
 0x177   :  { %v5922_v3 = vsel %vm3711_vm3, 4294967295, %v5921_v3  ;;  %vm3717_vm14 = vcmp.ge.s32.totalorder %v5923_v29, 1  ;;  %v5929_v29 = vrot.slane %v3219_v48, 7  ;;  %vm3749_vm15 = vcmp.lt.s32.totalorder %v5934_v10, 7 }
 0x178   :  { %v5925_v43 = vsel %vm3717_vm14, 4294967295, %v5924_v43  ;;  %867 = vrot.lane.b32.xlu1 %v5928_v7, %s2778_s29  ;;  %vm5930_vm14 = vcmp.lt.s32.totalorder %v2997_v11, 1  ;;  %v5935_v25 = vmov 0  ;;  %v5937_v36 = vand.u32 7, %v3089_v22 }
 0x179   :  { %v3740_v50 = vsel %vm5930_vm14, %v654_v1, %v5929_v29  ;;  %vm5932_vm8 = vmmov %vm5930_vm14  ;;  %v5936_v25 = vsel %vm3749_vm15, 4294967295, %v5935_v25  ;;  %v5938_v7 = vmov 0  ;;  %v5941_v29 = vpack.c.bf16 %v3458_v60, %v3440_v4  ;;  %v5946_v4 = vld [vmem:[#allocation6_spill] sm:$0xff] }
 0x17a   :  { %5931 = vst [vmem:[#allocation60_spill] sm:$0xff] %v3740_v50  ;;  %v3744_v39 = vsel %vm5932_vm8, %v653_v28, %v654_v1  ;;  %vm3755_vm1 = vcmp.ge.s32.totalorder %v5937_v36, 1  ;;  %v3763_v1 = vpack.c.bf16 %v1010_v31, %v1009_v2  ;;  %v1555_v16 = vsel %vm3631_vm9, %v3668_v26, 0.0  ;;  %v5953_v2 = vld [vmem:[#allocation25_spill] sm:$0xff] }
 0x17b   :  { %5933 = vst [vmem:[#allocation61_spill] sm:$0xff] %v3744_v39  ;;  %v5939_v7 = vsel %vm3755_vm1, 4294967295, %v5938_v7  ;;  %865 = vrot.lane.b32.xlu0 %v5941_v29, %s2778_s29  ;;  %v1049_v28 = vsel %vm3674_vm10, %v3744_v39, 0.0  ;;  %v754_v10 = vrot.slane %v3287_v40, 1  ;;  %v5942_v36 = vand.u32 7, %v3071_v14 }
 0x17c   :  { %5940 = vst [vmem:[#allocation62_spill] sm:$0xff] %v5939_v7  ;;  %v5943_v33 = vmov 0  ;;  %v5947_v60 = vand.u32 7, %v5946_v4  ;;  %v5948_v31 = vmov 0  ;;  %v1050_v51 = vsel %vm3699_vm7, %v3740_v50, 0.0 }
 0x17d   :  { %vm3774_vm14 = vcmp.lt.s32.totalorder %v5942_v36, 7  ;;  %vm5951_vm10 = vcmp.lt.s32.totalorder %v2997_v11, 7  ;;  %v755_v29 = vrot.slane %v5953_v2, 1  ;;  %v756_v36 = vrot.slane %v3228_v12, 1 }
 0x17e   :  { %v5944_v33 = vsel %vm3774_vm14, 4294967295, %v5943_v33  ;;  %vm3780_vm8 = vcmp.ge.s32.totalorder %v5947_v60, 1  ;;  %v3792_v14 = vsel %vm5951_vm10, %v752_v17, %v753_v46  ;;  %vm5954_vm9 = vcmp.lt.s32.totalorder %v3121_v58, 7  ;;  %vm5961_vm7 = vmmov %vm5951_vm10  ;;  %v6015_v60 = vld [vmem:[#allocation47_spill] sm:$0xff]  ;;  %v6020_v58 = vld [vmem:[#allocation30_spill] sm:$0xff] }
 0x17f   :  { %5945 = vst [vmem:[#allocation63_spill] sm:$0xff] %v5944_v33  ;;  %v5949_v31 = vsel %vm3780_vm8, 4294967295, %v5948_v31  ;;  %5952 = vst [vmem:[#allocation64_spill] sm:$0xff] %v3792_v14  ;;  %v5957_v26 = vand.u32 7, %v3074_v15  ;;  %v5958_v61 = vmov 0  ;;  %v3812_v17 = vsel %vm5961_vm7, %v753_v46, %v754_v10 }
 0x180   :  { %5950 = vst [vmem:[#allocation6_spill] sm:$0xff] %v5949_v31  ;;  %vm3800_vm8 = vmand %vm5954_vm9, %vm3496_vm6  ;;  %v1011_v35 = vsel %vm3517_vm5, %v3792_v14, 0.0  ;;  %v1556_v50 = vsel %vm3725_vm13, %v3792_v14, 0.0  ;;  %v656_v39 = vrot.slane %v3262_v52, 7  ;;  %vm5963_vm10 = vcmp.lt.s32.totalorder %v3123_v55, 7 }
 0x181   :  { %vm3806_vm14 = vcmp.lt.s32.totalorder %v5957_v26, 7  ;;  %5962 = vst [vmem:[#allocation66_spill] sm:$0xff] %v3812_v17  ;;  %vm3825_vm9 = vmand %vm5963_vm10, %vm3523_vm2  ;;  %v5966_v46 = vpack.c.bf16 %v3482_v47, %v3475_v24  ;;  %v1012_v26 = vsel %vm3543_vm12, %v3812_v17, 0.0  ;;  %v3836_v18 = vpack.c.bf16 %v1556_v50, %v1555_v16 }
 0x182   :  { %v5959_v61 = vsel %vm3806_vm14, 4294967295, %v5958_v61  ;;  %vm5968_vm13 = vmmov %vm5961_vm7  ;;  %v3844_v14 = vsel %vm5961_vm7, %v754_v10, %v755_v29  ;;  %vm5971_vm10 = vnez %v5863_v62  ;;  %vm5972_vm5 = vcmp.lt.s32.totalorder %v3114_v0, 7  ;;  %v6046_v62 = vld [vmem:[#allocation19_spill] sm:$0xff] }
 0x183   :  { %5960 = vst [vmem:[#allocation65_spill] sm:$0xff] %v5959_v61  ;;  %855 = vrot.lane.b32.xlu1 %v5966_v46, %s2778_s29  ;;  %5967 = vst [vmem:[#allocation67_spill] sm:$0xff] %v3836_v18  ;;  %v3840_v52 = vsel %vm5968_vm13, %v755_v29, %v756_v36  ;;  %v5975_v47 = vand.u32 7, %v3083_v19  ;;  %v5976_v50 = vmov 0  ;;  %v5979_v16 = vpack.c.bf16 %v3492_v53, %v3487_v32 }
 0x184   :  { %5969 = vst [vmem:[#allocation68_spill] sm:$0xff] %v3840_v52  ;;  %5970 = vst [vmem:[#allocation69_spill] sm:$0xff] %v3844_v14  ;;  %v3864_v10 = vpack.c.bf16 %v1050_v51, %v1049_v28  ;;  %v3866_v29 = vpack.c.bf16 %v1012_v26, %v1011_v35  ;;  %v657_v19 = vrot.slane %v3287_v40, 7  ;;  %vm5981_vm13 = vnez %v5873_v5  ;;  %v3889_v35 = vld [vmem:[%s5522_s2] sm:$0xff]   ;;  %v6004_v40 = vld [vmem:[#allocation34_spill] sm:$0xff] }
 0x185   :  { %vm3850_vm2 = vmand %vm5972_vm5, %vm5971_vm10  ;;  %vm3856_vm12 = vcmp.lt.s32.totalorder %v5975_v47, 7  ;;  %853 = vrot.lane.b32.xlu0 %v5979_v16, %s2778_s29  ;;  %vm5980_vm5 = vnez %v5870_v54  ;;  %vm5982_vm7 = vcmp.lt.s32.totalorder %v3119_v59, 7  ;;  %v5985_v53 = vand.u32 7, %v3086_v21  ;;  %5989 = vst [vmem:[#allocation72_spill] sm:$0xff] %v3889_v35  ;;  %v5995_v16 = vld [vmem:[#allocation15_spill] sm:$0xff]  ;;  %2646 = vmatprep.subr.bf16.mxu1 %v3889_v35 }
 0x186   :  { %v5977_v50 = vsel %vm3856_vm12, 4294967295, %v5976_v50  ;;  %v1013_v46 = vsel %vm5980_vm5, %v3844_v14, 0.0  ;;  %vm3876_vm6 = vmand %vm5982_vm7, %vm5981_vm13  ;;  %v5986_v32 = vmov 0  ;;  %vm5990_vm5 = vnez %v5880_v49  ;;  %2574 = vmatprep.subr.bf16.mxu0 %v3889_v35  ;;  %v6021_v14 = vld [vmem:[#allocation13_spill] sm:$0xff] }
 0x187   :  { %5978 = vst [vmem:[#allocation70_spill] sm:$0xff] %v5977_v50  ;;  %vm3882_vm10 = vcmp.lt.s32.totalorder %v5985_v53, 7  ;;  %v1014_v28 = vsel %vm5990_vm5, %v3840_v52, 0.0  ;;  %v5991_v51 = vrot.slane %v3219_v48, 7  ;;  %vm5992_vm7 = vcmp.lt.s32.totalorder %v2997_v11, 1  ;;  %v6007_v52 = vld [vmem:[#allocation16_spill] sm:$0xff]  ;;  %2575 = vmatpush3.bf16.msra.mxu0 %v3889_v35 }
 0x188   :  { %v5987_v32 = vsel %vm3882_vm10, 4294967295, %v5986_v32  ;;  %v658_v21 = vrot.slane %v5953_v2, 7  ;;  %v659_v47 = vrot.slane %v3228_v12, 7  ;;  %vm5994_vm13 = vnez %v5883_v57  ;;  %v6028_v35 = vld [vmem:[#allocation14_spill] sm:$0xff] }
 0x189   :  { %5988 = vst [vmem:[#allocation71_spill] sm:$0xff] %v5987_v32  ;;  %v3898_v26 = vsel %vm5992_vm7, %v5991_v51, %v656_v39  ;;  %vm5996_vm10 = vcmp.lt.s32.totalorder %v5995_v16, 7  ;;  %v5997_v53 = vmov 0  ;;  %v5999_v18 = vand.u32 7, %v3089_v22  ;;  %v6073_v22 = vld [vmem:[#allocation27_spill] sm:$0xff] }
 0x18a   :  { %5993 = vst [vmem:[#allocation73_spill] sm:$0xff] %v3898_v26  ;;  %vm3906_vm12 = vmand %vm5996_vm10, %vm5994_vm13  ;;  %v6000_v48 = vmov 0  ;;  %v3918_v51 = vsel %vm5992_vm7, %v656_v39, %v657_v19  ;;  %v1051_v12 = vsel %vm3800_vm8, %v3898_v26, 0.0  ;;  %v757_v2 = vrot.slane %v3339_v27, 1  ;;  %v6016_v26 = vld [vmem:[#allocation46_spill] sm:$0xff] }
 0x18b   :  { %v5998_v53 = vsel %vm3906_vm12, 4294967295, %v5997_v53  ;;  %vm3912_vm5 = vcmp.lt.s32.totalorder %v5999_v18, 7  ;;  %6003 = vst [vmem:[#allocation74_spill] sm:$0xff] %v3918_v51  ;;  %v758_v20 = vrot.slane %v6004_v40, 1  ;;  %vm6006_vm10 = vnez %v6005_v34 }
 0x18c   :  { %v6001_v48 = vsel %vm3912_vm5, 4294967295, %v6000_v48  ;;  %vm6008_vm13 = vcmp.lt.s32.totalorder %v6007_v52, 7  ;;  %v6011_v18 = vand.u32 7, %v5946_v4  ;;  %v6012_v39 = vmov 0 }
 0x18d   :  { %6002 = vst [vmem:[#allocation15_spill] sm:$0xff] %v6001_v48  ;;  %vm3929_vm12 = vmand %vm6008_vm13, %vm6006_vm10  ;;  %v6017_v55 = vpack.c.bf16 %v6015_v60, %v6016_v26  ;;  %v1052_v38 = vsel %vm3825_vm9, %v3918_v51, 0.0  ;;  %vm6018_vm8 = vcmp.lt.s32.totalorder %v2997_v11, 1  ;;  %v759_v56 = vrot.slane %v6020_v58, 1 }
 0x18e   :  { %vm3935_vm7 = vcmp.lt.s32.totalorder %v6011_v18, 7  ;;  %v3950_v4 = vsel %vm6018_vm8, %v658_v21, %v659_v47  ;;  %vm6019_vm13 = vmmov %vm6018_vm8  ;;  %vm6022_vm10 = vcmp.lt.s32.totalorder %v6021_v14, 7  ;;  %v6025_v15 = vpack.c.bf16 %v3556_v8, %v3538_v23  ;;  %v6034_v23 = vld [vmem:[#allocation31_spill] sm:$0xff] }
 0x18f   :  { %v6013_v39 = vsel %vm3935_vm7, 4294967295, %v6012_v39  ;;  %859 = vrot.lane.b32.xlu1 %v6017_v55, %s2778_s29  ;;  %v3954_v18 = vsel %vm6019_vm13, %v657_v19, %v658_v21  ;;  %vm3961_vm7 = vmand %vm6022_vm10, %vm3654_vm4  ;;  %v3970_v26 = vpack.c.bf16 %v1014_v28, %v1013_v46  ;;  %v3972_v19 = vpack.c.bf16 %v1052_v38, %v1051_v12  ;;  %v6035_v28 = vld [vmem:[#allocation17_spill] sm:$0xff]  ;;  %v6040_v12 = vld [vmem:[#allocation18_spill] sm:$0xff] }
 0x190   :  { %6014 = vst [vmem:[#allocation55_spill] sm:$0xff] %v6013_v39  ;;  %857 = vrot.lane.b32.xlu0 %v6025_v15, %s2778_s29  ;;  %vm6026_vm9 = vcmp.lt.s32.totalorder %v2997_v11, 7  ;;  %vm6029_vm10 = vcmp.lt.s32.totalorder %v6028_v35, 7  ;;  %v760_v46 = vrot.slane %v6034_v23, 1  ;;  %vm6041_vm4 = vcmp.lt.s32.totalorder %v6040_v12, 7 }
 0x191   :  { %v3979_v60 = vsel %vm6026_vm9, %v757_v2, %v758_v20  ;;  %vm3985_vm8 = vmand %vm6029_vm10, %vm3680_vm11  ;;  %vm6039_vm11 = vnez %v5925_v43  ;;  %v660_v17 = vrot.slane %v3339_v27, 7  ;;  %v661_v5 = vrot.slane %v6004_v40, 7 }
 0x192   :  { %6027 = vst [vmem:[#allocation16_spill] sm:$0xff] %v3979_v60  ;;  %vm6032_vm13 = vmmov %vm6026_vm9  ;;  %v1016_v8 = vsel %vm3705_vm0, %v3979_v60, 0.0  ;;  %vm6036_vm9 = vcmp.lt.s32.totalorder %v6035_v28, 7  ;;  %vm6044_vm0 = vcmp.lt.s32.totalorder %v2997_v11, 7  ;;  %v662_v40 = vrot.slane %v6020_v58, 7 }
 0x193   :  { %v3994_v38 = vsel %vm6032_vm13, %v756_v36, %v757_v2  ;;  %vm4004_vm10 = vmand %vm6036_vm9, %vm3711_vm3  ;;  %v4021_v21 = vsel %vm6044_vm0, %v758_v20, %v759_v56  ;;  %vm6047_vm9 = vcmp.lt.s32.totalorder %v6046_v62, 7  ;;  %1127 = vrot.lane.b32.xlu1 %v3686_v41, %s2779_s11  ;;  %v4039_v20 = vsel %vm6044_vm0, %v759_v56, %v760_v46  ;;  %v4056_v41 = vld [vmem:[%s5522_s2 + $0x8] sm:$0xff]  }
 0x194   :  { %6033 = vst [vmem:[#allocation47_spill] sm:$0xff] %v3994_v38  ;;  %vm4012_vm13 = vmand %vm6041_vm4, %vm6039_vm11  ;;  %v1015_v36 = vsel %vm3749_vm15, %v3994_v38, 0.0  ;;  %vm6052_vm11 = vnez %v5944_v33  ;;  %1103 = vrot.lane.b32.xlu0 %v3684_v37, %s2778_s29  ;;  %v1018_v56 = vsel %vm3806_vm14, %v4039_v20, 0.0  ;;  %vm6059_vm0 = vcmp.lt.s32.totalorder %v2997_v11, 1  ;;  %2576 = vmatprep.subr.bf16.mxu0 %v4056_v41 }
 0x195   :  { %6045 = vst [vmem:[#allocation46_spill] sm:$0xff] %v4021_v21  ;;  %vm4029_vm4 = vmand %vm6047_vm9, %vm3755_vm1  ;;  %v4035_v38 = vpack.c.bf16 %v1016_v8, %v1015_v36  ;;  %v1017_v27 = vsel %vm6052_vm11, %v4021_v21, 0.0  ;;  %vm6053_vm9 = vnez %v5949_v31  ;;  %vm6055_vm1 = vcmp.lt.s32.totalorder %v6054_v6, 7  ;;  %2577 = vmatpush3.bf16.msra.mxu0 %v4056_v41 }
 0x196   :  { %6051 = vst [vmem:[#allocation14_spill] sm:$0xff] %v4039_v20  ;;  %vm4049_vm3 = vmand %vm6055_vm1, %vm6053_vm9  ;;  %v4065_v8 = vsel %vm6059_vm0, %v660_v17, %v661_v5  ;;  %v663_v58 = vrot.slane %v6034_v23, 7  ;;  %vm6062_vm9 = vcmp.ge.s32.totalorder %v6021_v14, 1  ;;  %v6076_v61 = vmov 0 }
 0x197   :  { %6050 = vst [vmem:[#allocation13_spill] sm:$0xff] %v4035_v38  ;;  %6058 = vst [vmem:[#allocation17_spill] sm:$0xff] %v4056_v41  ;;  %v4080_v38 = vpack.c.bf16 %v1018_v56, %v1017_v27  ;;  %v761_v56 = vrot.slane %v6073_v22, 1  ;;  %1129 = vrot.lane.b32.xlu1 %v3864_v10, %s2779_s11  ;;  %v4139_v10 = vld [vmem:[%s5522_s2 + $0x10] sm:$0xff]   ;;  %v6123_v15 = vsel %vm3850_vm2, %v3954_v18, 0.0  ;;  %v6127_v24 = vmov 0 }
 0x198   :  { %vm6060_vm1 = vmmov %vm6059_vm0  ;;  %vm6066_vm0 = vnez %v5998_v53  ;;  %6084 = vst [vmem:[#allocation77_spill] sm:$0xff] %v4139_v10  ;;  %1105 = vrot.lane.b32.xlu0 %v3763_v1, %s2778_s29  ;;  %2578 = vmatprep.subr.bf16.mxu0 %v4139_v10 }
 0x199   :  { %v4069_v36 = vsel %vm6060_vm1, %v659_v47, %v660_v17  ;;  %vm4076_vm15 = vmand %vm6062_vm9, %vm6052_vm11  ;;  %6065 = vst [vmem:[#allocation19_spill] sm:$0xff] %v4080_v38  ;;  %v1056_v17 = vsel %vm3929_vm12, %v4065_v8, 0.0  ;;  %v4090_v47 = vsel %vm6060_vm1, %v661_v5, %v662_v40  ;;  %vm6067_vm9 = vcmp.ge.s32.totalorder %v6028_v35, 1  ;;  %2579 = vmatpush3.bf16.msra.mxu0 %v4139_v10 }
 0x19a   :  { %6061 = vst [vmem:[#allocation18_spill] sm:$0xff] %v4069_v36  ;;  %v1055_v31 = vsel %vm6066_vm0, %v4069_v36, 0.0  ;;  %vm4096_vm11 = vmand %vm6067_vm9, %vm3806_vm14  ;;  %v1057_v5 = vsel %vm3961_vm7, %v4090_v47, 0.0  ;;  %vm6074_vm12 = vnez %v5977_v50  ;;  %v664_v36 = vrot.slane %v6073_v22, 7  ;;  %v6104_v50 = vld [vmem:[#allocation9_spill] sm:$0xff] }
 0x19b   :  { %v4101_v27 = vpack.c.bf16 %v1056_v17, %v1055_v31  ;;  %vm6071_vm0 = vmmov %vm6060_vm1  ;;  %vm6075_vm1 = vcmp.ge.s32.totalorder %v6035_v28, 1  ;;  %v6078_v31 = vld [vmem:[#allocation35_spill] sm:$0xff]  ;;  %v6079_v17 = vld [vmem:[#allocation41_spill] sm:$0xff]  ;;  %vm6080_vm7 = vnez %v5987_v32  ;;  %1109 = vrot.lane.b32.xlu1 %v3970_v26, %s2778_s29  ;;  %v807_v42 = vsel %vm4076_vm15, %v3979_v60, 0.0 }
 0x19c   :  { %v4105_v53 = vsel %vm6071_vm0, %v662_v40, %v663_v58  ;;  %vm4115_vm9 = vmand %vm6075_vm1, %vm6074_vm12  ;;  %v762_v55 = vrot.slane %v6078_v31, 1  ;;  %v763_v33 = vrot.slane %v6079_v17, 1  ;;  %vm6081_vm0 = vcmp.ge.s32.totalorder %v6040_v12, 1  ;;  %v4231_v26 = vld [vmem:[%s5522_s2 + $0x18] sm:$0xff]   ;;  %1107 = vrot.lane.b32.xlu0 %v3866_v29, %s2778_s29 }
 0x19d   :  { %6070 = vst [vmem:[#allocation75_spill] sm:$0xff] %v4101_v27  ;;  %6072 = vst [vmem:[#allocation76_spill] sm:$0xff] %v4105_v53  ;;  %v6077_v61 = vsel %vm4115_vm9, 4294967295, %v6076_v61  ;;  %v1058_v40 = vsel %vm3985_vm8, %v4105_v53, 0.0  ;;  %v6082_v27 = vmov 0  ;;  %vm6086_vm8 = vcmp.lt.s32.totalorder %v2997_v11, 7  ;;  %2580 = vmatprep.subr.bf16.mxu0 %v4231_v26 }
 0x19e   :  { %vm4132_vm1 = vmand %vm6081_vm0, %vm6080_vm7  ;;  %v4143_v51 = vpack.c.bf16 %v1058_v40, %v1057_v5  ;;  %v4147_v41 = vsel %vm6086_vm8, %v760_v46, %v761_v56  ;;  %v665_v22 = vrot.slane %v6078_v31, 7  ;;  %v666_v38 = vrot.slane %v6079_v17, 7  ;;  %2581 = vmatpush3.bf16.msra.mxu0 %v4231_v26  ;;  %v6202_v60 = vld [vmem:[#allocation36_spill] sm:$0xff] }
 0x19f   :  { %v6083_v27 = vsel %vm4132_vm1, 4294967295, %v6082_v27  ;;  %6087 = vst [vmem:[#allocation79_spill] sm:$0xff] %v4147_v41  ;;  %vm6088_vm0 = vcmp.ge.s32.totalorder %v6046_v62, 1  ;;  %v6089_v53 = vmov 0  ;;  %vm6091_vm1 = vmmov %vm6086_vm8  ;;  %v1019_v46 = vsel %vm6074_vm12, %v4147_v41, 0.0 }
 0x1a0   :  { %6085 = vst [vmem:[#allocation78_spill] sm:$0xff] %v4143_v51  ;;  %vm4155_vm14 = vmand %vm6088_vm0, %vm3912_vm5  ;;  %v4161_v1 = vsel %vm6091_vm1, %v761_v56, %v762_v55  ;;  %v6095_v40 = vrot.slane %v3405_v63, 1  ;;  %vm6098_vm0 = vnez %v6013_v39  ;;  %v6106_v51 = vmov 0  ;;  %1131 = vrot.lane.b32.xlu0 %v3972_v19, %s2779_s11  ;;  %v6186_v56 = vld [vmem:[#allocation8_spill] sm:$0xff] }
 0x1a1   :  { %v6090_v53 = vsel %vm4155_vm14, 4294967295, %v6089_v53  ;;  %6092 = vst [vmem:[#allocation80_spill] sm:$0xff] %v4161_v1  ;;  %vm6093_vm8 = vmmov %vm6091_vm1  ;;  %vm6099_vm14 = vcmp.ge.s32.totalorder %v6054_v6, 1  ;;  %vm6147_vm15 = vcmp.ge.s32.totalorder %v6021_v14, 1  ;;  %v6168_v19 = vmov 0 }
 0x1a2   :  { %v4168_v5 = vsel %vm6093_vm8, %v762_v55, %v763_v33  ;;  %vm6096_vm9 = vmmov %vm6091_vm1  ;;  %v1020_v55 = vsel %vm6080_vm7, %v4161_v1, 0.0  ;;  %vm6105_vm8 = vcmp.ge.s32.totalorder %v6104_v50, 1  ;;  %vm6120_vm7 = vcmp.ge.s32.totalorder %v3114_v0, 1 }
 0x1a3   :  { %6094 = vst [vmem:[#allocation81_spill] sm:$0xff] %v4168_v5  ;;  %v4174_v17 = vsel %vm6096_vm9, %v763_v33, %v6095_v40  ;;  %vm4180_vm1 = vmand %vm6099_vm14, %vm6098_vm0  ;;  %v1021_v31 = vsel %vm3912_vm5, %v4168_v5, 0.0  ;;  %vm6102_vm9 = vcmp.lt.s32.totalorder %v2997_v11, 1  ;;  %vm6103_vm14 = vnez %v5813_v45 }
 0x1a4   :  { %6097 = vst [vmem:[#allocation82_spill] sm:$0xff] %v4174_v17  ;;  %v1022_v33 = vsel %vm6098_vm0, %v4174_v17, 0.0  ;;  %v4196_v40 = vsel %vm6102_vm9, %v664_v36, %v665_v22  ;;  %vm4202_vm12 = vmand %vm6105_vm8, %vm6103_vm14  ;;  %v4209_v48 = vpack.c.bf16 %v1020_v55, %v1019_v46  ;;  %v4215_v32 = vsel %vm6102_vm9, %v663_v58, %v664_v36  ;;  %v6109_v17 = vld [vmem:[#allocation39_spill] sm:$0xff] }
 0x1a5   :  { %v6107_v51 = vsel %vm4202_vm12, 4294967295, %v6106_v51  ;;  %v4211_v39 = vpack.c.bf16 %v1022_v33, %v1021_v31  ;;  %v1060_v45 = vsel %vm4012_vm13, %v4196_v40, 0.0  ;;  %vm6110_vm8 = vnez %v6109_v17  ;;  %6115 = vst [vmem:[#allocation39_spill] sm:$0xff] %v4231_v26  ;;  %vm6116_vm13 = vmmov %vm6102_vm9 }
 0x1a6   :  { %6108 = vst [vmem:[#allocation9_spill] sm:$0xff] %v6107_v51  ;;  %v6111_v51 = vld [vmem:[#allocation10_spill] sm:$0xff]  ;;  %v1059_v58 = vsel %vm4004_vm10, %v4215_v32, 0.0  ;;  %v4240_v2 = vsel %vm6116_vm13, %v665_v22, %v666_v38  ;;  %v6117_v36 = vrot.slane %v3405_v63, 7  ;;  %v6124_v22 = vsel %vm3876_vm6, %v3950_v4, 0.0 }
 0x1a7   :  { %vm6112_vm0 = vcmp.ge.s32.totalorder %v6111_v51, 1  ;;  %v1066_v46 = vpack.c.bf16 %v6124_v22, %v6123_v15  ;;  %v4264_v55 = vpack.c.bf16 %v1060_v45, %v1059_v58  ;;  %vm6125_vm10 = vnez %v5936_v25 }
 0x1a8   :  { %vm4224_vm5 = vmand %vm6112_vm0, %vm6110_vm8  ;;  %vm6129_vm6 = vnez %v5919_v30  ;;  %vm6130_vm13 = vcmp.ge.s32.totalorder %v6007_v52, 1  ;;  %v6131_v45 = vmov 0  ;;  %v808_v58 = vsel %vm4096_vm11, %v4021_v21, 0.0 }
 0x1a9   :  { %vm6118_vm0 = vmmov %vm6102_vm9  ;;  %vm6119_vm9 = vnez %v5870_v54  ;;  %v6143_v15 = vmov 0  ;;  %1133 = vrot.lane.b32.xlu1 %v1066_v46, %s2779_s11  ;;  %v4323_v23 = vpack.c.bf16 %v808_v58, %v807_v42  ;;  %vm6146_vm11 = vnez %v5903_v13 }
 0x1aa   :  { %v4246_v31 = vsel %vm6118_vm0, %v666_v38, %v6117_v36  ;;  %vm4252_vm8 = vmand %vm6120_vm7, %vm6119_vm9  ;;  %v1061_v38 = vsel %vm4029_vm4, %v4240_v2, 0.0  ;;  %vm6126_vm7 = vcmp.ge.s32.totalorder %v5995_v16, 1  ;;  %vm6133_vm4 = vnez %v5880_v49 }
 0x1ab   :  { %v1062_v33 = vsel %vm4049_vm3, %v4246_v31, 0.0  ;;  %vm4276_vm2 = vmand %vm6126_vm7, %vm6125_vm10  ;;  %vm6134_vm3 = vcmp.ge.s32.totalorder %v3119_v59, 1  ;;  %vm6137_vm7 = vnez %v5883_v57  ;;  %v6139_v36 = vmov 0  ;;  %6145 = vst [vmem:[#allocation10_spill] sm:$0xff] %v4323_v23 }
 0x1ac   :  { %v6128_v24 = vsel %vm4276_vm2, 4294967295, %v6127_v24  ;;  %vm4284_vm0 = vmand %vm6130_vm13, %vm6129_vm6  ;;  %v4297_v7 = vpack.c.bf16 %v1062_v33, %v1061_v38  ;;  %vm6138_vm13 = vcmp.ge.s32.totalorder %v5995_v16, 1  ;;  %vm6141_vm6 = vnez %v6005_v34  ;;  %v4347_v38 = vld [vmem:[%s5522_s2 + $0x20] sm:$0xff]  }
 0x1ad   :  { %v6132_v45 = vsel %vm4284_vm0, 4294967295, %v6131_v45  ;;  %vm4292_vm9 = vmand %vm6134_vm3, %vm6133_vm4  ;;  %vm6142_vm10 = vcmp.ge.s32.totalorder %v6007_v52, 1  ;;  %v831_v37 = vsel %vm6146_vm11, %v4065_v8, 0.0  ;;  %v6148_v22 = vmov 0  ;;  %6154 = vst [vmem:[#allocation83_spill] sm:$0xff] %v4347_v38  ;;  %2582 = vmatprep.subr.bf16.mxu0 %v4347_v38 }
 0x1ae   :  { %vm4309_vm3 = vmand %vm6138_vm13, %vm6137_vm7  ;;  %v6152_v46 = vmov 0  ;;  %v6159_v58 = vmov 0  ;;  %v812_v63 = vsel %vm4180_vm1, %v4168_v5, 0.0  ;;  %vm6187_vm1 = vcmp.ge.s32.totalorder %v6186_v56, 1  ;;  %v6192_v56 = vld [vmem:[#allocation33_spill] sm:$0xff]  ;;  %2583 = vmatpush3.bf16.msra.mxu0 %v4347_v38 }
 0x1af   :  { %v6140_v36 = vsel %vm4309_vm3, 4294967295, %v6139_v36  ;;  %vm4317_vm4 = vmand %vm6142_vm10, %vm6141_vm6  ;;  %vm6150_vm10 = vnez %v5911_v9  ;;  %vm6151_vm6 = vcmp.ge.s32.totalorder %v6028_v35, 1  ;;  %vm6161_vm3 = vnez %v5925_v43 }
 0x1b0   :  { %v6144_v15 = vsel %vm4317_vm4, 4294967295, %v6143_v15  ;;  %vm4332_vm13 = vmand %vm6147_vm15, %vm6146_vm11  ;;  %v832_v13 = vsel %vm6150_vm10, %v4090_v47, 0.0  ;;  %vm6155_vm11 = vnez %v6077_v61  ;;  %vm6157_vm15 = vnez %v5922_v3  ;;  %v6165_v61 = vld [vmem:[#allocation62_spill] sm:$0xff] }
 0x1b1   :  { %v6149_v22 = vsel %vm4332_vm13, 4294967295, %v6148_v22  ;;  %vm4340_vm4 = vmand %vm6151_vm6, %vm6150_vm10  ;;  %v809_v33 = vsel %vm6155_vm11, %v4039_v20, 0.0  ;;  %vm6156_vm6 = vnez %v6083_v27  ;;  %vm6162_vm10 = vcmp.ge.s32.totalorder %v6040_v12, 1 }
 0x1b2   :  { %v6153_v46 = vsel %vm4340_vm4, 4294967295, %v6152_v46  ;;  %v810_v42 = vsel %vm6156_vm6, %v4147_v41, 0.0  ;;  %vm6158_vm4 = vcmp.ge.s32.totalorder %v6035_v28, 1  ;;  %vm4372_vm7 = vmand %vm6162_vm10, %vm6161_vm3  ;;  %v6163_v9 = vmov 0  ;;  %v6173_v41 = vld [vmem:[#allocation6_spill] sm:$0xff] }
 0x1b3   :  { %vm4364_vm13 = vmand %vm6158_vm4, %vm6157_vm15  ;;  %v6164_v9 = vsel %vm4372_vm7, 4294967295, %v6163_v9  ;;  %vm6166_vm11 = vnez %v6165_v61  ;;  %vm6167_vm6 = vcmp.ge.s32.totalorder %v6046_v62, 1  ;;  %v4384_v27 = vpack.c.bf16 %v832_v13, %v831_v37  ;;  %v6178_v37 = vld [vmem:[#allocation42_spill] sm:$0xff]  ;;  %v6180_v13 = vld [vmem:[#allocation7_spill] sm:$0xff] }
 0x1b4   :  { %v6160_v58 = vsel %vm4364_vm13, 4294967295, %v6159_v58  ;;  %vm4380_vm0 = vmand %vm6167_vm6, %vm6166_vm11  ;;  %v4386_v11 = vpack.c.bf16 %v810_v42, %v809_v33  ;;  %vm6172_vm4 = vnez %v6090_v53  ;;  %vm6174_vm10 = vnez %v6173_v41  ;;  %v6184_v53 = vld [vmem:[#allocation44_spill] sm:$0xff]  ;;  %v4463_v41 = vld [vmem:[%s5522_s2 + $0x28] sm:$0xff]  }
 0x1b5   :  { %v6169_v19 = vsel %vm4380_vm0, 4294967295, %v6168_v19  ;;  %6170 = vst [vmem:[#allocation62_spill] sm:$0xff] %v4384_v27  ;;  %v811_v26 = vsel %vm6172_vm4, %v4161_v1, 0.0  ;;  %vm6175_vm7 = vcmp.ge.s32.totalorder %v6054_v6, 1  ;;  %vm6179_vm0 = vnez %v6178_v37  ;;  %v6191_v27 = vld [vmem:[#allocation76_spill] sm:$0xff]  ;;  %v6201_v1 = vld [vmem:[#allocation54_spill] sm:$0xff]  ;;  %2584 = vmatprep.subr.bf16.mxu0 %v4463_v41 }
 0x1b6   :  { %6171 = vst [vmem:[#allocation84_spill] sm:$0xff] %v4386_v11  ;;  %vm4398_vm6 = vmand %vm6175_vm7, %vm6174_vm10  ;;  %vm6181_vm13 = vcmp.ge.s32.totalorder %v6180_v13, 1  ;;  %vm6185_vm4 = vnez %v6184_v53  ;;  %v4419_v11 = vpack.c.bf16 %v812_v63, %v811_v26  ;;  %v833_v37 = vsel %vm6157_vm15, %v6191_v27, 0.0  ;;  %v6197_v63 = vld [vmem:[#allocation19_spill] sm:$0xff]  ;;  %v6199_v26 = vld [vmem:[#allocation82_spill] sm:$0xff]  ;;  %2585 = vmatpush3.bf16.msra.mxu0 %v4463_v41 }
 0x1b7   :  { %vm4406_vm2 = vmand %vm6181_vm13, %vm6179_vm0  ;;  %v834_v13 = vsel %vm6161_vm3, %v4215_v32, 0.0  ;;  %v835_v53 = vsel %vm6166_vm11, %v4196_v40, 0.0  ;;  %vm6193_vm7 = vnez %v6192_v56  ;;  %vm6194_vm13 = vcmp.ge.s32.totalorder %v6104_v50, 1  ;;  %1113 = vrot.lane.b32.xlu1 %v6197_v63, %s2778_s29  ;;  %6207 = vst [vmem:[#allocation33_spill] sm:$0xff] %v4463_v41  ;;  %v6211_v61 = vld [vmem:[#allocation51_spill] sm:$0xff]  ;;  %v6223_v56 = vld [vmem:[#allocation69_spill] sm:$0xff] }
 0x1b8   :  { %vm4414_vm14 = vmand %vm6187_vm1, %vm6185_vm4  ;;  %6190 = vst [vmem:[#allocation6_spill] sm:$0xff] %v4419_v11  ;;  %v4441_v3 = vpack.c.bf16 %v834_v13, %v833_v37  ;;  %v836_v43 = vsel %vm6174_vm10, %v4240_v2, 0.0  ;;  %v797_v11 = vsel %vm4202_vm12, %v6199_v26, 0.0  ;;  %v798_v21 = vsel %vm4224_vm5, %v6201_v1, 0.0  ;;  %v6208_v37 = vld [vmem:[#allocation13_spill] sm:$0xff]  ;;  %v6216_v1 = vld [vmem:[#allocation52_spill] sm:$0xff] }
 0x1b9   :  { %vm4434_vm1 = vmand %vm6194_vm13, %vm6193_vm7  ;;  %vm6203_vm3 = vnez %v6202_v60  ;;  %vm6204_vm15 = vcmp.ge.s32.totalorder %v6111_v51, 1  ;;  %1111 = vrot.lane.b32.xlu0 %v6208_v37, %s2778_s29  ;;  %v4467_v13 = vpack.c.bf16 %v836_v43, %v835_v53  ;;  %v4469_v10 = vpack.c.bf16 %v798_v21, %v797_v11  ;;  %v6221_v11 = vld [vmem:[#allocation57_spill] sm:$0xff]  ;;  %v6222_v43 = vld [vmem:[#allocation66_spill] sm:$0xff] }
 0x1ba   :  { %6198 = vst [vmem:[#allocation76_spill] sm:$0xff] %v4441_v3  ;;  %vm4456_vm11 = vmand %vm6204_vm15, %vm6203_vm3  ;;  %vm6212_vm5 = vnez %v6211_v61  ;;  %vm6213_vm12 = vcmp.ge.s32.totalorder %v3114_v0, 1  ;;  %v6214_v38 = vmov 0  ;;  %v821_v3 = vsel %vm6193_vm7, %v4246_v31, 0.0  ;;  %v6226_v26 = vld [vmem:[#allocation11_spill] sm:$0xff]  ;;  %v6230_v60 = vld [vmem:[#allocation38_spill] sm:$0xff] }
 0x1bb   :  { %6209 = vst [vmem:[#allocation19_spill] sm:$0xff] %v4467_v13  ;;  %6210 = vst [vmem:[#allocation9_spill] sm:$0xff] %v4469_v10  ;;  %vm6217_vm13 = vnez %v6216_v1  ;;  %vm6218_vm15 = vcmp.ge.s32.totalorder %v3119_v59, 1  ;;  %v6219_v53 = vmov 0  ;;  %v822_v21 = vsel %vm6203_vm3, %v6221_v11, 0.0  ;;  %v6224_v13 = vld [vmem:[#allocation45_spill] sm:$0xff] }
 0x1bc   :  { %vm4475_vm10 = vmand %vm6213_vm12, %vm6212_vm5  ;;  %v803_v37 = vsel %vm4252_vm8, %v6222_v43, 0.0  ;;  %v804_v10 = vsel %vm4292_vm9, %v6223_v56, 0.0  ;;  %vm6225_vm7 = vnez %v6224_v13  ;;  %vm6227_vm12 = vcmp.ge.s32.totalorder %v6226_v26, 1  ;;  %v6239_v13 = vld [vmem:[#allocation78_spill] sm:$0xff]  ;;  %v6244_v56 = vld [vmem:[#allocation12_spill] sm:$0xff] }
 0x1bd   :  { %v6215_v38 = vsel %vm4475_vm10, 4294967295, %v6214_v38  ;;  %vm4486_vm4 = vmand %vm6218_vm15, %vm6217_vm13  ;;  %vm6231_vm3 = vnez %v6230_v60  ;;  %vm6232_vm0 = vcmp.lt.s32.totalorder %v6104_v50, 7  ;;  %vm6235_vm8 = vnez %v6109_v17  ;;  %1137 = vrot.lane.b32.xlu1 %v6239_v13, %s2779_s11  ;;  %v6242_v50 = vld [vmem:[#allocation49_spill] sm:$0xff]  ;;  %v4542_v17 = vld [vmem:[%s5522_s2 + $0x30] sm:$0xff]  }
 0x1be   :  { %v6220_v53 = vsel %vm4486_vm4, 4294967295, %v6219_v53  ;;  %vm4504_vm15 = vmand %vm6227_vm12, %vm6225_vm7  ;;  %vm6236_vm9 = vcmp.lt.s32.totalorder %v6111_v51, 7  ;;  %v4527_v41 = vpack.c.bf16 %v822_v21, %v821_v3  ;;  %v4529_v60 = vpack.c.bf16 %v804_v10, %v803_v37  ;;  %v6248_v51 = vld [vmem:[#allocation75_spill] sm:$0xff]  ;;  %v6249_v3 = vld [vmem:[#allocation68_spill] sm:$0xff]  ;;  %2586 = vmatprep.subr.bf16.mxu0 %v4542_v17 }
 0x1bf   :  { %vm4513_vm4 = vmand %vm6232_vm0, %vm6231_vm3  ;;  %vm6243_vm0 = vnez %v6242_v50  ;;  %vm6245_vm12 = vcmp.ge.s32.totalorder %v6244_v56, 1  ;;  %1135 = vrot.lane.b32.xlu0 %v6248_v51, %s2779_s11  ;;  %v6251_v10 = vld [vmem:[#allocation47_spill] sm:$0xff]  ;;  %v6253_v37 = vld [vmem:[#allocation74_spill] sm:$0xff]  ;;  %2587 = vmatpush3.bf16.msra.mxu0 %v4542_v17 }
 0x1c0   :  { %vm4521_vm10 = vmand %vm6236_vm9, %vm6235_vm8  ;;  %6240 = vst [vmem:[#allocation36_spill] sm:$0xff] %v4527_v41  ;;  %vm6250_vm8 = vnez %v6128_v24  ;;  %vm6252_vm9 = vnez %v6132_v45  ;;  %v827_v50 = vsel %vm6212_vm5, %v6253_v37, 0.0  ;;  %v6254_v41 = vld [vmem:[#allocation48_spill] sm:$0xff]  ;;  %vm6260_vm5 = vnez %v6140_v36  ;;  %v6301_v42 = vld [vmem:[#allocation65_spill] sm:$0xff] }
 0x1c1   :  { %6241 = vst [vmem:[#allocation13_spill] sm:$0xff] %v4529_v60  ;;  %vm4535_vm3 = vmand %vm6245_vm12, %vm6243_vm0  ;;  %v805_v13 = vsel %vm6250_vm8, %v6249_v3, 0.0  ;;  %v806_v21 = vsel %vm6252_vm9, %v6251_v10, 0.0  ;;  %v828_v60 = vsel %vm6217_vm13, %v3954_v18, 0.0  ;;  %vm6255_vm12 = vnez %v6254_v41  ;;  %1117 = vrot.lane.b32.xlu1 %v4211_v39, %s2778_s29  ;;  %v6300_v33 = vld [vmem:[#allocation60_spill] sm:$0xff]  ;;  %v6333_v51 = vld [vmem:[#allocation55_spill] sm:$0xff] }
 0x1c2   :  { %vm6256_vm0 = vcmp.lt.s32.totalorder %v6226_v26, 7  ;;  %vm6259_vm8 = vnez %v5883_v57  ;;  %v4569_v45 = vpack.c.bf16 %v828_v60, %v827_v50  ;;  %v708_v61 = vsel %vm6260_vm5, %v3954_v18, 0.0  ;;  %v6262_v26 = vld [vmem:[#allocation50_spill] sm:$0xff] }
 0x1c3   :  { %vm4562_vm7 = vmand %vm6256_vm0, %vm6255_vm12  ;;  %v829_v24 = vsel %vm6259_vm8, %v3950_v4, 0.0  ;;  %vm6261_vm13 = vnez %v6144_v15  ;;  %vm6263_vm0 = vnez %v6262_v26  ;;  %vm6264_vm9 = vcmp.lt.s32.totalorder %v6244_v56, 7  ;;  %v6267_v57 = vld [vmem:[#allocation18_spill] sm:$0xff]  ;;  %v4600_v15 = vld [vmem:[%s5522_s2 + $0x38] sm:$0xff]   ;;  %1115 = vrot.lane.b32.xlu0 %v4209_v48, %s2778_s29 }
 0x1c4   :  { %v709_v1 = vsel %vm6261_vm13, %v3950_v4, 0.0  ;;  %vm4582_vm12 = vmand %vm6264_vm9, %vm6263_vm0  ;;  %v6265_v41 = vmov 0  ;;  %vm6268_vm8 = vnez %v6005_v34  ;;  %vm6269_vm5 = vnez %v6149_v22  ;;  %2588 = vmatprep.subr.bf16.mxu0 %v4600_v15  ;;  %v6312_v50 = vld [vmem:[#allocation30_spill] sm:$0xff] }
 0x1c5   :  { %v6266_v41 = vsel %vm4582_vm12, 4294967295, %v6265_v41  ;;  %v830_v60 = vsel %vm6268_vm8, %v6267_v57, 0.0  ;;  %v4589_v36 = vpack.c.bf16 %v709_v1, %v708_v61  ;;  %v710_v4 = vsel %vm6269_vm5, %v6267_v57, 0.0  ;;  %2589 = vmatpush3.bf16.msra.mxu0 %v4600_v15  ;;  %1141 = vrot.lane.b32.xlu1 %v4297_v7, %s2779_s11  ;;  %v6306_v7 = vld [vmem:[#allocation70_spill] sm:$0xff]  ;;  %v6313_v61 = vld [vmem:[#allocation31_spill] sm:$0xff] }
 0x1c6   :  { %vm6270_vm13 = vnez %v6153_v46  ;;  %vm6271_vm9 = vnez %v5870_v54  ;;  %vm6272_vm8 = vcmp.lt.s32.totalorder %v3114_v0, 7  ;;  %v6273_v34 = vmov 0  ;;  %v6314_v1 = vld [vmem:[#allocation27_spill] sm:$0xff]  ;;  %v6340_v0 = vld [vmem:[#allocation46_spill] sm:$0xff] }
 0x1c7   :  { %v711_v18 = vsel %vm6270_vm13, %v4065_v8, 0.0  ;;  %vm4607_vm0 = vmand %vm6272_vm8, %vm6271_vm9  ;;  %vm6275_vm5 = vnez %v6160_v58  ;;  %vm6276_vm13 = vnez %v6164_v9  ;;  %vm6277_vm12 = vnez %v6169_v19  ;;  %v6282_v58 = vld [vmem:[#allocation56_spill] sm:$0xff]  ;;  %v6291_v19 = vld [vmem:[#allocation73_spill] sm:$0xff]  ;;  %1139 = vrot.lane.b32.xlu0 %v4264_v55, %s2779_s11 }
 0x1c8   :  { %v6274_v34 = vsel %vm4607_vm0, 4294967295, %v6273_v34  ;;  %v4613_v22 = vpack.c.bf16 %v711_v18, %v710_v4  ;;  %v712_v8 = vsel %vm6275_vm5, %v4090_v47, 0.0  ;;  %v713_v46 = vsel %vm6276_vm13, %v6191_v27, 0.0  ;;  %v6315_v4 = vld [vmem:[#allocation71_spill] sm:$0xff]  ;;  %v6321_v18 = vld [vmem:[#allocation41_spill] sm:$0xff]  ;;  %v6347_v63 = vld [vmem:[#allocation62_spill] sm:$0xff] }
 0x1c9   :  { %v714_v54 = vsel %vm6277_vm12, %v4215_v32, 0.0  ;;  %vm6278_vm9 = vnez %v5880_v49  ;;  %vm6279_vm8 = vcmp.lt.s32.totalorder %v3119_v59, 7  ;;  %v4634_v39 = vpack.c.bf16 %v713_v46, %v712_v8  ;;  %v6322_v46 = vld [vmem:[#allocation53_spill] sm:$0xff]  ;;  %v6350_v55 = vld [vmem:[#allocation7_spill] sm:$0xff] }
 0x1ca   :  { %vm4628_vm0 = vmand %vm6279_vm8, %vm6278_vm9  ;;  %v715_v47 = vsel %vm4398_vm6, %v4196_v40, 0.0  ;;  %v703_v32 = vsel %vm4414_vm14, %v6282_v58, 0.0  ;;  %v702_v59 = vsel %vm4406_vm2, %v6221_v11, 0.0  ;;  %vm6283_vm12 = vnez %v5936_v25 }
 0x1cb   :  { %vm6284_vm5 = vcmp.lt.s32.totalorder %v5995_v16, 7  ;;  %v4654_v49 = vpack.c.bf16 %v715_v47, %v714_v54  ;;  %v4656_v20 = vpack.c.bf16 %v703_v32, %v702_v59  ;;  %v700_v40 = vsel %vm4434_vm1, %v4240_v2, 0.0  ;;  %v6294_v2 = vld [vmem:[#allocation61_spill] sm:$0xff]  ;;  %v6329_v47 = vld [vmem:[#allocation10_spill] sm:$0xff]  ;;  %v6335_v59 = vld [vmem:[#allocation20_spill] sm:$0xff] }
 0x1cc   :  { %vm4650_vm13 = vmand %vm6284_vm5, %vm6283_vm12  ;;  %v701_v9 = vsel %vm4456_vm11, %v4246_v31, 0.0  ;;  %vm6287_vm14 = vnez %v5919_v30  ;;  %vm6288_vm2 = vcmp.lt.s32.totalorder %v6007_v52, 7  ;;  %vm6292_vm9 = vnez %v6215_v38  ;;  %v6295_v52 = vld [vmem:[#allocation63_spill] sm:$0xff]  ;;  %887 = vrot.lane.b32.xlu1 %v6329_v47, %s2779_s11  ;;  %v6330_v32 = vld [vmem:[#allocation69_spill] sm:$0xff] }
 0x1cd   :  { %vm4668_vm6 = vmand %vm6288_vm2, %vm6287_vm14  ;;  %v4672_v16 = vpack.c.bf16 %v701_v9, %v700_v40  ;;  %v706_v27 = vsel %vm6292_vm9, %v6291_v19, 0.0  ;;  %vm6293_vm1 = vnez %v6220_v53  ;;  %v704_v30 = vsel %vm4504_vm15, %v6294_v2, 0.0  ;;  %v6346_v31 = vld [vmem:[#allocation54_spill] sm:$0xff]  ;;  %v6353_v47 = vld [vmem:[#allocation43_spill] sm:$0xff] }
 0x1ce   :  { %v707_v5 = vsel %vm6293_vm1, %v6253_v37, 0.0  ;;  %vm6296_vm11 = vnez %v6295_v52  ;;  %vm6297_vm8 = vcmp.lt.s32.totalorder %v6021_v14, 7  ;;  %v705_v6 = vsel %vm4535_vm3, %v6300_v33, 0.0  ;;  %v6342_v52 = vld [vmem:[#allocation79_spill] sm:$0xff]  ;;  %v6352_v54 = vld [vmem:[#allocation6_spill] sm:$0xff] }
 0x1cf   :  { %vm4688_vm12 = vmand %vm6297_vm8, %vm6296_vm11  ;;  %v4694_v38 = vpack.c.bf16 %v707_v5, %v706_v27  ;;  %vm6302_vm15 = vnez %v6301_v42  ;;  %vm6303_vm5 = vcmp.lt.s32.totalorder %v6028_v35, 7  ;;  %v4709_v14 = vpack.c.bf16 %v705_v6, %v704_v30  ;;  %v6311_v35 = vld [vmem:[#allocation34_spill] sm:$0xff]  ;;  %v6343_v42 = vld [vmem:[#allocation80_spill] sm:$0xff] }
 0x1d0   :  { %vm4703_vm14 = vmand %vm6303_vm5, %vm6302_vm15  ;;  %vm6307_vm2 = vnez %v6306_v7  ;;  %vm6308_vm9 = vcmp.lt.s32.totalorder %v6035_v28, 7  ;;  %v817_v53 = vpack.c.bf16 %v806_v21, %v805_v13  ;;  %v841_v11 = vpack.c.bf16 %v830_v60, %v829_v24  ;;  %v6320_v28 = vld [vmem:[#allocation35_spill] sm:$0xff]  ;;  %v6341_v5 = vld [vmem:[#allocation14_spill] sm:$0xff]  ;;  %911 = vrot.lane.b32.xlu1 %v6347_v63, %s2777_s1 }
 0x1d1   :  { %vm4715_vm1 = vmand %vm6308_vm9, %vm6307_vm2  ;;  %v1004_v37 = vpack.c.bf16 %v6312_v50, %v6311_v35  ;;  %v1005_v57 = vpack.c.bf16 %v6314_v1, %v6313_v61  ;;  %vm6316_vm3 = vnez %v6315_v4  ;;  %vm6317_vm11 = vcmp.lt.s32.totalorder %v6040_v12, 7  ;;  %v6323_v21 = vld [vmem:[#allocation59_spill] sm:$0xff]  ;;  %v6345_v4 = vld [vmem:[#allocation82_spill] sm:$0xff] }
 0x1d2   :  { %vm4727_vm8 = vmand %vm6317_vm11, %vm6316_vm3  ;;  %v1006_v8 = vpack.c.bf16 %v6321_v18, %v6320_v28  ;;  %v1553_v13 = vsel %vm4513_vm4, %v6322_v46, 0.0  ;;  %v1554_v24 = vsel %vm4521_vm10, %v6323_v21, 0.0  ;;  %v1557_v60 = vsel %vm4562_vm7, %v6222_v43, 0.0  ;;  %v6324_v12 = vld [vmem:[#allocation15_spill] sm:$0xff]  ;;  %885 = vrot.lane.b32.xlu0 %v817_v53, %s2779_s11  ;;  %v6344_v53 = vld [vmem:[#allocation81_spill] sm:$0xff] }
 0x1d3   :  { %vm6325_vm15 = vnez %v6324_v12  ;;  %vm6326_vm5 = vcmp.lt.s32.totalorder %v6046_v62, 7  ;;  %v4752_v29 = vpack.c.bf16 %v1554_v24, %v1553_v13  ;;  %vm6331_vm4 = vnez %v6266_v41  ;;  %v6348_v12 = vld [vmem:[#allocation37_spill] sm:$0xff]  ;;  %v6360_v40 = vld [vmem:[#allocation42_spill] sm:$0xff] }
 0x1d4   :  { %vm4746_vm2 = vmand %vm6326_vm5, %vm6325_vm15  ;;  %v1558_v44 = vsel %vm6331_vm4, %v6330_v32, 0.0  ;;  %vm6332_vm10 = vnez %v6274_v34  ;;  %v1560_v62 = vsel %vm4628_vm0, %v6251_v10, 0.0  ;;  %vm6334_vm7 = vnez %v6333_v51  ;;  %v6339_v34 = vld [vmem:[#allocation16_spill] sm:$0xff]  ;;  %891 = vrot.lane.b32.xlu1 %v6352_v54, %s2779_s11  ;;  %v2724_v1 = vld [vmem:[%s5522_s2 + $0x80] sm:$0xff]  }
 0x1d5   :  { %v1559_v43 = vsel %vm6332_vm10, %v6249_v3, 0.0  ;;  %vm6336_vm9 = vcmp.lt.s32.totalorder %v6335_v59, 7  ;;  %v4772_v41 = vpack.c.bf16 %v1558_v44, %v1557_v60  ;;  %v1561_v3 = vsel %vm4650_vm13, %v6339_v34, 0.0  ;;  %v6355_v32 = vld [vmem:[#allocation8_spill] sm:$0xff] }
 0x1d6   :  { %vm4767_vm3 = vmand %vm6336_vm9, %vm6334_vm7  ;;  %v4774_v9 = vpack.c.bf16 %v1560_v62, %v1559_v43  ;;  %v1562_v10 = vsel %vm4668_vm6, %v6340_v0, 0.0  ;;  %v1563_v30 = vsel %vm4688_vm12, %v6341_v5, 0.0  ;;  %v1564_v6 = vsel %vm4703_vm14, %v6342_v52, 0.0  ;;  %909 = vrot.lane.b32.xlu0 %v841_v11, %s2777_s1  ;;  %v6357_v44 = vld [vmem:[#allocation84_spill] sm:$0xff]  ;;  %v6358_v62 = vld [vmem:[#allocation19_spill] sm:$0xff] }
 0x1d7   :  { %v4782_v27 = vpack.c.bf16 %v1562_v10, %v1561_v3  ;;  %v1565_v7 = vsel %vm4715_vm1, %v6343_v42, 0.0  ;;  %v4793_v48 = vpack.c.bf16 %v1564_v6, %v1563_v30  ;;  %v1566_v25 = vsel %vm4727_vm8, %v6344_v53, 0.0  ;;  %v6359_v51 = vld [vmem:[#allocation76_spill] sm:$0xff]  ;;  %v6368_v10 = vld [vmem:[#allocation9_spill] sm:$0xff]  ;;  %v6371_v5 = vld [vmem:[#allocation58_spill] sm:$0xff] }
 0x1d8   :  { %v1567_v13 = vsel %vm4746_vm2, %v6345_v4, 0.0  ;;  %v1568_v24 = vsel %vm4767_vm3, %v6346_v31, 0.0  ;;  %v4806_v60 = vpack.c.bf16 %v1566_v25, %v1565_v7  ;;  %vm6349_vm0 = vnez %v6348_v12  ;;  %915 = vrot.lane.b32.xlu1 %v6358_v62, %s2777_s1  ;;  %v6362_v3 = vld [vmem:[#allocation44_spill] sm:$0xff]  ;;  %v6374_v7 = vld [vmem:[#allocation13_spill] sm:$0xff]  ;;  %v1152_v31 = vpop.permute.xlu0 %1151 }
 0x1d9   :  { %v4808_v23 = vpack.c.bf16 %v1568_v24, %v1567_v13  ;;  %vm6351_vm13 = vcmp.ge.s32.totalorder %v6350_v55, 1  ;;  %vm6354_vm12 = vnez %v6353_v47  ;;  %vm6356_vm14 = vcmp.ge.s32.totalorder %v6355_v32, 1  ;;  %v6372_v30 = vld [vmem:[#allocation64_spill] sm:$0xff]  ;;  %v6375_v53 = vld [vmem:[#allocation45_spill] sm:$0xff]  ;;  %v1154_v13 = vpop.permute.xlu1 %1153 }
 0x1da   :  { %vm783_vm6 = vmand %vm6351_vm13, %vm6349_vm0  ;;  %889 = vrot.lane.b32.xlu0 %v6357_v44, %s2779_s11  ;;  %vm6361_vm11 = vnez %v6360_v40  ;;  %vm6363_vm8 = vnez %v6362_v3  ;;  %vm6369_vm4 = vnez %v6262_v26  ;;  %vm6370_vm10 = vcmp.ge.s32.totalorder %v6244_v56, 1  ;;  %v6373_v6 = vld [vmem:[#allocation36_spill] sm:$0xff]  ;;  %v6377_v56 = vld [vmem:[#allocation49_spill] sm:$0xff] }
 0x1db   :  { %vm784_vm1 = vmand %vm6356_vm14, %vm6354_vm12  ;;  %v799_v43 = vsel %vm783_vm6, %v6322_v46, 0.0  ;;  %v823_v34 = vsel %vm6361_vm11, %v6282_v58, 0.0  ;;  %v824_v0 = vsel %vm6363_vm8, %v6294_v2, 0.0  ;;  %v6364_v46 = vld [vmem:[#allocation48_spill] sm:$0xff]  ;;  %vm6376_vm9 = vnez %v6375_v53 }
 0x1dc   :  { %v800_v11 = vsel %vm784_vm1, %v6323_v21, 0.0  ;;  %vm6365_vm15 = vnez %v6364_v46  ;;  %v6366_v21 = vld [vmem:[#allocation11_spill] sm:$0xff]  ;;  %vm786_vm7 = vmand %vm6370_vm10, %vm6369_vm4  ;;  %v838_v58 = vpack.c.bf16 %v824_v0, %v823_v34  ;;  %v825_v26 = vsel %vm6376_vm9, %v6300_v33, 0.0  ;;  %v1156_v63 = vpop.permute.xlu0 %1155 }
 0x1dd   :  { %v814_v59 = vpack.c.bf16 %v800_v11, %v799_v43  ;;  %vm6367_vm5 = vcmp.ge.s32.totalorder %v6366_v21, 1  ;;  %v802_v52 = vsel %vm786_vm7, %v6372_v30, 0.0  ;;  %vm6378_vm3 = vnez %v6377_v56  ;;  %v1158_v24 = vpop.permute.xlu1 %1157  ;;  %v6382_v21 = vld [vmem:[#allocation24_spill] sm:$0xff]  ;;  %v6386_v56 = vld [vmem:[#allocation25_spill] sm:$0xff] }
 0x1de   :  { %913 = vrot.lane.b32.xlu0 %v6359_v51, %s2777_s1  ;;  %vm785_vm2 = vmand %vm6367_vm5, %vm6365_vm15  ;;  %v826_v25 = vsel %vm6378_vm3, %v6291_v19, 0.0  ;;  %v6379_v51 = vld [vmem:[#allocation40_spill] sm:$0xff]  ;;  %vm941_vm0 = vcmask 523264   ;;  %vm958_vm13 = vcmask 785408   ;;  %vm6381_vm6 = vcmask 261120  }
 0x1df   :  { %879 = vrot.lane.b32.xlu1 %v814_v59, %s2779_s11  ;;  %v801_v2 = vsel %vm785_vm2, %v6371_v5, 0.0  ;;  %v839_v4 = vpack.c.bf16 %v826_v25, %v825_v26  ;;  %v6380_v59 = vld [vmem:[#allocation23_spill] sm:$0xff]  ;;  %vm6384_vm12 = vmmov %vm6381_vm6  ;;  %v6385_v26 = vld [vmem:[#allocation29_spill] sm:$0xff] }
 0x1e0   :  { %v815_v42 = vpack.c.bf16 %v802_v52, %v801_v2  ;;  %v1160_v55 = vpop.permute.xlu0 %1159  ;;  %v999_v40 = vpack.c.bf16 %v6380_v59, %v6379_v51  ;;  %v1002_v25 = vpack.c.bf16 %v6386_v56, %v6385_v26  ;;  %v6388_v51 = vld [vmem:[#allocation22_spill] sm:$0xff]  ;;  %v6389_v59 = vld [vmem:[#allocation28_spill] sm:$0xff]  ;;  %vm6391_vm14 = vmmov %vm6381_vm6 }
 0x1e1   :  { %v1162_v12 = vpop.permute.xlu1 %1161  ;;  %vm6392_vm1 = vmmov %vm6381_vm6 }
 0x1e2   :  { %877 = vrot.lane.b32.xlu0 %v6368_v10, %s2779_s11  ;;  %v6383_v10 = vld [vmem:[#allocation21_spill] sm:$0xff]  ;;  %vm6397_vm11 = vmmov %vm6392_vm1 }
 0x1e3   :  { %903 = vrot.lane.b32.xlu1 %v838_v58, %s2777_s1  ;;  %v1000_v58 = vpack.c.bf16 %v6383_v10, %v6382_v21  ;;  %vm6398_vm8 = vmmov %vm6392_vm1 }
 0x1e4   :  { %v4865_v33 = vpop.permute.xlu0 %1163  ;;  %vm6401_vm15 = vmmov %vm6392_vm1 }
 0x1e5   :  { %v4863_v54 = vpop.permute.xlu1 %1165  ;;  %vm6402_vm5 = vmmov %vm6392_vm1 }
 0x1e6   :  { %901 = vrot.lane.b32.xlu0 %v6373_v6, %s2777_s1  ;;  %vm6403_vm2 = vmmov %vm6392_vm1 }
 0x1e7   :  { %883 = vrot.lane.b32.xlu1 %v6374_v7, %s2779_s11  ;;  %vm6404_vm4 = vmmov %vm6392_vm1 }
 0x1e8   :  { %v4869_v19 = vpop.permute.xlu0 %861  ;;  %vm6405_vm10 = vmmov %vm6392_vm1 }
 0x1e9   :  { %v4867_v47 = vpop.permute.xlu1 %863  ;;  %vm6406_vm7 = vmmov %vm6392_vm1 }
 0x1ea   :  { %881 = vrot.lane.b32.xlu0 %v815_v42, %s2779_s11  ;;  %vm6407_vm9 = vmmov %vm6392_vm1 }
 0x1eb   :  { %907 = vrot.lane.b32.xlu1 %v4569_v45, %s2777_s1  ;;  %vm6408_vm3 = vmmov %vm6392_vm1 }
 0x1ed   :  { %v4871_v32 = vpop.permute.xlu1 %867  ;;  %v4873_v44 = vpop.permute.xlu0 %865 }
 0x1ee   :  { %905 = vrot.lane.b32.xlu0 %v839_v4, %s2777_s1  ;;  %v6387_v4 = vld [vmem:[#allocation72_spill] sm:$0xff] }
 0x1f5   :  { %v4875_v45 = vpop.permute.xlu1 %855 }
 0x1f7   :  { %v4877_v43 = vpop.permute.xlu0 %853 }
 0x201   :  { %v4879_v11 = vpop.permute.xlu1 %859 }
 0x202   :  { %v4881_v62 = vpop.permute.xlu0 %857 }
 0x205   :  { %v1128_v34 = vpop.permute.xlu1 %1127 }
 0x206   :  { %v1104_v3 = vpop.permute.xlu0 %1103 }
 0x207   :  { %v1169_v0 = vsel %vm6381_vm6, %v999_v40, %v1104_v3  ;;  %v6390_v40 = vld [vmem:[#allocation17_spill] sm:$0xff]  ;;  %vm6409_vm6 = vmmov %vm6392_vm1 }
 0x208   :  { %v1192_v46 = vsel %vm941_vm0, %v1169_v0, %v1128_v34 }
 0x209   :  { %v1208_v5 = vsel %vm958_vm13, %v1192_v46, %v1152_v31  ;;  %v1130_v2 = vpop.permute.xlu1 %1129  ;;  %v1001_v31 = vpack.c.bf16 %v6389_v59, %v6388_v51  ;;  %v6399_v59 = vld [vmem:[#allocation83_spill] sm:$0xff] }
 0x20a   :  { %v1106_v30 = vpop.permute.xlu0 %1105  ;;  %2558 = vmatprep.mubr.bf16.mxu1 %v1208_v5  ;;  %v6393_v5 = vld [vmem:[#allocation77_spill] sm:$0xff] }
 0x20b   :  { %v1172_v52 = vsel %vm6384_vm12, %v1000_v58, %v1106_v30  ;;  %vm6411_vm12 = vmmov %vm6392_vm1 }
 0x20c   :  { %v1194_v6 = vsel %vm941_vm0, %v1172_v52, %v1130_v2  ;;  %v6394_v52 = vld [vmem:[#allocation26_spill] sm:$0xff] }
 0x20d   :  { %v1211_v42 = vsel %vm958_vm13, %v1194_v6, %v1154_v13  ;;  %v1110_v7 = vpop.permute.xlu1 %1109  ;;  %v6395_v6 = vld [vmem:[#allocation32_spill] sm:$0xff] }
 0x20e   :  { %v1108_v53 = vpop.permute.xlu0 %1107  ;;  %2559 = vmatmul.mubr.bf16.vlgmr.msra.gmra.mrb[0].mxu1 %v1211_v42  ;;  %v1178_v34 = vsel %vm6391_vm14, %v1002_v25, %v1110_v7  ;;  %v1003_v42 = vpack.c.bf16 %v6395_v6, %v6394_v52  ;;  %v6396_v7 = vld [vmem:[#allocation39_spill] sm:$0xff]  ;;  %vm6412_vm14 = vmmov %vm6392_vm1 }
 0x20f   :  { %2654 = vmatpush3.bf16.msra.mxu1 %v6387_v4  ;;  %v1175_v0 = vsel %vm6392_vm1, %v1001_v31, %v1108_v53 }
 0x210   :  { %2647 = vmatprep.subr.bf16.mxu1 %v6390_v40 }
 0x212   :  { %v1132_v46 = vpop.permute.xlu0 %1131 }
 0x213   :  { %v1196_v21 = vsel %vm941_vm0, %v1175_v0, %v1132_v46  ;;  %2655 = vmatpush3.bf16.msra.mxu1 %v6390_v40  ;;  %v934_v46 = vsel %vm6404_vm4, %v4613_v22, %v4867_v47 }
 0x214   :  { %v1214_v58 = vsel %vm958_vm13, %v1196_v21, %v1156_v63  ;;  %2648 = vmatprep.subr.bf16.mxu1 %v6393_v5 }
 0x215   :  { %2562 = vmatprep.mubr.bf16.mxu1 %v1214_v58 }
 0x217   :  { %2656 = vmatpush3.bf16.msra.mxu1 %v6393_v5  ;;  %v940_v5 = vsel %vm6406_vm7, %v4654_v49, %v4871_v32  ;;  %v919_v49 = vsel %vm6409_vm6, %v4672_v16, %v4877_v43  ;;  %v928_v16 = vsel %vm6392_vm1, %v4694_v38, %v4879_v11  ;;  %v2726_v38 = vld [vmem:[%s5523_s3] sm:$0xff]  }
 0x218   :  { %2649 = vmatprep.subr.bf16.mxu1 %v6396_v7  ;;  %2626 = vmatprep.subr.bf16.mxu0 %v2726_v38 }
 0x21b   :  { %v1134_v3 = vpop.permute.xlu1 %1133  ;;  %2657 = vmatpush3.bf16.msra.mxu1 %v6396_v7 }
 0x21c   :  { %v1198_v13 = vsel %vm941_vm0, %v1178_v34, %v1134_v3  ;;  %2650 = vmatprep.subr.bf16.mxu1 %v6399_v59 }
 0x21d   :  { %v1217_v10 = vsel %vm958_vm13, %v1198_v13, %v1158_v24 }
 0x21e   :  { %2563 = vmatmul.mubr.bf16.gmra.mrb[4].mxu1 %v1217_v10 }
 0x21f   :  { %2658 = vmatpush3.bf16.msra.mxu1 %v6399_v59 }
 0x229   :  { %v1114_v2 = vpop.permute.xlu1 %1113 }
 0x22a   :  { %v1184_v24 = vsel %vm6397_vm11, %v1004_v37, %v1114_v2  ;;  %v6400_v37 = vld [vmem:[#allocation33_spill] sm:$0xff]  ;;  %vm6413_vm11 = vmmov %vm6392_vm1 }
 0x22b   :  { %v1112_v30 = vpop.permute.xlu0 %1111  ;;  %2651 = vmatprep.subr.bf16.mxu1 %v6400_v37 }
 0x22c   :  { %v1181_v63 = vsel %vm6398_vm8, %v1003_v42, %v1112_v30  ;;  %2659 = vmatpush3.bf16.msra.mxu1 %v6400_v37  ;;  %vm6414_vm8 = vmmov %vm6392_vm1 }
 0x22d   :  { %2652 = vmatprep.subr.bf16.mxu1 %v4542_v17 }
 0x22f   :  { %v1138_v53 = vpop.permute.xlu1 %1137 }
 0x230   :  { %v1202_v56 = vsel %vm941_vm0, %v1184_v24, %v1138_v53  ;;  %2660 = vmatpush3.bf16.msra.mxu1 %v4542_v17 }
 0x231   :  { %v1136_v26 = vpop.permute.xlu0 %1135  ;;  %v1223_v4 = vsel %vm958_vm13, %v1202_v56, %v1162_v12  ;;  %2653 = vmatprep.subr.bf16.mxu1 %v4600_v15 }
 0x232   :  { %v1200_v25 = vsel %vm941_vm0, %v1181_v63, %v1136_v26  ;;  %v6410_v26 = vld [vmem:[#allocation67_spill] sm:$0xff] }
 0x233   :  { %v1220_v51 = vsel %vm958_vm13, %v1200_v25, %v1160_v55  ;;  %v1118_v35 = vpop.permute.xlu1 %1117 }
 0x234   :  { %2566 = vmatprep.mubr.bf16.mxu1 %v1220_v51  ;;  %v1190_v31 = vsel %vm6401_vm15, %v1006_v8, %v1118_v35  ;;  %2661 = vmatpush3.bf16.msra.mxu1 %v4600_v15  ;;  %v937_v15 = vsel %vm6405_vm10, %v4634_v39, %v4873_v44  ;;  %v922_v39 = vsel %vm6408_vm3, %v4656_v20, %v4875_v45  ;;  %vm6415_vm15 = vmmov %vm6392_vm1 }
 0x235   :  { %v1116_v50 = vpop.permute.xlu0 %1115  ;;  %2567 = vmatmul.mubr.bf16.gmra.mrb[8].mxu1 %v1223_v4  ;;  %2606 = vmatprep.subr.bf16.mxu1 %v2724_v1  ;;  %v925_v45 = vsel %vm6413_vm11, %v4709_v14, %v4881_v62  ;;  %v2727_v14 = vld [vmem:[%s5523_s3 + $0x8] sm:$0xff]  }
 0x236   :  { %v1187_v12 = vsel %vm6402_vm5, %v1005_v57, %v1116_v50  ;;  %v931_v57 = vsel %vm6403_vm2, %v4589_v36, %v4869_v19  ;;  %v2725_v36 = vld [vmem:[%s5522_s2 + $0x88] sm:$0xff]   ;;  %vm6416_vm5 = vmmov %vm6392_vm1 }
 0x237   :  { %v1142_v40 = vpop.permute.xlu1 %1141  ;;  %vm6417_vm2 = vmmov %vm6392_vm1 }
 0x238   :  { %v1206_v34 = vsel %vm941_vm0, %v1190_v31, %v1142_v40 }
 0x239   :  { %v1140_v55 = vpop.permute.xlu0 %1139  ;;  %v1229_v0 = vsel %vm958_vm13, %v1206_v34, %v4863_v54 }
 0x23a   :  { %v1204_v3 = vsel %vm941_vm0, %v1187_v12, %v1140_v55 }
 0x23b   :  { %v1226_v28 = vsel %vm958_vm13, %v1204_v3, %v4865_v33 }
 0x23c   :  { %2570 = vmatprep.mubr.bf16.mxu1 %v1226_v28 }
 0x23d   :  { %2571 = vmatmul.mubr.bf16.gmra.mrb[12].mxu1 %v1229_v0 }
 0x23e   :  { %v888_v18 = vpop.permute.xlu1 %887 }
 0x23f   :  { %v953_v13 = vsel %vm941_vm0, %v934_v46, %v888_v18 }
 0x242   :  { %v912_v8 = vpop.permute.xlu1 %911 }
 0x243   :  { %v975_v19 = vsel %vm958_vm13, %v953_v13, %v912_v8 }
 0x244   :  { %v886_v61 = vpop.permute.xlu0 %885 }
 0x245   :  { %v951_v54 = vsel %vm941_vm0, %v931_v57, %v886_v61 }
 0x246   :  { %v892_v21 = vpop.permute.xlu1 %891 }
 0x247   :  { %v957_v30 = vsel %vm941_vm0, %v940_v5, %v892_v21 }
 0x248   :  { %v910_v33 = vpop.permute.xlu0 %909 }
 0x249   :  { %v972_v17 = vsel %vm958_vm13, %v951_v54, %v910_v33 }
 0x24a   :  { %2598 = vmatprep.mubr.bf16.mxu1 %v972_v17  ;;  %v916_v22 = vpop.permute.xlu1 %915 }
 0x24b   :  { %2599 = vmatmul.mubr.bf16.vlgmr.msra.gmra.mrb[8].mxu1 %v975_v19  ;;  %v981_v52 = vsel %vm958_vm13, %v957_v30, %v916_v22 }
 0x24c   :  { %v890_v10 = vpop.permute.xlu0 %889  ;;  %2607 = vmatpush3.bf16.msra.mxu1 %v2724_v1 }
 0x24d   :  { %2608 = vmatprep.subr.bf16.mxu1 %v2725_v36  ;;  %v955_v47 = vsel %vm941_vm0, %v937_v15, %v890_v10 }
 0x250   :  { %v914_v58 = vpop.permute.xlu0 %913  ;;  %2609 = vmatpush3.bf16.msra.mxu1 %v2725_v36 }
 0x251   :  { %v978_v2 = vsel %vm958_vm13, %v955_v47, %v914_v58  ;;  %v880_v6 = vpop.permute.xlu1 %879 }
 0x252   :  { %2602 = vmatprep.mubr.bf16.mxu1 %v978_v2  ;;  %v945_v32 = vsel %vm941_vm0, %v922_v39, %v880_v6 }
 0x253   :  { %2603 = vmatmul.mubr.bf16.gmra.mrb[12].mxu1 %v981_v52 }
 0x254   :  { %v878_v42 = vpop.permute.xlu0 %877  ;;  %2610 = vmatprep.mubr.msk.bf16.mxu1 %vm6407_vm9, %v4752_v29 }
 0x255   :  { %v904_v44 = vpop.permute.xlu1 %903  ;;  %v943_v7 = vsel %vm941_vm0, %v919_v49, %v878_v42 }
 0x256   :  { %v963_v24 = vsel %vm958_vm13, %v945_v32, %v904_v44 }
 0x258   :  { %v902_v53 = vpop.permute.xlu0 %901 }
 0x259   :  { %v960_v63 = vsel %vm958_vm13, %v943_v7, %v902_v53  ;;  %v884_v29 = vpop.permute.xlu1 %883 }
 0x25a   :  { %2590 = vmatprep.mubr.bf16.mxu0 %v960_v63  ;;  %v949_v43 = vsel %vm941_vm0, %v928_v16, %v884_v29 }
 0x25b   :  { %2591 = vmatmul.mubr.bf16.vlgmr.msra.gmra.mrb[16].mxu0 %v963_v24  ;;  %2611 = vmatmul.mubr.msk.bf16.vlgmr.msra.gmra.mrb[16].mxu1 %vm6411_vm12, %v6410_v26 }
 0x25c   :  { %v882_v20 = vpop.permute.xlu0 %881  ;;  %2614 = vmatprep.mubr.msk.bf16.mxu1 %vm6412_vm14, %v4772_v41  ;;  %2627 = vmatpush3.bf16.msra.mxu0 %v2726_v38 }
 0x25d   :  { %v908_v56 = vpop.permute.xlu1 %907  ;;  %v947_v25 = vsel %vm941_vm0, %v925_v45, %v882_v20  ;;  %vm6418_vm0 = vmmov %vm6392_vm1  ;;  %2628 = vmatprep.subr.bf16.mxu0 %v2727_v14 }
 0x25e   :  { %v969_v51 = vsel %vm958_vm13, %v949_v43, %v908_v56  ;;  %vm6420_vm4 = vmmov %vm6418_vm0 }
 0x25f   :  { %vm6421_vm10 = vmmov %vm6418_vm0 }
 0x260   :  { %v906_v4 = vpop.permute.xlu0 %905  ;;  %2629 = vmatpush3.bf16.msra.mxu0 %v2727_v14  ;;  %vm6422_vm7 = vmmov %vm6418_vm0 }
 0x261   :  { %v966_v59 = vsel %vm958_vm13, %v947_v25, %v906_v4  ;;  %vm6419_vm13 = vmmov %vm6418_vm0 }
 0x262   :  { %2594 = vmatprep.mubr.bf16.mxu0 %v966_v59  ;;  %vm6423_vm9 = vmmov %vm6418_vm0 }
 0x263   :  { %2595 = vmatmul.mubr.bf16.gmra.mrb[20].mxu0 %v969_v51  ;;  %2615 = vmatmul.mubr.msk.bf16.gmra.mrb[20].mxu1 %vm6414_vm8, %v4774_v9  ;;  %vm6424_vm3 = vmmov %vm6418_vm0 }
 0x264   :  { %2618 = vmatprep.mubr.msk.bf16.mxu1 %vm6415_vm15, %v4782_v27  ;;  %vm6425_vm6 = vmmov %vm6418_vm0 }
 0x265   :  { %vm6426_vm12 = vmmov %vm6418_vm0 }
 0x266   :  { %vm6427_vm14 = vmmov %vm6418_vm0 }
 0x267   :  { %vm6428_vm1 = vmmov %vm6418_vm0 }
 0x268   :  { %vm6429_vm11 = vmmov %vm6418_vm0 }
 0x269   :  { %vm6430_vm8 = vmmov %vm6418_vm0 }
 0x26a   :  { %vm6431_vm15 = vmmov %vm6418_vm0 }
 0x26b   :  { %2619 = vmatmul.mubr.msk.bf16.gmra.mrb[8].mxu1 %vm6416_vm5, %v4793_v48  ;;  %vm6432_vm5 = vmmov %vm6418_vm0 }
 0x26c   :  { %2622 = vmatprep.mubr.msk.bf16.mxu1 %vm6417_vm2, %v4806_v60  ;;  %vm6433_vm2 = vmmov %vm6418_vm0 }
 0x273   :  { %2623 = vmatmul.mubr.msk.bf16.gmra.mrb[12].mxu1 %vm6418_vm0, %v4808_v23 }
 0x2e1   :  { %v2560_v41 = vpop.f32.mrb[0].mxu1 }
 0x2e2   :  { %v1329_v9 = vpop.f32.mrb[1].mxu1 }
 0x2e3   :  { %v2561_v27 = vpop.f32.mrb[2].mxu1 }
 0x2e4   :  { %v1332_v48 = vpop.f32.mrb[3].mxu1 }
 0x2f1   :  { %v2564_v60 = vpop.f32.mrb[4].mxu1 }
 0x2f2   :  { %v1345_v11 = vpop.f32.mrb[5].mxu1 }
 0x2f3   :  { %v2565_v62 = vpop.f32.mrb[6].mxu1 }
 0x2f4   :  { %v1348_v23 = vpop.f32.mrb[7].mxu1 }
 0x32e   :  { %v2592_v35 = vpop.f32.mrb[16].mxu0  ;;  %v2612_v31 = vpop.f32.mrb[16].mxu1 }
 0x32f   :  { %v1483_v50 = vadd.f32 %v2592_v35, %v2560_v41  ;;  %v1474_v37 = vpop.f32.mrb[17].mxu0  ;;  %v1651_v55 = vpop.f32.mrb[17].mxu1 }
 0x330   :  { %v1475_v40 = vadd.f32 %v1474_v37, %v1329_v9  ;;  %v2593_v12 = vpop.f32.mrb[18].mxu0  ;;  %v2613_v28 = vpop.f32.mrb[18].mxu1 }
 0x331   :  { %v5011_v34 = vadd.f32 %v2612_v31, %v1483_v50  ;;  %v1486_v3 = vadd.f32 %v2593_v12, %v2561_v27  ;;  %v1477_v0 = vpop.f32.mrb[19].mxu0  ;;  %v1654_v1 = vpop.f32.mrb[19].mxu1 }
 0x332   :  { %v5013_v18 = vadd.f32 %v1651_v55, %v1475_v40  ;;  %v1478_v61 = vadd.f32 %v1477_v0, %v1332_v48 }
 0x333   :  { %v5015_v57 = vadd.f32 %v2613_v28, %v1486_v3  ;;  %v1769_v33 = vmul.f32 %v5011_v34, %v5011_v34  ;;  %v1733_v47 = vsel %vm6421_vm10, %v5011_v34, 0.0  ;;  %vm6436_vm10 = vmmov %vm6418_vm0 }
 0x334   :  { %v1767_v8 = vmul.f32 %v5013_v18, %v5013_v18  ;;  %v5019_v54 = vadd.f32 %v1654_v1, %v1478_v61  ;;  %v1730_v46 = vsel %vm6419_vm13, %v5013_v18, 0.0  ;;  %vm6434_vm13 = vmmov %vm6418_vm0 }
 0x335   :  { %v1770_v19 = vmul.f32 %v5015_v57, %v5015_v57  ;;  %v1786_v7 = vsel %vm6424_vm3, %v1769_v33, 0.0  ;;  %v1735_v24 = vsel %vm6425_vm6, %v5015_v57, 0.0  ;;  %vm6439_vm3 = vmmov %vm6418_vm0 }
 0x336   :  { %v1731_v17 = vsel %vm6420_vm4, %v5019_v54, 0.0  ;;  %v1768_v13 = vmul.f32 %v5019_v54, %v5019_v54  ;;  %v2596_v36 = vpop.f32.mrb[20].mxu0  ;;  %v2616_v22 = vpop.f32.mrb[20].mxu1  ;;  %v1783_v58 = vsel %vm6422_vm7, %v1767_v8, 0.0  ;;  %vm6435_vm4 = vmmov %vm6418_vm0 }
 0x337   :  { %v1732_v21 = vadd.f32 %v1731_v17, %v1730_v46  ;;  %v1499_v10 = vadd.f32 %v2596_v36, %v2564_v60  ;;  %v1490_v15 = vpop.f32.mrb[21].mxu0  ;;  %v1667_v52 = vpop.f32.mrb[21].mxu1  ;;  %v1788_v26 = vsel %vm6426_vm12, %v1770_v19, 0.0  ;;  %vm6437_vm7 = vmmov %vm6418_vm0 }
 0x338   :  { %v1784_v5 = vsel %vm6423_vm9, %v1768_v13, 0.0  ;;  %v1491_v2 = vadd.f32 %v1490_v15, %v1345_v11  ;;  %v2597_v30 = vpop.f32.mrb[22].mxu0  ;;  %v2617_v44 = vpop.f32.mrb[22].mxu1  ;;  %vm6438_vm9 = vmmov %vm6418_vm0 }
 0x339   :  { %v1734_v6 = vadd.f32 %v1733_v47, %v1732_v21  ;;  %v1785_v42 = vadd.f32 %v1784_v5, %v1783_v58  ;;  %v5035_v39 = vadd.f32 %v2616_v22, %v1499_v10  ;;  %v1502_v49 = vadd.f32 %v2597_v30, %v2565_v62  ;;  %v1493_v32 = vpop.f32.mrb[23].mxu0  ;;  %v1670_v29 = vpop.f32.mrb[23].mxu1  ;;  %vm6440_vm6 = vmmov %vm6418_vm0 }
 0x33a   :  { %v5040_v53 = vadd.f32 %v1667_v52, %v1491_v2  ;;  %v1494_v63 = vadd.f32 %v1493_v32, %v1348_v23  ;;  %vm6441_vm12 = vmmov %vm6418_vm0 }
 0x33b   :  { %v1787_v20 = vadd.f32 %v1786_v7, %v1785_v42  ;;  %v1736_v16 = vadd.f32 %v1735_v24, %v1734_v6  ;;  %v5047_v56 = vadd.f32 %v2617_v44, %v1502_v49  ;;  %v1773_v14 = vmul.f32 %v5035_v39, %v5035_v39 }
 0x33c   :  { %v1737_v45 = vsel %vm6427_vm14, %v5040_v53, 0.0  ;;  %v1771_v43 = vmul.f32 %v5040_v53, %v5040_v53  ;;  %v5049_v25 = vadd.f32 %v1670_v29, %v1494_v63  ;;  %v1741_v60 = vsel %vm6430_vm8, %v5035_v39, 0.0  ;;  %vm6442_vm14 = vmmov %vm6418_vm0 }
 0x33d   :  { %v1738_v4 = vadd.f32 %v1737_v45, %v1736_v16  ;;  %v1789_v51 = vadd.f32 %v1788_v26, %v1787_v20  ;;  %v1774_v62 = vmul.f32 %v5047_v56, %v5047_v56  ;;  %v1743_v37 = vsel %vm6432_vm5, %v5047_v56, 0.0  ;;  %vm6445_vm8 = vmmov %vm6418_vm0 }
 0x33e   :  { %v1790_v59 = vsel %vm6428_vm1, %v1771_v43, 0.0  ;;  %v1739_v38 = vsel %vm6429_vm11, %v5049_v25, 0.0  ;;  %v1772_v27 = vmul.f32 %v5049_v25, %v5049_v25  ;;  %v5058_v48 = vpop.f32.mrb[8].mxu1  ;;  %v1794_v12 = vsel %vm6433_vm2, %v1773_v14, 0.0  ;;  %vm6443_vm1 = vmmov %vm6418_vm0 }
 0x33f   :  { %v1791_v41 = vadd.f32 %v1790_v59, %v1789_v51  ;;  %v1740_v9 = vadd.f32 %v1739_v38, %v1738_v4  ;;  %v5062_v11 = vpop.f32.mrb[9].mxu1  ;;  %v1796_v61 = vsel %vm6434_vm13, %v1774_v62, 0.0  ;;  %v1777_v17 = vmul.f32 %v5058_v48, %v5058_v48  ;;  %vm6444_vm11 = vmmov %vm6418_vm0 }
 0x340   :  { %v1792_v35 = vsel %vm6431_vm15, %v1772_v27, 0.0  ;;  %v5067_v50 = vpop.f32.mrb[10].mxu1  ;;  %v1775_v3 = vmul.f32 %v5062_v11, %v5062_v11  ;;  %v1745_v28 = vsel %vm6418_vm0, %v5062_v11, 0.0  ;;  %v1749_v21 = vsel %vm6437_vm7, %v5058_v48, 0.0  ;;  %vm6446_vm15 = vmmov %vm6418_vm0 }
 0x341   :  { %v1742_v23 = vadd.f32 %v1741_v60, %v1740_v9  ;;  %v1793_v31 = vadd.f32 %v1792_v35, %v1791_v41  ;;  %v5071_v40 = vpop.f32.mrb[11].mxu1  ;;  %v1778_v22 = vmul.f32 %v5067_v50, %v5067_v50  ;;  %v1751_v2 = vsel %vm6439_vm3, %v5067_v50, 0.0  ;;  %vm6447_vm5 = vmmov %vm6418_vm0 }
 0x342   :  { %v1776_v8 = vmul.f32 %v5071_v40, %v5071_v40  ;;  %v1747_v46 = vsel %vm6435_vm4, %v5071_v40, 0.0  ;;  %v1798_v13 = vsel %vm6436_vm10, %v1775_v3, 0.0  ;;  %v1802_v6 = vsel %vm6440_vm6, %v1777_v17, 0.0  ;;  %vm6448_vm2 = vmmov %vm6418_vm0 }
 0x343   :  { %v1744_v55 = vadd.f32 %v1743_v37, %v1742_v23  ;;  %v1795_v0 = vadd.f32 %v1794_v12, %v1793_v31  ;;  %v1804_v7 = vsel %vm6442_vm14, %v1778_v22, 0.0  ;;  %vm6450_vm13 = vmmov %vm6418_vm0 }
 0x344   :  { %v1800_v58 = vsel %vm6438_vm9, %v1776_v8, 0.0  ;;  %vm6451_vm4 = vmmov %vm6418_vm0 }
 0x345   :  { %v1746_v1 = vadd.f32 %v1745_v28, %v1744_v55  ;;  %v1797_v33 = vadd.f32 %v1796_v61, %v1795_v0  ;;  %vm6452_vm10 = vmmov %vm6418_vm0 }
 0x346   :  { %v5086_v19 = vpop.f32.mrb[12].mxu1  ;;  %vm6453_vm7 = vmmov %vm6418_vm0 }
 0x347   :  { %v1748_v36 = vadd.f32 %v1747_v46, %v1746_v1  ;;  %v1799_v10 = vadd.f32 %v1798_v13, %v1797_v33  ;;  %v5090_v15 = vpop.f32.mrb[13].mxu1  ;;  %v1781_v20 = vmul.f32 %v5086_v19, %v5086_v19  ;;  %v1757_v43 = vsel %vm6445_vm8, %v5086_v19, 0.0  ;;  %vm6454_vm9 = vmmov %vm6418_vm0 }
 0x348   :  { %v5095_v5 = vpop.f32.mrb[14].mxu1  ;;  %v1779_v49 = vmul.f32 %v5090_v15, %v5090_v15  ;;  %v1753_v44 = vsel %vm6441_vm12, %v5090_v15, 0.0  ;;  %vm6455_vm3 = vmmov %vm6418_vm0 }
 0x349   :  { %v1750_v47 = vadd.f32 %v1749_v21, %v1748_v36  ;;  %v1801_v30 = vadd.f32 %v1800_v58, %v1799_v10  ;;  %v5099_v52 = vpop.f32.mrb[15].mxu1  ;;  %v1782_v51 = vmul.f32 %v5095_v5, %v5095_v5  ;;  %v1759_v14 = vsel %vm6447_vm5, %v5095_v5, 0.0  ;;  %vm6456_vm6 = vmmov %vm6418_vm0 }
 0x34a   :  { %v1780_v63 = vmul.f32 %v5099_v52, %v5099_v52  ;;  %v1755_v26 = vsel %vm6443_vm1, %v5099_v52, 0.0  ;;  %v1806_v16 = vsel %vm6444_vm11, %v1779_v49, 0.0  ;;  %v1810_v9 = vsel %vm6448_vm2, %v1781_v20, 0.0  ;;  %vm6457_vm12 = vmmov %vm6418_vm0 }
 0x34b   :  { %v1752_v42 = vadd.f32 %v1751_v2, %v1750_v47  ;;  %v1803_v32 = vadd.f32 %v1802_v6, %v1801_v30  ;;  %v1812_v62 = vsel %vm6418_vm0, %v1782_v51, 0.0 }
 0x34c   :  { %v1808_v38 = vsel %vm6446_vm15, %v1780_v63, 0.0 }
 0x34d   :  { %v1754_v24 = vadd.f32 %v1753_v44, %v1752_v42  ;;  %v1805_v29 = vadd.f32 %v1804_v7, %v1803_v32  ;;  %v6449_v42 = vld [vmem:[#allocation5_spill] sm:$0xff] }
 0x34e   :  { %v1881_v49 = vsub.s32 3, %v6449_v42 }
 0x34f   :  { %v1756_v45 = vadd.f32 %v1755_v26, %v1754_v24  ;;  %v1807_v4 = vadd.f32 %v1806_v16, %v1805_v29 }
 0x351   :  { %v1758_v59 = vadd.f32 %v1757_v43, %v1756_v45  ;;  %v1809_v41 = vadd.f32 %v1808_v38, %v1807_v4 }
 0x353   :  { %v1760_v27 = vadd.f32 %v1759_v14, %v1758_v59  ;;  %v1811_v60 = vadd.f32 %v1810_v9, %v1809_v41 }
 0x355   :  { %v1761_v23 = vrot.slane %v1760_v27, 4  ;;  %v1813_v35 = vadd.f32 %v1812_v62, %v1811_v60 }
 0x357   :  { %v1762_v37 = vadd.f32 %v1761_v23, %v1760_v27  ;;  %v1814_v31 = vrot.slane %v1813_v35, 4 }
 0x359   :  { %v1763_v12 = vrot.slane %v1762_v37, 2  ;;  %v1815_v55 = vadd.f32 %v1814_v31, %v1813_v35 }
 0x35b   :  { %v1764_v3 = vadd.f32 %v1763_v12, %v1762_v37  ;;  %v1816_v0 = vrot.slane %v1815_v55, 2 }
 0x35d   :  { %v1765_v28 = vrot.slane %v1764_v3, 1  ;;  %v1817_v61 = vadd.f32 %v1816_v0, %v1815_v55 }
 0x35f   :  { %v1766_v1 = vadd.f32 %v1765_v28, %v1764_v3  ;;  %v1818_v8 = vrot.slane %v1817_v61, 1 }
 0x361   :  { %v5123_v33 = vmul.f32 0.0078125, %v1766_v1  ;;  %v1819_v46 = vadd.f32 %v1818_v8, %v1817_v61 }
 0x363   :  { %v1822_v17 = vmul.f32 %v5123_v33, %v5123_v33  ;;  %v1838_v13 = vsub.f32 %v5099_v52, %v5123_v33  ;;  %v1825_v36 = vsub.f32 %v5013_v18, %v5123_v33  ;;  %v1826_v21 = vsub.f32 %v5019_v54, %v5123_v33 }
 0x364   :  { %v1821_v10 = vmul.f32 0.0078125, %v1819_v46  ;;  %v1827_v22 = vsub.f32 %v5011_v34, %v5123_v33  ;;  %v1828_v47 = vsub.f32 %v5015_v57, %v5123_v33  ;;  %v1829_v58 = vsub.f32 %v5040_v53, %v5123_v33 }
 0x365   :  { %v1830_v2 = vsub.f32 %v5049_v25, %v5123_v33  ;;  %v1831_v30 = vsub.f32 %v5035_v39, %v5123_v33  ;;  %v1832_v18 = vsub.f32 %v5047_v56, %v5123_v33  ;;  %v1833_v54 = vsub.f32 %v5062_v11, %v5123_v33 }
 0x366   :  { %v1823_v52 = vsub.f32 %v1821_v10, %v1822_v17  ;;  %v1834_v34 = vsub.f32 %v5071_v40, %v5123_v33  ;;  %v1835_v57 = vsub.f32 %v5058_v48, %v5123_v33  ;;  %v1836_v53 = vsub.f32 %v5067_v50, %v5123_v33  ;;  %v5164_v48 = vld [vmem:[%s5524_s4] sm:$0xff] }
 0x367   :  { %v1837_v25 = vsub.f32 %v5090_v15, %v5123_v33  ;;  %v1839_v39 = vsub.f32 %v5086_v19, %v5123_v33  ;;  %v1840_v56 = vsub.f32 %v5095_v5, %v5123_v33  ;;  %v1861_v40 = vsub.s32 2, %v6449_v42 }
 0x368   :  { %v1824_v11 = vmax.f32 %v1823_v52, 0.0  ;;  %v5170_v19 = vrot.slane %v5164_v48, %v1881_v49 }
 0x369   :  { %v5167_v50 = vrot.slane %v5164_v48, %v1861_v40 }
 0x36a   :  { %v1841_v6 = vadd.f32 1e-05, %v1824_v11 }
 0x36c   :  { %2730 = vrsqrt.f32 %v1841_v6 }
 0x376   :  { %v2731_v15 = vpop.eup %2730 }
 0x377   :  { %v1856_v32 = vmul.f32 %v2731_v15, %v1838_v13  ;;  %v1843_v44 = vmul.f32 %v2731_v15, %v1825_v36  ;;  %v1844_v7 = vmul.f32 %v2731_v15, %v1826_v21  ;;  %v1845_v24 = vmul.f32 %v2731_v15, %v1827_v22 }
 0x378   :  { %v1846_v63 = vmul.f32 %v2731_v15, %v1828_v47  ;;  %v1847_v29 = vmul.f32 %v2731_v15, %v1829_v58  ;;  %v1848_v26 = vmul.f32 %v2731_v15, %v1830_v2  ;;  %v1849_v20 = vmul.f32 %v2731_v15, %v1831_v30 }
 0x379   :  { %v1876_v16 = vmul.f32 %v5167_v50, %v1856_v32  ;;  %v1863_v45 = vmul.f32 %v5167_v50, %v1843_v44  ;;  %v1864_v43 = vmul.f32 %v5167_v50, %v1844_v7  ;;  %v1865_v4 = vmul.f32 %v5167_v50, %v1845_v24 }
 0x37a   :  { %v1866_v51 = vmul.f32 %v5167_v50, %v1846_v63  ;;  %v1867_v59 = vmul.f32 %v5167_v50, %v1847_v29  ;;  %v1868_v38 = vmul.f32 %v5167_v50, %v1848_v26  ;;  %v1850_v14 = vmul.f32 %v2731_v15, %v1832_v18 }
 0x37b   :  { %v1883_v41 = vadd.f32 %v5170_v19, %v1863_v45  ;;  %v1884_v9 = vadd.f32 %v5170_v19, %v1864_v43  ;;  %v1885_v27 = vadd.f32 %v5170_v19, %v1865_v4  ;;  %v1869_v35 = vmul.f32 %v5167_v50, %v1849_v20 }
 0x37c   :  { %v1886_v60 = vadd.f32 %v5170_v19, %v1866_v51  ;;  %v1887_v62 = vadd.f32 %v5170_v19, %v1867_v59  ;;  %v1888_v23 = vadd.f32 %v5170_v19, %v1868_v38  ;;  %v1896_v37 = vadd.f32 %v5170_v19, %v1876_v16 }
 0x37d   :  { %v1899_v31 = vmax.f32 %v1883_v41, 0.0  ;;  %v1900_v12 = vmax.f32 %v1884_v9, 0.0  ;;  %v1901_v55 = vmax.f32 %v1885_v27, 0.0  ;;  %v1870_v61 = vmul.f32 %v5167_v50, %v1850_v14 }
 0x37e   :  { %v1902_v3 = vmax.f32 %v1886_v60, 0.0  ;;  %v1903_v0 = vmax.f32 %v1887_v62, 0.0  ;;  %v1904_v28 = vmax.f32 %v1888_v23, 0.0  ;;  %v1889_v8 = vadd.f32 %v5170_v19, %v1869_v35 }
 0x37f   :  { %v1915_v1 = vpack.c.bf16 %v1900_v12, %v1899_v31  ;;  %v1851_v46 = vmul.f32 %v2731_v15, %v1833_v54  ;;  %v1852_v17 = vmul.f32 %v2731_v15, %v1834_v34  ;;  %v1890_v21 = vadd.f32 %v5170_v19, %v1870_v61 }
 0x380   :  { %v1916_v13 = vpack.c.bf16 %v1902_v3, %v1901_v55  ;;  %v1917_v36 = vpack.c.bf16 %v1904_v28, %v1903_v0  ;;  %v1853_v10 = vmul.f32 %v2731_v15, %v1835_v57  ;;  %v1905_v22 = vmax.f32 %v1889_v8, 0.0 }
 0x381   :  { %2630 = vmatprep.mubr.msk.bf16.mxu0 %vm6450_vm13, %v1915_v1  ;;  %v1871_v47 = vmul.f32 %v5167_v50, %v1851_v46  ;;  %v1872_v58 = vmul.f32 %v5167_v50, %v1852_v17  ;;  %v1854_v2 = vmul.f32 %v2731_v15, %v1836_v53  ;;  %v1906_v30 = vmax.f32 %v1890_v21, 0.0 }
 0x382   :  { %2631 = vmatmul.mubr.msk.bf16.vlgmr.msra.gmra.mrb[24].mxu0 %vm6451_vm4, %v1916_v13  ;;  %v1873_v18 = vmul.f32 %v5167_v50, %v1853_v10  ;;  %v1855_v54 = vmul.f32 %v2731_v15, %v1837_v25  ;;  %v1857_v52 = vmul.f32 %v2731_v15, %v1839_v39  ;;  %v1858_v6 = vmul.f32 %v2731_v15, %v1840_v56 }
 0x383   :  { %2634 = vmatprep.mubr.msk.bf16.mxu0 %vm6452_vm10, %v1917_v36  ;;  %v1891_v34 = vadd.f32 %v5170_v19, %v1871_v47  ;;  %v1892_v57 = vadd.f32 %v5170_v19, %v1872_v58  ;;  %v1874_v11 = vmul.f32 %v5167_v50, %v1854_v2  ;;  %v1918_v53 = vpack.c.bf16 %v1906_v30, %v1905_v22 }
 0x384   :  { %v1893_v40 = vadd.f32 %v5170_v19, %v1873_v18  ;;  %v1875_v49 = vmul.f32 %v5167_v50, %v1855_v54  ;;  %v1877_v25 = vmul.f32 %v5167_v50, %v1857_v52  ;;  %v1878_v7 = vmul.f32 %v5167_v50, %v1858_v6 }
 0x385   :  { %v1907_v39 = vmax.f32 %v1891_v34, 0.0  ;;  %v1908_v32 = vmax.f32 %v1892_v57, 0.0  ;;  %v1894_v44 = vadd.f32 %v5170_v19, %v1874_v11  ;;  %v1912_v24 = vmax.f32 %v1896_v37, 0.0 }
 0x386   :  { %v1909_v63 = vmax.f32 %v1893_v40, 0.0  ;;  %v1895_v29 = vadd.f32 %v5170_v19, %v1875_v49  ;;  %v1897_v5 = vadd.f32 %v5170_v19, %v1877_v25  ;;  %v1898_v15 = vadd.f32 %v5170_v19, %v1878_v7 }
 0x387   :  { %v1919_v33 = vpack.c.bf16 %v1908_v32, %v1907_v39  ;;  %v1910_v56 = vmax.f32 %v1894_v44, 0.0 }
 0x388   :  { %v1911_v26 = vmax.f32 %v1895_v29, 0.0  ;;  %v1913_v20 = vmax.f32 %v1897_v5, 0.0  ;;  %v1914_v45 = vmax.f32 %v1898_v15, 0.0 }
 0x389   :  { %v1920_v16 = vpack.c.bf16 %v1910_v56, %v1909_v63 }
 0x38a   :  { %2635 = vmatmul.mubr.msk.bf16.gmra.mrb[28].mxu0 %vm6453_vm7, %v1918_v53  ;;  %v1921_v43 = vpack.c.bf16 %v1912_v24, %v1911_v26  ;;  %v1922_v50 = vpack.c.bf16 %v1914_v45, %v1913_v20 }
 0x38b   :  { %2638 = vmatprep.mubr.msk.bf16.mxu0 %vm6454_vm9, %v1919_v33 }
 0x392   :  { %2639 = vmatmul.mubr.msk.bf16.gmra.mrb[32].mxu0 %vm6455_vm3, %v1920_v16 }
 0x393   :  { %2642 = vmatprep.mubr.msk.bf16.mxu0 %vm6456_vm6, %v1921_v43 }
 0x39a   :  { %2643 = vmatmul.mubr.msk.bf16.gmra.mrb[36].mxu0 %vm6457_vm12, %v1922_v50 }
 0x455   :  { %v5215_v4 = vpop.f32.mrb[24].mxu0 }
 0x456   :  { %v5217_v51 = vpop.f32.mrb[25].mxu0  ;;  %v2083_v9 = vmul.f32 %v5215_v4, %v5215_v4 }
 0x457   :  { %v5219_v19 = vpop.f32.mrb[26].mxu0  ;;  %v2081_v38 = vmul.f32 %v5217_v51, %v5217_v51 }
 0x458   :  { %v5221_v59 = vpop.f32.mrb[27].mxu0  ;;  %v2084_v62 = vmul.f32 %v5219_v19, %v5219_v19 }
 0x459   :  { %v2060_v14 = vadd.f32 %v5221_v59, %v5217_v51  ;;  %v2082_v41 = vmul.f32 %v5221_v59, %v5221_v59 }
 0x45b   :  { %v2061_v27 = vadd.f32 %v5215_v4, %v2060_v14  ;;  %v2097_v60 = vadd.f32 %v2082_v41, %v2081_v38 }
 0x45d   :  { %v2098_v23 = vadd.f32 %v2097_v60, %v2083_v9  ;;  %v5234_v35 = vpop.f32.mrb[28].mxu0  ;;  %v2062_v37 = vadd.f32 %v5219_v19, %v2061_v27 }
 0x45e   :  { %v5237_v31 = vpop.f32.mrb[29].mxu0  ;;  %v2087_v46 = vmul.f32 %v5234_v35, %v5234_v35 }
 0x45f   :  { %v2063_v12 = vadd.f32 %v2062_v37, %v5237_v31  ;;  %v2085_v55 = vmul.f32 %v5237_v31, %v5237_v31  ;;  %v2099_v3 = vadd.f32 %v2098_v23, %v2084_v62  ;;  %v5242_v0 = vpop.f32.mrb[30].mxu0 }
 0x460   :  { %v5244_v28 = vpop.f32.mrb[31].mxu0  ;;  %v2088_v36 = vmul.f32 %v5242_v0, %v5242_v0 }
 0x461   :  { %v2100_v61 = vadd.f32 %v2099_v3, %v2085_v55  ;;  %v2064_v1 = vadd.f32 %v2063_v12, %v5244_v28  ;;  %v2086_v8 = vmul.f32 %v5244_v28, %v5244_v28 }
 0x463   :  { %v2065_v17 = vadd.f32 %v5234_v35, %v2064_v1  ;;  %v2101_v13 = vadd.f32 %v2100_v61, %v2086_v8 }
 0x465   :  { %v2102_v21 = vadd.f32 %v2101_v13, %v2087_v46  ;;  %v5254_v10 = vpop.f32.mrb[32].mxu0  ;;  %v2066_v22 = vadd.f32 %v5242_v0, %v2065_v17 }
 0x466   :  { %v5257_v47 = vpop.f32.mrb[33].mxu0  ;;  %v2091_v11 = vmul.f32 %v5254_v10, %v5254_v10 }
 0x467   :  { %v2067_v58 = vadd.f32 %v2066_v22, %v5257_v47  ;;  %v2089_v2 = vmul.f32 %v5257_v47, %v5257_v47  ;;  %v2103_v30 = vadd.f32 %v2102_v21, %v2088_v36  ;;  %v5262_v18 = vpop.f32.mrb[34].mxu0 }
 0x468   :  { %v5264_v54 = vpop.f32.mrb[35].mxu0  ;;  %v2092_v40 = vmul.f32 %v5262_v18, %v5262_v18 }
 0x469   :  { %v2104_v52 = vadd.f32 %v2103_v30, %v2089_v2  ;;  %v2068_v34 = vadd.f32 %v2067_v58, %v5264_v54  ;;  %v2090_v57 = vmul.f32 %v5264_v54, %v5264_v54 }
 0x46b   :  { %v2069_v6 = vadd.f32 %v5254_v10, %v2068_v34  ;;  %v2105_v53 = vadd.f32 %v2104_v52, %v2090_v57 }
 0x46d   :  { %v2106_v49 = vadd.f32 %v2105_v53, %v2091_v11  ;;  %v5274_v25 = vpop.f32.mrb[36].mxu0  ;;  %v2070_v39 = vadd.f32 %v5262_v18, %v2069_v6 }
 0x46e   :  { %v5277_v32 = vpop.f32.mrb[37].mxu0  ;;  %v2095_v15 = vmul.f32 %v5274_v25, %v5274_v25 }
 0x46f   :  { %v2071_v44 = vadd.f32 %v2070_v39, %v5277_v32  ;;  %v2093_v7 = vmul.f32 %v5277_v32, %v5277_v32  ;;  %v2107_v24 = vadd.f32 %v2106_v49, %v2092_v40  ;;  %v5282_v63 = vpop.f32.mrb[38].mxu0 }
 0x470   :  { %v5284_v29 = vpop.f32.mrb[39].mxu0  ;;  %v2096_v16 = vmul.f32 %v5282_v63, %v5282_v63 }
 0x471   :  { %v2108_v5 = vadd.f32 %v2107_v24, %v2093_v7  ;;  %v2072_v33 = vadd.f32 %v2071_v44, %v5284_v29  ;;  %v2094_v56 = vmul.f32 %v5284_v29, %v5284_v29 }
 0x473   :  { %v2073_v26 = vadd.f32 %v5274_v25, %v2072_v33  ;;  %v2109_v20 = vadd.f32 %v2108_v5, %v2094_v56 }
 0x475   :  { %v2074_v45 = vadd.f32 %v5282_v63, %v2073_v26  ;;  %v2110_v43 = vadd.f32 %v2109_v20, %v2095_v15 }
 0x477   :  { %v2075_v50 = vrot.slane %v2074_v45, 4  ;;  %v2111_v38 = vadd.f32 %v2110_v43, %v2096_v16 }
 0x479   :  { %v2076_v14 = vadd.f32 %v2075_v50, %v2074_v45  ;;  %v2112_v41 = vrot.slane %v2111_v38, 4 }
 0x47b   :  { %v2077_v9 = vrot.slane %v2076_v14, 2  ;;  %v2113_v27 = vadd.f32 %v2112_v41, %v2111_v38 }
 0x47d   :  { %v2078_v60 = vadd.f32 %v2077_v9, %v2076_v14  ;;  %v2114_v62 = vrot.slane %v2113_v27, 2  ;;  %v2737_v14 = vld [vmem:[%s5520_s0] sm:$0xff]  ;;  %v2738_v9 = vld [vmem:[%s5520_s0 + $0x8] sm:$0xff] }
 0x47f   :  { %v2079_v23 = vrot.slane %v2078_v60, 1  ;;  %v2115_v37 = vadd.f32 %v2114_v62, %v2113_v27 }
 0x481   :  { %v2080_v12 = vadd.f32 %v2079_v23, %v2078_v60  ;;  %v2116_v55 = vrot.slane %v2115_v37, 1 }
 0x483   :  { %v2117_v3 = vadd.f32 %v2116_v55, %v2115_v37  ;;  %v2118_v61 = vmul.f32 0.0078125, %v2080_v12  ;;  %v2739_v12 = vld [vmem:[%s5520_s0 + $0x10] sm:$0xff] }
 0x485   :  { %v2119_v1 = vmul.f32 0.0078125, %v2117_v3  ;;  %v2120_v8 = vmul.f32 %v2118_v61, %v2118_v61  ;;  %v2123_v46 = vsub.f32 %v5217_v51, %v2118_v61  ;;  %v2124_v17 = vsub.f32 %v5221_v59, %v2118_v61 }
 0x486   :  { %v2125_v13 = vsub.f32 %v5215_v4, %v2118_v61  ;;  %v2126_v36 = vsub.f32 %v5219_v19, %v2118_v61  ;;  %v2127_v21 = vsub.f32 %v5237_v31, %v2118_v61  ;;  %v2128_v22 = vsub.f32 %v5244_v28, %v2118_v61 }
 0x487   :  { %v2121_v58 = vsub.f32 %v2119_v1, %v2120_v8  ;;  %v2129_v2 = vsub.f32 %v5234_v35, %v2118_v61  ;;  %v2130_v30 = vsub.f32 %v5242_v0, %v2118_v61  ;;  %v2131_v52 = vsub.f32 %v5257_v47, %v2118_v61 }
 0x488   :  { %v2132_v34 = vsub.f32 %v5264_v54, %v2118_v61  ;;  %v2133_v51 = vsub.f32 %v5254_v10, %v2118_v61  ;;  %v2134_v59 = vsub.f32 %v5262_v18, %v2118_v61  ;;  %v2135_v4 = vsub.f32 %v5277_v32, %v2118_v61 }
 0x489   :  { %v2122_v19 = vmax.f32 %v2121_v58, 0.0  ;;  %v2136_v31 = vsub.f32 %v5284_v29, %v2118_v61  ;;  %v2137_v28 = vsub.f32 %v5274_v25, %v2118_v61  ;;  %v2138_v57 = vsub.f32 %v5282_v63, %v2118_v61  ;;  %v2741_v58 = vld [vmem:[%s5520_s0 + $0x20] sm:$0xff] }
 0x48a   :  { %v2159_v0 = vsub.s32 4, %v6449_v42  ;;  %v2179_v10 = vsub.s32 5, %v6449_v42 }
 0x48b   :  { %v2139_v35 = vadd.f32 1e-05, %v2122_v19 }
 0x48c   :  { %v5313_v54 = vrot.slane %v5164_v48, %v2159_v0  ;;  %v5325_v26 = vrot.slane %v5164_v48, %v2179_v10 }
 0x48d   :  { %2732 = vrsqrt.f32 %v2139_v35 }
 0x497   :  { %v2733_v47 = vpop.eup %2732 }
 0x498   :  { %v2141_v18 = vmul.f32 %v2733_v47, %v2123_v46  ;;  %v2142_v11 = vmul.f32 %v2733_v47, %v2124_v17  ;;  %v2143_v6 = vmul.f32 %v2733_v47, %v2125_v13  ;;  %v2144_v53 = vmul.f32 %v2733_v47, %v2126_v36  ;;  %v2740_v17 = vld [vmem:[%s5520_s0 + $0x18] sm:$0xff] }
 0x499   :  { %v2145_v40 = vmul.f32 %v2733_v47, %v2127_v21  ;;  %v2146_v49 = vmul.f32 %v2733_v47, %v2128_v22  ;;  %v2147_v39 = vmul.f32 %v2733_v47, %v2129_v2  ;;  %v2148_v25 = vmul.f32 %v2733_v47, %v2130_v30 }
 0x49a   :  { %v2149_v32 = vmul.f32 %v2733_v47, %v2131_v52  ;;  %v2150_v44 = vmul.f32 %v2733_v47, %v2132_v34  ;;  %v2151_v7 = vmul.f32 %v2733_v47, %v2133_v51  ;;  %v2152_v24 = vmul.f32 %v2733_v47, %v2134_v59 }
 0x49b   :  { %v2153_v63 = vmul.f32 %v2733_v47, %v2135_v4  ;;  %v5316_v29 = vmul.f32 %v2733_v47, %v2136_v31  ;;  %v5318_v5 = vmul.f32 %v2733_v47, %v2137_v28  ;;  %v5320_v33 = vmul.f32 %v2733_v47, %v2138_v57  ;;  %v2742_v4 = vld [vmem:[%s5520_s0 + $0x28] sm:$0xff]  ;;  %v2743_v47 = vld [vmem:[%s5520_s0 + $0x30] sm:$0xff] }
 0x49c   :  { %v2161_v56 = vmul.f32 %v5313_v54, %v2141_v18  ;;  %v2162_v15 = vmul.f32 %v5313_v54, %v2142_v11  ;;  %v2163_v20 = vmul.f32 %v5313_v54, %v2143_v6  ;;  %v2164_v43 = vmul.f32 %v5313_v54, %v2144_v53 }
 0x49d   :  { %v2165_v50 = vmul.f32 %v5313_v54, %v2145_v40  ;;  %v2166_v60 = vmul.f32 %v5313_v54, %v2146_v49  ;;  %v2167_v23 = vmul.f32 %v5313_v54, %v2147_v39  ;;  %v2168_v8 = vmul.f32 %v5313_v54, %v2148_v25  ;;  %v2744_v49 = vld [vmem:[%s5520_s0 + $0x38] sm:$0xff] }
 0x49e   :  { %v2181_v16 = vadd.f32 %v5325_v26, %v2161_v56  ;;  %v2182_v45 = vadd.f32 %v5325_v26, %v2162_v15  ;;  %v2183_v38 = vadd.f32 %v5325_v26, %v2163_v20  ;;  %v2184_v62 = vadd.f32 %v5325_v26, %v2164_v43 }
 0x49f   :  { %v2185_v37 = vadd.f32 %v5325_v26, %v2165_v50  ;;  %v2186_v46 = vadd.f32 %v5325_v26, %v2166_v60  ;;  %v2169_v21 = vmul.f32 %v5313_v54, %v2149_v32  ;;  %v2187_v22 = vadd.f32 %v5325_v26, %v2167_v23 }
 0x4a0   :  { %v5336_v41 = vadd.f32 %v2737_v14, %v2181_v16  ;;  %v5341_v27 = vadd.f32 %v2738_v9, %v2182_v45  ;;  %v5350_v55 = vadd.f32 %v2739_v12, %v2183_v38  ;;  %v5363_v13 = vadd.f32 %v2740_v17, %v2184_v62 }
 0x4a1   :  { %v5371_v2 = vadd.f32 %v2741_v58, %v2185_v37  ;;  %v2170_v51 = vmul.f32 %v5313_v54, %v2150_v44  ;;  %v2188_v59 = vadd.f32 %v5325_v26, %v2168_v8  ;;  %v5381_v19 = vadd.f32 %v2742_v4, %v2186_v46 }
 0x4a2   :  { %v2213_v3 = vadd.f32 %v5341_v27, %v5336_v41  ;;  %v2234_v61 = vmul.f32 %v5336_v41, %v5336_v41  ;;  %v2235_v1 = vmul.f32 %v5341_v27, %v5341_v27  ;;  %v2236_v52 = vmul.f32 %v5350_v55, %v5350_v55 }
 0x4a3   :  { %v2237_v28 = vmul.f32 %v5363_v13, %v5363_v13  ;;  %v2171_v35 = vmul.f32 %v5313_v54, %v2151_v7  ;;  %v2189_v0 = vadd.f32 %v5325_v26, %v2169_v21  ;;  %v5391_v10 = vadd.f32 %v2743_v47, %v2187_v22 }
 0x4a4   :  { %v2214_v36 = vadd.f32 %v2213_v3, %v5350_v55  ;;  %v2250_v34 = vadd.f32 %v2235_v1, %v2234_v61  ;;  %v2238_v11 = vmul.f32 %v5371_v2, %v5371_v2  ;;  %v2172_v53 = vmul.f32 %v5313_v54, %v2152_v24  ;;  %v2745_v24 = vld [vmem:[%s5520_s0 + $0x40] sm:$0xff] }
 0x4a5   :  { %v2190_v40 = vadd.f32 %v5325_v26, %v2170_v51  ;;  %v5401_v39 = vadd.f32 %v2744_v49, %v2188_v59  ;;  %v2239_v32 = vmul.f32 %v5381_v19, %v5381_v19  ;;  %v2173_v7 = vmul.f32 %v5313_v54, %v2153_v63  ;;  %v2746_v63 = vld [vmem:[%s5520_s0 + $0x48] sm:$0xff] }
 0x4a6   :  { %v2215_v30 = vadd.f32 %v2214_v36, %v5363_v13  ;;  %v2251_v57 = vadd.f32 %v2250_v34, %v2236_v52  ;;  %v2191_v56 = vadd.f32 %v5325_v26, %v2171_v35  ;;  %v5411_v15 = vadd.f32 %v2745_v24, %v2189_v0  ;;  %v2750_v51 = vld [vmem:[%s5520_s0 + $0x68] sm:$0xff] }
 0x4a7   :  { %v2240_v16 = vmul.f32 %v5391_v10, %v5391_v10  ;;  %v2174_v43 = vmul.f32 %v5313_v54, %v5316_v29  ;;  %v2192_v50 = vadd.f32 %v5325_v26, %v2172_v53  ;;  %v5422_v38 = vadd.f32 %v2746_v63, %v2190_v40  ;;  %v2747_v29 = vld [vmem:[%s5520_s0 + $0x50] sm:$0xff] }
 0x4a8   :  { %v2216_v31 = vadd.f32 %v2215_v30, %v5371_v2  ;;  %v2252_v6 = vadd.f32 %v2251_v57, %v2237_v28  ;;  %v2241_v9 = vmul.f32 %v5401_v39, %v5401_v39  ;;  %v2175_v62 = vmul.f32 %v5313_v54, %v5318_v5  ;;  %v2748_v5 = vld [vmem:[%s5520_s0 + $0x58] sm:$0xff]  ;;  %v2751_v57 = vld [vmem:[%s5520_s0 + $0x70] sm:$0xff] }
 0x4a9   :  { %v2193_v23 = vadd.f32 %v5325_v26, %v2173_v7  ;;  %v5433_v37 = vadd.f32 %v2747_v29, %v2191_v56  ;;  %v2242_v3 = vmul.f32 %v5411_v15, %v5411_v15  ;;  %v2176_v1 = vmul.f32 %v5313_v54, %v5320_v33  ;;  %v2749_v54 = vld [vmem:[%s5520_s0 + $0x60] sm:$0xff] }
 0x4aa   :  { %v2217_v18 = vadd.f32 %v2216_v31, %v5381_v19  ;;  %v2253_v44 = vadd.f32 %v2252_v6, %v2238_v11  ;;  %v2194_v8 = vadd.f32 %v5325_v26, %v2174_v43  ;;  %v5444_v46 = vadd.f32 %v2748_v5, %v2192_v50 }
 0x4ab   :  { %v2243_v36 = vmul.f32 %v5422_v38, %v5422_v38  ;;  %v2195_v22 = vadd.f32 %v5325_v26, %v2175_v62  ;;  %v5453_v33 = vadd.f32 %v2749_v54, %v2193_v23  ;;  %v2244_v30 = vmul.f32 %v5433_v37, %v5433_v37 }
 0x4ac   :  { %v2218_v25 = vadd.f32 %v2217_v18, %v5391_v10  ;;  %v2254_v45 = vadd.f32 %v2253_v44, %v2239_v32  ;;  %v2196_v34 = vadd.f32 %v5325_v26, %v2176_v1  ;;  %v5462_v59 = vadd.f32 %v2750_v51, %v2194_v8  ;;  %v2752_v18 = vld [vmem:[%s5520_s0 + $0x78] sm:$0xff]  ;;  %s2780_s0 = smov [#allocation2]  }
 0x4ad   :  { %v2245_v31 = vmul.f32 %v5444_v46, %v5444_v46  ;;  %v5470_v35 = vadd.f32 %v2751_v57, %v2195_v22  ;;  %v2246_v0 = vmul.f32 %v5453_v33, %v5453_v33  ;;  %s2387_s10 = sshll.u32 %s2780_s0, 4  ;;  %s2388_s10 = int_to_ptr.vmem [resolvable:$true] %s2387_s10 }
 0x4ae   :  { %v2219_v20 = vadd.f32 %v2218_v25, %v5401_v39  ;;  %v2255_v60 = vadd.f32 %v2254_v45, %v2240_v16  ;;  %v5478_v11 = vadd.f32 %v2752_v18, %v2196_v34  ;;  %v2247_v53 = vmul.f32 %v5462_v59, %v5462_v59  ;;  %s2753_s11 = scalar_lea.vmem %s2388_s10, 2048  ;;  %p2758_p1 = scmp.lt.s32.totalorder %s2388_s10, %s2388_s10 }
 0x4af   :  { %v2248_v25 = vmul.f32 %v5470_v35, %v5470_v35  ;;  %p2754_p0 = scmp.ne.s32.totalorder %s2388_s10, %s2753_s11  ;;  %p2759_p2 = scmp.lt.s32.totalorder %s2753_s11, %s2753_s11 }
 0x4b0   :  { %v2220_v14 = vadd.f32 %v2219_v20, %v5411_v15  ;;  %v2256_v61 = vadd.f32 %v2255_v60, %v2241_v9  ;;  %v2249_v7 = vmul.f32 %v5478_v11, %v5478_v11 }
 0x4b1   :  { %p2760_p3 = por %p2759_p2, %p2758_p1 }
 0x4b2   :  { %v2221_v12 = vadd.f32 %v2220_v14, %v5422_v38  ;;  %v2257_v21 = vadd.f32 %v2256_v61, %v2242_v3 }
 0x4b3   :  { %p2761_p4 = pnand %p2760_p3, %p2754_p0 }
 0x4b4   :  { %v2222_v17 = vadd.f32 %v2221_v12, %v5433_v37  ;;  %v2258_v52 = vadd.f32 %v2257_v21, %v2243_v36 }
 0x4b6   :  { %v2223_v58 = vadd.f32 %v2222_v17, %v5444_v46  ;;  %v2259_v28 = vadd.f32 %v2258_v52, %v2244_v30 }
 0x4b8   :  { %v2224_v4 = vadd.f32 %v2223_v58, %v5453_v33  ;;  %v2260_v47 = vadd.f32 %v2259_v28, %v2245_v31 }
 0x4ba   :  { %v2225_v26 = vadd.f32 %v2224_v4, %v5462_v59  ;;  %v2261_v40 = vadd.f32 %v2260_v47, %v2246_v0 }
 0x4bc   :  { %v2226_v6 = vadd.f32 %v2225_v26, %v5470_v35  ;;  %v2262_v32 = vadd.f32 %v2261_v40, %v2247_v53 }
 0x4be   :  { %v2227_v49 = vadd.f32 %v2226_v6, %v5478_v11  ;;  %v2263_v56 = vadd.f32 %v2262_v32, %v2248_v25 }
 0x4c0   :  { %v2228_v44 = vrot.slane %v2227_v49, 4  ;;  %v2264_v20 = vadd.f32 %v2263_v56, %v2249_v7 }
 0x4c2   :  { %v2229_v24 = vadd.f32 %v2228_v44, %v2227_v49  ;;  %v2265_v45 = vrot.slane %v2264_v20, 4 }
 0x4c4   :  { %v2230_v16 = vrot.slane %v2229_v24, 2  ;;  %v2266_v50 = vadd.f32 %v2265_v45, %v2264_v20 }
 0x4c6   :  { %v2231_v43 = vadd.f32 %v2230_v16, %v2229_v24  ;;  %v2267_v14 = vrot.slane %v2266_v50, 2 }
 0x4c8   :  { %v2232_v63 = vrot.slane %v2231_v43, 1  ;;  %v2268_v60 = vadd.f32 %v2267_v14, %v2266_v50 }
 0x4ca   :  { %v2233_v9 = vadd.f32 %v2232_v63, %v2231_v43  ;;  %v2269_v62 = vrot.slane %v2268_v60, 1 }
 0x4cc   :  { %v2271_v23 = vmul.f32 0.0078125, %v2233_v9  ;;  %v2270_v29 = vadd.f32 %v2269_v62, %v2268_v60 }
 0x4ce   :  { %v2273_v12 = vmul.f32 %v2271_v23, %v2271_v23  ;;  %v2276_v3 = vsub.f32 %v5336_v41, %v2271_v23  ;;  %v2277_v61 = vsub.f32 %v5341_v27, %v2271_v23  ;;  %v2278_v1 = vsub.f32 %v5350_v55, %v2271_v23 }
 0x4cf   :  { %v2279_v8 = vsub.f32 %v5363_v13, %v2271_v23  ;;  %v2280_v5 = vsub.f32 %v5371_v2, %v2271_v23  ;;  %v2281_v17 = vsub.f32 %v5381_v19, %v2271_v23  ;;  %v2272_v36 = vmul.f32 0.0078125, %v2270_v29 }
 0x4d0   :  { %v2282_v21 = vsub.f32 %v5391_v10, %v2271_v23  ;;  %v2283_v22 = vsub.f32 %v5401_v39, %v2271_v23  ;;  %v2284_v54 = vsub.f32 %v5411_v15, %v2271_v23  ;;  %v2285_v58 = vsub.f32 %v5422_v38, %v2271_v23 }
 0x4d1   :  { %v2286_v41 = vsub.f32 %v5433_v37, %v2271_v23  ;;  %v2287_v27 = vsub.f32 %v5444_v46, %v2271_v23  ;;  %v2288_v55 = vsub.f32 %v5453_v33, %v2271_v23  ;;  %v2274_v13 = vsub.f32 %v2272_v36, %v2273_v12 }
 0x4d2   :  { %v2289_v2 = vsub.f32 %v5462_v59, %v2271_v23  ;;  %v2290_v19 = vsub.f32 %v5470_v35, %v2271_v23  ;;  %v2291_v30 = vsub.f32 %v5478_v11, %v2271_v23  ;;  %v2312_v39 = vsub.s32 6, %v6449_v42 }
 0x4d3   :  { %v2275_v10 = vmax.f32 %v2274_v13, 0.0  ;;  %v2332_v15 = vsub.s32 7, %v6449_v42 }
 0x4d4   :  { %v2313_v37 = vrot.slane %v5164_v48, %v2312_v39 }
 0x4d5   :  { %v2292_v52 = vadd.f32 1e-05, %v2275_v10  ;;  %v2333_v46 = vrot.slane %v5164_v48, %v2332_v15 }
 0x4d7   :  { %2734 = vrsqrt.f32 %v2292_v52 }
 0x4e1   :  { %v2735_v38 = vpop.eup %2734 }
 0x4e2   :  { %v2294_v33 = vmul.f32 %v2735_v38, %v2276_v3  ;;  %v2295_v34 = vmul.f32 %v2735_v38, %v2277_v61  ;;  %v2296_v51 = vmul.f32 %v2735_v38, %v2278_v1  ;;  %v2297_v59 = vmul.f32 %v2735_v38, %v2279_v8 }
 0x4e3   :  { %v2298_v4 = vmul.f32 %v2735_v38, %v2280_v5  ;;  %v2299_v31 = vmul.f32 %v2735_v38, %v2281_v17  ;;  %v2300_v28 = vmul.f32 %v2735_v38, %v2282_v21  ;;  %v2301_v57 = vmul.f32 %v2735_v38, %v2283_v22 }
 0x4e4   :  { %v2302_v35 = vmul.f32 %v2735_v38, %v2284_v54  ;;  %v2303_v26 = vmul.f32 %v2735_v38, %v2285_v58  ;;  %v2304_v0 = vmul.f32 %v2735_v38, %v2286_v41  ;;  %v2305_v47 = vmul.f32 %v2735_v38, %v2287_v27 }
 0x4e5   :  { %v2306_v18 = vmul.f32 %v2735_v38, %v2288_v55  ;;  %v2307_v11 = vmul.f32 %v2735_v38, %v2289_v2  ;;  %v2308_v42 = vmul.f32 %v2735_v38, %v2290_v19  ;;  %v2309_v6 = vmul.f32 %v2735_v38, %v2291_v30 }
 0x4e6   :  { %v2314_v53 = vmul.f32 %v2313_v37, %v2294_v33  ;;  %v2315_v40 = vmul.f32 %v2313_v37, %v2295_v34  ;;  %v2316_v49 = vmul.f32 %v2313_v37, %v2296_v51  ;;  %v2317_v48 = vmul.f32 %v2313_v37, %v2297_v59 }
 0x4e7   :  { %v2318_v25 = vmul.f32 %v2313_v37, %v2298_v4  ;;  %v2319_v32 = vmul.f32 %v2313_v37, %v2299_v31  ;;  %v2320_v44 = vmul.f32 %v2313_v37, %v2300_v28  ;;  %v2321_v7 = vmul.f32 %v2313_v37, %v2301_v57 }
 0x4e8   :  { %v2322_v56 = vmul.f32 %v2313_v37, %v2302_v35  ;;  %v2323_v24 = vmul.f32 %v2313_v37, %v2303_v26  ;;  %v2324_v20 = vmul.f32 %v2313_v37, %v2304_v0  ;;  %v2325_v16 = vmul.f32 %v2313_v37, %v2305_v47 }
 0x4e9   :  { %v2326_v45 = vmul.f32 %v2313_v37, %v2306_v18  ;;  %v2327_v43 = vmul.f32 %v2313_v37, %v2307_v11  ;;  %v2328_v50 = vmul.f32 %v2313_v37, %v2308_v42  ;;  %v2329_v63 = vmul.f32 %v2313_v37, %v2309_v6 }
 0x4ea   :  { %v2334_v14 = vadd.f32 %v2333_v46, %v2314_v53  ;;  %v2335_v9 = vadd.f32 %v2333_v46, %v2315_v40  ;;  %v2336_v60 = vadd.f32 %v2333_v46, %v2316_v49  ;;  %v2337_v62 = vadd.f32 %v2333_v46, %v2317_v48 }
 0x4eb   :  { %v2338_v23 = vadd.f32 %v2333_v46, %v2318_v25  ;;  %v2339_v29 = vadd.f32 %v2333_v46, %v2319_v32  ;;  %v2340_v12 = vadd.f32 %v2333_v46, %v2320_v44  ;;  %v2341_v3 = vadd.f32 %v2333_v46, %v2321_v7 }
 0x4ec   :  { %v2342_v61 = vadd.f32 %v2333_v46, %v2322_v56  ;;  %v2343_v1 = vadd.f32 %v2333_v46, %v2323_v24  ;;  %v2344_v8 = vadd.f32 %v2333_v46, %v2324_v20  ;;  %v2345_v5 = vadd.f32 %v2333_v46, %v2325_v16 }
 0x4ed   :  { %v2346_v17 = vadd.f32 %v2333_v46, %v2326_v45  ;;  %v2347_v36 = vadd.f32 %v2333_v46, %v2327_v43  ;;  %v2348_v21 = vadd.f32 %v2333_v46, %v2328_v50  ;;  %v2349_v22 = vadd.f32 %v2333_v46, %v2329_v63 }
 0x4ee   :  { %v2350_v54 = vmax.f32 %v2334_v14, 0.0  ;;  %v2351_v58 = vmax.f32 %v2335_v9, 0.0  ;;  %v2352_v41 = vmax.f32 %v2336_v60, 0.0  ;;  %v2353_v27 = vmax.f32 %v2337_v62, 0.0 }
 0x4ef   :  { %v2354_v55 = vmax.f32 %v2338_v23, 0.0  ;;  %v2355_v13 = vmax.f32 %v2339_v29, 0.0  ;;  %v2356_v2 = vmax.f32 %v2340_v12, 0.0  ;;  %v2357_v19 = vmax.f32 %v2341_v3, 0.0 }
 0x4f0   :  { %v2358_v30 = vmax.f32 %v2342_v61, 0.0  ;;  %v2359_v10 = vmax.f32 %v2343_v1, 0.0  ;;  %v2360_v52 = vmax.f32 %v2344_v8, 0.0  ;;  %v2361_v39 = vmax.f32 %v2345_v5, 0.0  ;;  %2366 = vst [vmem:[#allocation2] sm:$0xff] %v2350_v54  ;;  %2367 = vst [vmem:[#allocation2 + $0x8] sm:$0xff] %v2351_v58 }
 0x4f1   :  { %2368 = vst [vmem:[#allocation2 + $0x10] sm:$0xff] %v2352_v41  ;;  %2369 = vst [vmem:[#allocation2 + $0x18] sm:$0xff] %v2353_v27  ;;  %v2362_v15 = vmax.f32 %v2346_v17, 0.0  ;;  %v2363_v38 = vmax.f32 %v2347_v36, 0.0  ;;  %v2364_v37 = vmax.f32 %v2348_v21, 0.0  ;;  %v2365_v46 = vmax.f32 %v2349_v22, 0.0 }
 0x4f2   :  { %2370 = vst [vmem:[#allocation2 + $0x20] sm:$0xff] %v2354_v55  ;;  %2371 = vst [vmem:[#allocation2 + $0x28] sm:$0xff] %v2355_v13 }
 0x4f3   :  { %2372 = vst [vmem:[#allocation2 + $0x30] sm:$0xff] %v2356_v2  ;;  %2373 = vst [vmem:[#allocation2 + $0x38] sm:$0xff] %v2357_v19 }
 0x4f4   :  { %2374 = vst [vmem:[#allocation2 + $0x40] sm:$0xff] %v2358_v30  ;;  %2375 = vst [vmem:[#allocation2 + $0x48] sm:$0xff] %v2359_v10 }
 0x4f5   :  { %2376 = vst [vmem:[#allocation2 + $0x50] sm:$0xff] %v2360_v52  ;;  %2377 = vst [vmem:[#allocation2 + $0x58] sm:$0xff] %v2361_v39 }
 0x4f6   :  { %2378 = vst [vmem:[#allocation2 + $0x60] sm:$0xff] %v2362_v15  ;;  %2379 = vst [vmem:[#allocation2 + $0x68] sm:$0xff] %v2363_v38 }
 0x4f7   :  { %2380 = vst [vmem:[#allocation2 + $0x70] sm:$0xff] %v2364_v37  ;;  %2381 = vst [vmem:[#allocation2 + $0x78] sm:$0xff] %v2365_v46 }
 0x4f8   :  { %2764 = shalt.err (!%p2761_p4)
}
 0x4f9   :  { %s2765_s14 = scalar_lea.hbm %s5525_s5, 2048 }
 0x4fa   :  { %p2766_p5 = scmp.ne.s32.totalorder %s5525_s5, %s2765_s14  ;;  %p2769_p6 = scmp.lt.u32.totalorder %s2765_s14, %s5525_s5 }
 0x4fc   :  { %p2771_p7 = pnand %p2769_p6, %p2766_p5 }
 0x4fe   :  { %2774 = shalt.err (!%p2771_p7)
}
 0x4ff   :  { %s2781_s19 = smov 128   ;;  %s2782_s20 = smov 8  }
 0x500   :  { %2393 = dma.vmem_to_hbm [thread:$0]  %s2388_s10, 2048, %s5525_s5, [#allocation3], %s2781_s19, %s2781_s19, %s2782_s20  }
 0x501   :  { %2775 = dma.done.wait [#allocation3], 2048  }
 0x502   :  { %2776 = vsyncadd [#allocation3], 4294965248 }
 0x503   :  { %2397 = vsyncpa [#allocation3], 1 }

</bundles_post_ra>
